<compile_context>
chip_gen: v7x
topology: tpu7x:2x2x1
jax: 0.10.0
libtpu: 0.0.40
codegen_flags: <defaults>
</compile_context>

<pallas_src>
import jax
import jax.numpy as jnp
import numpy as np
from jax.experimental import pallas as pl
from jax.experimental.pallas import tpu as pltpu

_VMEM_LIMIT = 48 * 1024 * 1024  # fits under v7x's 64 MiB physical VMEM


def _round_up(x, m):
    return ((x + m - 1) // m) * m


# ---------------------------------------------------------------------------
# Kernel A: fused conv1 + pool + ReLU + conv2 + pool + ReLU (one image/step).
# ---------------------------------------------------------------------------
def _conv_stack_kernel(p_ref, w1_ref, b1_ref, w2_ref, b2_ref, o_ref):
    # conv1: a single MXU GEMM over all four 2x2-pool phases (rows are
    # phase-major: 4 blocks of 224 rows = (hq1, parity, k)).
    p = p_ref[0].reshape(896, 9)                                       # bf16
    o1 = jnp.dot(p, w1_ref[...], preferred_element_type=jnp.float32)   # (896, 32)

    # 2x2 maxpool over the four phase row-blocks, then bias + ReLU
    # (relu(max(.) + b) == max(relu(. + b))).
    pm = jnp.maximum(jnp.maximum(o1[0:224], o1[224:448]),
                     jnp.maximum(o1[448:672], o1[672:896]))            # (224, 32)
    act1 = jnp.maximum(pm + b1_ref[...], 0.0)

    # Row layout inside each 16-row group: positions 0..6 hold even pooled
    # columns (wq1 = 2k), positions 9..15 hold odd pooled columns
    # (wq1 = 2k-1); positions 7 and 8 are dummies -> zero them so they double
    # as conv2's left/right zero padding.
    mpos = jax.lax.broadcasted_iota(jnp.int32, (224, 32), 0) & 15
    act1 = jnp.where((mpos == 7) | (mpos == 8), 0.0, act1)

    # Even-/odd-column halo grids of the zero-padded pooled1 image, pitch 8:
    #   egrid[yy*8 + j] = P1pad[yy, 2j],  ogrid[yy*8 + j] = P1pad[yy, 2j+1]
    g = act1.reshape(14, 2, 8, 32)
    z8 = jnp.zeros((8, 32), jnp.float32)
    z16 = jnp.zeros((16, 32), jnp.float32)
    ogrid = jnp.concatenate([z8, g[:, 0].reshape(112, 32), z16], axis=0)  # (136, 32)
    egrid = jnp.concatenate([z8, g[:, 1].reshape(112, 32), z16], axis=0)  # (136, 32)
    grids = (egrid, ogrid)

    # conv2: per output-column parity pw, nine shifted-slice GEMMs that
    # accumulate in f32 entirely in VMEM (no im2col slab in HBM).
    acc = [jnp.zeros((112, 64), jnp.float32), jnp.zeros((112, 64), jnp.float32)]
    for dh in range(3):
        for dw in range(3):
            wt = w2_ref[dh * 3 + dw]                                    # (32, 64) bf16
            for pw in range(2):
                s = pw + dw
                src = grids[s % 2]
                off = dh * 8 + s // 2
                acc[pw] = acc[pw] + jnp.dot(
                    src[off:off + 112], wt, preferred_element_type=jnp.float32)

    # 2x2 maxpool: w-parity max, then the h row pairs; bias + ReLU last.
    pw_max = jnp.maximum(acc[0], acc[1])                                # (112, 64)
    hh = pw_max.reshape(7, 16, 64)
    pooled2 = jnp.maximum(hh[:, 0:8, :], hh[:, 8:16, :]).reshape(56, 64)
    o_ref[0] = jnp.maximum(pooled2 + b2_ref[...], 0.0).astype(o_ref.dtype)


# ---------------------------------------------------------------------------
# Kernel B: fused fc1 + ReLU + fc2 (fc2 zero-padded to 128 lane-dense columns).
# ---------------------------------------------------------------------------
def _mlp_kernel(x_ref, w1_ref, b1_ref, w2_ref, b2_ref, o_ref):
    h = jnp.dot(x_ref[...], w1_ref[...], preferred_element_type=jnp.float32)
    h = jnp.maximum(h + b1_ref[...], 0.0).astype(jnp.bfloat16)
    y = jnp.dot(h, w2_ref[...], preferred_element_type=jnp.float32) + b2_ref[...]
    o_ref[...] = y.astype(o_ref.dtype)


# ---------------------------------------------------------------------------
# Wrappers (the only XLA glue left is conv1's tiny im2col + free reshapes).
# ---------------------------------------------------------------------------
def _conv1_patches(x):
    """Phase-/parity-ordered 3x3 im2col of the raw 28x28 input (K = 9, bf16).

    Output (N, 4, 224, 9): axis 1 is the pool phase (ph*2 + pw); row
    hq1*16 + par*8 + k maps to conv1-output position (2*hq1+ph, 2*wq1+pw)
    with wq1 = 2k (par=0) or 2k-1 (par=1, k>=1); the two leftover slots per
    group are dummies the kernel zeroes (they become conv2's zero padding).
    """
    n = x.shape[0]
    xp = jnp.pad(x, ((0, 0), (1, 1), (1, 5)))                           # (N, 30, 34)
    wins = jnp.stack(
        [xp[:, dh:dh + 28, dw:dw + 32] for dh in range(3) for dw in range(3)],
        axis=-1)                                                        # (N, 28, 32, 9)
    k = np.arange(8)
    wq1 = np.concatenate([2 * k, np.where(k >= 1, 2 * k - 1, 15)])      # (16,)
    blocks = []
    for ph in range(2):
        rows = wins[:, ph::2]                                           # (N, 14, 32, 9)
        for pw in range(2):
            cols = jnp.asarray(2 * wq1 + pw, dtype=jnp.int32)
            blk = jnp.take(rows, cols, axis=2)                          # (N, 14, 16, 9)
            blocks.append(blk.reshape(n, 224, 9))
    return jnp.stack(blocks, axis=1).astype(jnp.bfloat16)               # (N, 4, 224, 9)


def conv_stack(patches, w1, b1, w2, b2):
    n = patches.shape[0]
    return pl.pallas_call(
        _conv_stack_kernel,
        out_shape=jax.ShapeDtypeStruct((n, 56, 64), jnp.bfloat16),
        grid=(n,),
        in_specs=[
            pl.BlockSpec((1, 4, 224, 9), lambda i: (i, 0, 0, 0)),
            pl.BlockSpec((9, 32), lambda i: (0, 0)),
            pl.BlockSpec((1, 32), lambda i: (0, 0)),
            pl.BlockSpec((9, 32, 64), lambda i: (0, 0, 0)),
            pl.BlockSpec((1, 64), lambda i: (0, 0)),
        ],
        out_specs=pl.BlockSpec((1, 56, 64), lambda i: (i, 0, 0)),
        compiler_params=pltpu.CompilerParams(
            dimension_semantics=("parallel",),
            vmem_limit_bytes=_VMEM_LIMIT),
    )(patches, w1, b1, w2, b2)


def mlp_head(feats, w1, b1, w2, b2, *, row_tile_cap=256):
    n, k = feats.shape
    h1 = w1.shape[1]
    c = w2.shape[1]
    tn = _round_up(n, 8) if n <= row_tile_cap else row_tile_cap
    n_pad = _round_up(n, tn)
    if n_pad != n:                                # zero rows are sliced off below
        feats = jnp.pad(feats, ((0, n_pad - n), (0, 0)))
    out = pl.pallas_call(
        _mlp_kernel,
        out_shape=jax.ShapeDtypeStruct((n_pad, c), jnp.float32),
        grid=(n_pad // tn,),
        in_specs=[
            pl.BlockSpec((tn, k), lambda i: (i, 0)),
            pl.BlockSpec((k, h1), lambda i: (0, 0)),
            pl.BlockSpec((1, h1), lambda i: (0, 0)),
            pl.BlockSpec((h1, c), lambda i: (0, 0)),
            pl.BlockSpec((1, c), lambda i: (0, 0)),
        ],
        out_specs=pl.BlockSpec((tn, c), lambda i: (i, 0)),
        compiler_params=pltpu.CompilerParams(
            dimension_semantics=("parallel",),
            vmem_limit_bytes=_VMEM_LIMIT),
    )(feats, w1, b1, w2, b2)
    return out[:n]


# ---------------------------------------------------------------------------
# One-time parameter layout prep (outside the per-forward hot path).
# ---------------------------------------------------------------------------
def prepare_params(params):
    cw1 = jnp.transpose(params["conv1_w"], (2, 3, 1, 0)).reshape(9, 32)
    cw2 = jnp.transpose(params["conv2_w"], (2, 3, 1, 0)).reshape(9, 32, 64)

    # fc1: kernel features are (hq, wq in 0..7, c) with wq == 7 a dummy column;
    # torch features are (c, hq, wq in 0..6).  Zero rows absorb the dummies.
    hq = np.arange(7)[:, None, None]
    wq = np.arange(7)[None, :, None]
    c = np.arange(64)[None, None, :]
    g = ((hq * 8 + wq) * 64 + c).reshape(-1)
    f = (c * 49 + hq * 7 + wq).reshape(-1)
    fc1_full = np.zeros((3584, 128), np.float32)
    fc1_full[g, :] = np.asarray(params["fc1_w"]).T[f, :]

    # fc2: zero-pad to 128 output columns for a lane-dense store.
    fc2_w = np.zeros((128, 128), np.float32)
    fc2_w[:, :10] = np.asarray(params["fc2_w"]).T
    fc2_b = np.zeros((1, 128), np.float32)
    fc2_b[0, :10] = np.asarray(params["fc2_b"])

    bf = jnp.bfloat16
    return {
        "conv1_w": cw1.astype(bf), "conv1_b": params["conv1_b"].reshape(1, 32),
        "conv2_w": cw2.astype(bf), "conv2_b": params["conv2_b"].reshape(1, 64),
        "fc1_w": jnp.asarray(fc1_full, bf),
        "fc1_b": params["fc1_b"].reshape(1, 128),
        "fc2_w": jnp.asarray(fc2_w, bf),
        "fc2_b": jnp.asarray(fc2_b),
    }


def simple_cnn_forward(x_nchw, pp):
    n = x_nchw.shape[0]
    patches = _conv1_patches(x_nchw[:, 0])                               # (N, 4, 224, 9)
    feats = conv_stack(patches, pp["conv1_w"], pp["conv1_b"],
                       pp["conv2_w"], pp["conv2_b"])                     # (N, 56, 64)
    feats = feats.reshape(n, 56 * 64)                                    # free reshape
    logits = mlp_head(feats, pp["fc1_w"], pp["fc1_b"],
                      pp["fc2_w"], pp["fc2_b"])                          # (N, 128)
    return logits[:, :10]


# ---------------------------------------------------------------------------
# Pure-JAX reference (correctness check only, torch-layout params).
# ---------------------------------------------------------------------------
def reference_forward(x, p):
    hi = jax.lax.Precision.HIGHEST

    def conv(z, w, b):
        y = jax.lax.conv_general_dilated(
            z, w, (1, 1), ((1, 1), (1, 1)),
            dimension_numbers=("NCHW", "OIHW", "NCHW"), precision=hi)
        return jax.nn.relu(y + b.reshape(1, -1, 1, 1))

    def pool(z):
        return jax.lax.reduce_window(z, -jnp.inf, jax.lax.max,
                                     (1, 1, 2, 2), (1, 1, 2, 2), "VALID")

    y = pool(conv(x, p["conv1_w"], p["conv1_b"]))
    y = pool(conv(y, p["conv2_w"], p["conv2_b"]))
    y = y.reshape(y.shape[0], -1)
    y = jax.nn.relu(jnp.dot(y, p["fc1_w"].T, precision=hi) + p["fc1_b"])
    return jnp.dot(y, p["fc2_w"].T, precision=hi) + p["fc2_b"]


# ---------------------------------------------------------------------------
# Deterministic synthetic parameters (shapes from SimpleCNN.__init__).
# ---------------------------------------------------------------------------
def init_params(key):
    ks = jax.random.split(key, 8)
    s = 0.05
    return {
        "conv1_w": s * jax.random.normal(ks[0], (32, 1, 3, 3), jnp.float32),
        "conv1_b": s * jax.random.normal(ks[1], (32,), jnp.float32),
        "conv2_w": s * jax.random.normal(ks[2], (64, 32, 3, 3), jnp.float32),
        "conv2_b": s * jax.random.normal(ks[3], (64,), jnp.float32),
        "fc1_w": s * jax.random.normal(ks[4], (128, 64 * 7 * 7), jnp.float32),
        "fc1_b": s * jax.random.normal(ks[5], (128,), jnp.float32),
        "fc2_w": s * jax.random.normal(ks[6], (10, 128), jnp.float32),
        "fc2_b": s * jax.random.normal(ks[7], (10,), jnp.float32),
    }


if __name__ == "__main__":
    key = jax.random.PRNGKey(0)
    k_x, k_p = jax.random.split(key)
    # MNIST-style input: batch=2, 1 channel, 28x28 (required by fc1 = 64*7*7).
    x = jax.random.normal(k_x, (2, 1, 28, 28), jnp.float32)
    params = init_params(k_p)
    prepped = prepare_params(params)        # one-time weight layout prep

    fwd = jax.jit(simple_cnn_forward)
    logits = jax.block_until_ready(fwd(x, prepped))

    ref = jax.block_until_ready(reference_forward(x, params))
    assert logits.shape == (2, 10)
    np.testing.assert_allclose(np.asarray(logits), np.asarray(ref),
                               rtol=2e-2, atol=2e-2)
    print("KERNEL_OK")
</pallas_src>

<mosaic_0001>
module attributes {stable_mosaic.version = 11 : i64} {
  func.func @_conv_stack_kernel(%arg0: i32, %arg1: memref<1x4x224x9xbf16, #tpu.memory_space<vmem>>, %arg2: memref<9x32xbf16, #tpu.memory_space<vmem>>, %arg3: memref<1x32xf32, #tpu.memory_space<vmem>>, %arg4: memref<9x32x64xbf16, #tpu.memory_space<vmem>>, %arg5: memref<1x64xf32, #tpu.memory_space<vmem>>, %arg6: memref<1x56x64xbf16, #tpu.memory_space<vmem>>) attributes {dimension_semantics = [#tpu.dimension_semantics<parallel>], iteration_bounds = array<i64: 2>, scalar_prefetch = 0 : i64, scratch_operands = 0 : i64, tpu.core_type = #tpu.core_type<tc>, window_params = [{transform_indices = @transform_0, window_bounds = array<i64: 1, 4, 224, 9>}, {pipeline_mode = #tpu.pipeline_mode<synchronous>, transform_indices = @transform_1, window_bounds = array<i64: 9, 32>}, {pipeline_mode = #tpu.pipeline_mode<synchronous>, transform_indices = @transform_2, window_bounds = array<i64: 1, 32>}, {pipeline_mode = #tpu.pipeline_mode<synchronous>, transform_indices = @transform_3, window_bounds = array<i64: 9, 32, 64>}, {pipeline_mode = #tpu.pipeline_mode<synchronous>, transform_indices = @transform_4, window_bounds = array<i64: 1, 64>}, {transform_indices = @transform_5, window_bounds = array<i64: 1, 56, 64>}]} {
    %c0 = arith.constant 0 : index
    %c0_0 = arith.constant 0 : index
    %c0_1 = arith.constant 0 : index
    %c0_2 = arith.constant 0 : index
    %0 = vector.load %arg1[%c0, %c0_0, %c0_1, %c0_2] : memref<1x4x224x9xbf16, #tpu.memory_space<vmem>>, vector<1x4x224x9xbf16>
    %1 = vector.shape_cast %0 : vector<1x4x224x9xbf16> to vector<4x224x9xbf16>
    %2 = vector.shape_cast %1 : vector<4x224x9xbf16> to vector<896x9xbf16>
    %c0_3 = arith.constant 0 : index
    %c0_4 = arith.constant 0 : index
    %3 = vector.load %arg2[%c0_3, %c0_4] : memref<9x32xbf16, #tpu.memory_space<vmem>>, vector<9x32xbf16>
    %cst = arith.constant dense<0.000000e+00> : vector<896x32xf32>
    %4 = tpu.matmul %2, %3, %cst {dimension_numbers = #tpu.dot_dimension_numbers<[1], [0], [0], [1], [0, 0, 1, 1], [], []>} : vector<896x9xbf16>, vector<9x32xbf16>, vector<896x32xf32> -> vector<896x32xf32>
    %5 = vector.extract_strided_slice %4 {offsets = [0, 0], sizes = [224, 32], strides = [1, 1]} : vector<896x32xf32> to vector<224x32xf32>
    %6 = vector.extract_strided_slice %4 {offsets = [224, 0], sizes = [224, 32], strides = [1, 1]} : vector<896x32xf32> to vector<224x32xf32>
    %7 = arith.maximumf %5, %6 : vector<224x32xf32>
    %8 = vector.extract_strided_slice %4 {offsets = [448, 0], sizes = [224, 32], strides = [1, 1]} : vector<896x32xf32> to vector<224x32xf32>
    %9 = vector.extract_strided_slice %4 {offsets = [672, 0], sizes = [224, 32], strides = [1, 1]} : vector<896x32xf32> to vector<224x32xf32>
    %10 = arith.maximumf %8, %9 : vector<224x32xf32>
    %11 = arith.maximumf %7, %10 : vector<224x32xf32>
    %c0_5 = arith.constant 0 : index
    %c0_6 = arith.constant 0 : index
    %12 = vector.load %arg3[%c0_5, %c0_6] : memref<1x32xf32, #tpu.memory_space<vmem>>, vector<1x32xf32>
    %13 = vector.broadcast %12 : vector<1x32xf32> to vector<224x32xf32>
    %14 = arith.addf %11, %13 : vector<224x32xf32>
    %cst_7 = arith.constant 0.000000e+00 : f32
    %15 = vector.broadcast %cst_7 : f32 to vector<224x32xf32>
    %16 = arith.maximumf %14, %15 : vector<224x32xf32>
    %17 = tpu.iota {dimensions = array<i32: 0>} : vector<224x32xi32>
    %c15_i32 = arith.constant 15 : i32
    %18 = vector.broadcast %c15_i32 : i32 to vector<224x32xi32>
    %19 = arith.andi %17, %18 : vector<224x32xi32>
    %c7_i32 = arith.constant 7 : i32
    %20 = vector.broadcast %c7_i32 : i32 to vector<224x32xi32>
    %21 = arith.cmpi eq, %19, %20 : vector<224x32xi32>
    %c8_i32 = arith.constant 8 : i32
    %22 = vector.broadcast %c8_i32 : i32 to vector<224x32xi32>
    %23 = arith.cmpi eq, %19, %22 : vector<224x32xi32>
    %24 = arith.ori %21, %23 : vector<224x32xi1>
    %cst_8 = arith.constant 0.000000e+00 : f32
    %25 = vector.broadcast %cst_8 : f32 to vector<224x32xf32>
    %26 = arith.select %24, %25, %16 : vector<224x32xi1>, vector<224x32xf32>
    %27 = vector.shape_cast %26 : vector<224x32xf32> to vector<14x2x8x32xf32>
    %cst_9 = arith.constant 0.000000e+00 : f32
    %28 = vector.broadcast %cst_9 : f32 to vector<8x32xf32>
    %cst_10 = arith.constant 0.000000e+00 : f32
    %29 = vector.broadcast %cst_10 : f32 to vector<16x32xf32>
    %30 = vector.extract_strided_slice %27 {offsets = [0, 0, 0, 0], sizes = [14, 1, 8, 32], strides = [1, 1, 1, 1]} : vector<14x2x8x32xf32> to vector<14x1x8x32xf32>
    %31 = vector.shape_cast %30 : vector<14x1x8x32xf32> to vector<14x8x32xf32>
    %32 = vector.shape_cast %31 : vector<14x8x32xf32> to vector<112x32xf32>
    %33 = tpu.concatenate %28, %32, %29 in 0 : vector<8x32xf32>, vector<112x32xf32>, vector<16x32xf32> -> vector<136x32xf32>
    %34 = vector.extract_strided_slice %27 {offsets = [0, 1, 0, 0], sizes = [14, 1, 8, 32], strides = [1, 1, 1, 1]} : vector<14x2x8x32xf32> to vector<14x1x8x32xf32>
    %35 = vector.shape_cast %34 : vector<14x1x8x32xf32> to vector<14x8x32xf32>
    %36 = vector.shape_cast %35 : vector<14x8x32xf32> to vector<112x32xf32>
    %37 = tpu.concatenate %28, %36, %29 in 0 : vector<8x32xf32>, vector<112x32xf32>, vector<16x32xf32> -> vector<136x32xf32>
    %cst_11 = arith.constant 0.000000e+00 : f32
    %38 = vector.broadcast %cst_11 : f32 to vector<112x64xf32>
    %cst_12 = arith.constant 0.000000e+00 : f32
    %39 = vector.broadcast %cst_12 : f32 to vector<112x64xf32>
    %c0_13 = arith.constant 0 : index
    %c0_14 = arith.constant 0 : index
    %c0_15 = arith.constant 0 : index
    %40 = vector.load %arg4[%c0_13, %c0_14, %c0_15] : memref<9x32x64xbf16, #tpu.memory_space<vmem>>, vector<1x32x64xbf16>
    %41 = vector.shape_cast %40 : vector<1x32x64xbf16> to vector<32x64xbf16>
    %42 = vector.extract_strided_slice %37 {offsets = [0, 0], sizes = [112, 32], strides = [1, 1]} : vector<136x32xf32> to vector<112x32xf32>
    %cst_16 = arith.constant dense<0.000000e+00> : vector<112x64xf32>
    %43 = tpu.matmul %42, %41, %cst_16 {dimension_numbers = #tpu.dot_dimension_numbers<[1], [0], [0], [1], [0, 0, 1, 1], [], []>} : vector<112x32xf32>, vector<32x64xbf16>, vector<112x64xf32> -> vector<112x64xf32>
    %44 = arith.addf %38, %43 : vector<112x64xf32>
    %45 = vector.extract_strided_slice %33 {offsets = [0, 0], sizes = [112, 32], strides = [1, 1]} : vector<136x32xf32> to vector<112x32xf32>
    %cst_17 = arith.constant dense<0.000000e+00> : vector<112x64xf32>
    %46 = tpu.matmul %45, %41, %cst_17 {dimension_numbers = #tpu.dot_dimension_numbers<[1], [0], [0], [1], [0, 0, 1, 1], [], []>} : vector<112x32xf32>, vector<32x64xbf16>, vector<112x64xf32> -> vector<112x64xf32>
    %47 = arith.addf %39, %46 : vector<112x64xf32>
    %c1 = arith.constant 1 : index
    %c0_18 = arith.constant 0 : index
    %c0_19 = arith.constant 0 : index
    %48 = vector.load %arg4[%c1, %c0_18, %c0_19] : memref<9x32x64xbf16, #tpu.memory_space<vmem>>, vector<1x32x64xbf16>
    %49 = vector.shape_cast %48 : vector<1x32x64xbf16> to vector<32x64xbf16>
    %50 = vector.extract_strided_slice %33 {offsets = [0, 0], sizes = [112, 32], strides = [1, 1]} : vector<136x32xf32> to vector<112x32xf32>
    %cst_20 = arith.constant dense<0.000000e+00> : vector<112x64xf32>
    %51 = tpu.matmul %50, %49, %cst_20 {dimension_numbers = #tpu.dot_dimension_numbers<[1], [0], [0], [1], [0, 0, 1, 1], [], []>} : vector<112x32xf32>, vector<32x64xbf16>, vector<112x64xf32> -> vector<112x64xf32>
    %52 = arith.addf %44, %51 : vector<112x64xf32>
    %53 = vector.extract_strided_slice %37 {offsets = [1, 0], sizes = [112, 32], strides = [1, 1]} : vector<136x32xf32> to vector<112x32xf32>
    %cst_21 = arith.constant dense<0.000000e+00> : vector<112x64xf32>
    %54 = tpu.matmul %53, %49, %cst_21 {dimension_numbers = #tpu.dot_dimension_numbers<[1], [0], [0], [1], [0, 0, 1, 1], [], []>} : vector<112x32xf32>, vector<32x64xbf16>, vector<112x64xf32> -> vector<112x64xf32>
    %55 = arith.addf %47, %54 : vector<112x64xf32>
    %c2 = arith.constant 2 : index
    %c0_22 = arith.constant 0 : index
    %c0_23 = arith.constant 0 : index
    %56 = vector.load %arg4[%c2, %c0_22, %c0_23] : memref<9x32x64xbf16, #tpu.memory_space<vmem>>, vector<1x32x64xbf16>
    %57 = vector.shape_cast %56 : vector<1x32x64xbf16> to vector<32x64xbf16>
    %58 = vector.extract_strided_slice %37 {offsets = [1, 0], sizes = [112, 32], strides = [1, 1]} : vector<136x32xf32> to vector<112x32xf32>
    %cst_24 = arith.constant dense<0.000000e+00> : vector<112x64xf32>
    %59 = tpu.matmul %58, %57, %cst_24 {dimension_numbers = #tpu.dot_dimension_numbers<[1], [0], [0], [1], [0, 0, 1, 1], [], []>} : vector<112x32xf32>, vector<32x64xbf16>, vector<112x64xf32> -> vector<112x64xf32>
    %60 = arith.addf %52, %59 : vector<112x64xf32>
    %61 = vector.extract_strided_slice %33 {offsets = [1, 0], sizes = [112, 32], strides = [1, 1]} : vector<136x32xf32> to vector<112x32xf32>
    %cst_25 = arith.constant dense<0.000000e+00> : vector<112x64xf32>
    %62 = tpu.matmul %61, %57, %cst_25 {dimension_numbers = #tpu.dot_dimension_numbers<[1], [0], [0], [1], [0, 0, 1, 1], [], []>} : vector<112x32xf32>, vector<32x64xbf16>, vector<112x64xf32> -> vector<112x64xf32>
    %63 = arith.addf %55, %62 : vector<112x64xf32>
    %c3 = arith.constant 3 : index
    %c0_26 = arith.constant 0 : index
    %c0_27 = arith.constant 0 : index
    %64 = vector.load %arg4[%c3, %c0_26, %c0_27] : memref<9x32x64xbf16, #tpu.memory_space<vmem>>, vector<1x32x64xbf16>
    %65 = vector.shape_cast %64 : vector<1x32x64xbf16> to vector<32x64xbf16>
    %66 = vector.extract_strided_slice %37 {offsets = [8, 0], sizes = [112, 32], strides = [1, 1]} : vector<136x32xf32> to vector<112x32xf32>
    %cst_28 = arith.constant dense<0.000000e+00> : vector<112x64xf32>
    %67 = tpu.matmul %66, %65, %cst_28 {dimension_numbers = #tpu.dot_dimension_numbers<[1], [0], [0], [1], [0, 0, 1, 1], [], []>} : vector<112x32xf32>, vector<32x64xbf16>, vector<112x64xf32> -> vector<112x64xf32>
    %68 = arith.addf %60, %67 : vector<112x64xf32>
    %69 = vector.extract_strided_slice %33 {offsets = [8, 0], sizes = [112, 32], strides = [1, 1]} : vector<136x32xf32> to vector<112x32xf32>
    %cst_29 = arith.constant dense<0.000000e+00> : vector<112x64xf32>
    %70 = tpu.matmul %69, %65, %cst_29 {dimension_numbers = #tpu.dot_dimension_numbers<[1], [0], [0], [1], [0, 0, 1, 1], [], []>} : vector<112x32xf32>, vector<32x64xbf16>, vector<112x64xf32> -> vector<112x64xf32>
    %71 = arith.addf %63, %70 : vector<112x64xf32>
    %c4 = arith.constant 4 : index
    %c0_30 = arith.constant 0 : index
    %c0_31 = arith.constant 0 : index
    %72 = vector.load %arg4[%c4, %c0_30, %c0_31] : memref<9x32x64xbf16, #tpu.memory_space<vmem>>, vector<1x32x64xbf16>
    %73 = vector.shape_cast %72 : vector<1x32x64xbf16> to vector<32x64xbf16>
    %74 = vector.extract_strided_slice %33 {offsets = [8, 0], sizes = [112, 32], strides = [1, 1]} : vector<136x32xf32> to vector<112x32xf32>
    %cst_32 = arith.constant dense<0.000000e+00> : vector<112x64xf32>
    %75 = tpu.matmul %74, %73, %cst_32 {dimension_numbers = #tpu.dot_dimension_numbers<[1], [0], [0], [1], [0, 0, 1, 1], [], []>} : vector<112x32xf32>, vector<32x64xbf16>, vector<112x64xf32> -> vector<112x64xf32>
    %76 = arith.addf %68, %75 : vector<112x64xf32>
    %77 = vector.extract_strided_slice %37 {offsets = [9, 0], sizes = [112, 32], strides = [1, 1]} : vector<136x32xf32> to vector<112x32xf32>
    %cst_33 = arith.constant dense<0.000000e+00> : vector<112x64xf32>
    %78 = tpu.matmul %77, %73, %cst_33 {dimension_numbers = #tpu.dot_dimension_numbers<[1], [0], [0], [1], [0, 0, 1, 1], [], []>} : vector<112x32xf32>, vector<32x64xbf16>, vector<112x64xf32> -> vector<112x64xf32>
    %79 = arith.addf %71, %78 : vector<112x64xf32>
    %c5 = arith.constant 5 : index
    %c0_34 = arith.constant 0 : index
    %c0_35 = arith.constant 0 : index
    %80 = vector.load %arg4[%c5, %c0_34, %c0_35] : memref<9x32x64xbf16, #tpu.memory_space<vmem>>, vector<1x32x64xbf16>
    %81 = vector.shape_cast %80 : vector<1x32x64xbf16> to vector<32x64xbf16>
    %82 = vector.extract_strided_slice %37 {offsets = [9, 0], sizes = [112, 32], strides = [1, 1]} : vector<136x32xf32> to vector<112x32xf32>
    %cst_36 = arith.constant dense<0.000000e+00> : vector<112x64xf32>
    %83 = tpu.matmul %82, %81, %cst_36 {dimension_numbers = #tpu.dot_dimension_numbers<[1], [0], [0], [1], [0, 0, 1, 1], [], []>} : vector<112x32xf32>, vector<32x64xbf16>, vector<112x64xf32> -> vector<112x64xf32>
    %84 = arith.addf %76, %83 : vector<112x64xf32>
    %85 = vector.extract_strided_slice %33 {offsets = [9, 0], sizes = [112, 32], strides = [1, 1]} : vector<136x32xf32> to vector<112x32xf32>
    %cst_37 = arith.constant dense<0.000000e+00> : vector<112x64xf32>
    %86 = tpu.matmul %85, %81, %cst_37 {dimension_numbers = #tpu.dot_dimension_numbers<[1], [0], [0], [1], [0, 0, 1, 1], [], []>} : vector<112x32xf32>, vector<32x64xbf16>, vector<112x64xf32> -> vector<112x64xf32>
    %87 = arith.addf %79, %86 : vector<112x64xf32>
    %c6 = arith.constant 6 : index
    %c0_38 = arith.constant 0 : index
    %c0_39 = arith.constant 0 : index
    %88 = vector.load %arg4[%c6, %c0_38, %c0_39] : memref<9x32x64xbf16, #tpu.memory_space<vmem>>, vector<1x32x64xbf16>
    %89 = vector.shape_cast %88 : vector<1x32x64xbf16> to vector<32x64xbf16>
    %90 = vector.extract_strided_slice %37 {offsets = [16, 0], sizes = [112, 32], strides = [1, 1]} : vector<136x32xf32> to vector<112x32xf32>
    %cst_40 = arith.constant dense<0.000000e+00> : vector<112x64xf32>
    %91 = tpu.matmul %90, %89, %cst_40 {dimension_numbers = #tpu.dot_dimension_numbers<[1], [0], [0], [1], [0, 0, 1, 1], [], []>} : vector<112x32xf32>, vector<32x64xbf16>, vector<112x64xf32> -> vector<112x64xf32>
    %92 = arith.addf %84, %91 : vector<112x64xf32>
    %93 = vector.extract_strided_slice %33 {offsets = [16, 0], sizes = [112, 32], strides = [1, 1]} : vector<136x32xf32> to vector<112x32xf32>
    %cst_41 = arith.constant dense<0.000000e+00> : vector<112x64xf32>
    %94 = tpu.matmul %93, %89, %cst_41 {dimension_numbers = #tpu.dot_dimension_numbers<[1], [0], [0], [1], [0, 0, 1, 1], [], []>} : vector<112x32xf32>, vector<32x64xbf16>, vector<112x64xf32> -> vector<112x64xf32>
    %95 = arith.addf %87, %94 : vector<112x64xf32>
    %c7 = arith.constant 7 : index
    %c0_42 = arith.constant 0 : index
    %c0_43 = arith.constant 0 : index
    %96 = vector.load %arg4[%c7, %c0_42, %c0_43] : memref<9x32x64xbf16, #tpu.memory_space<vmem>>, vector<1x32x64xbf16>
    %97 = vector.shape_cast %96 : vector<1x32x64xbf16> to vector<32x64xbf16>
    %98 = vector.extract_strided_slice %33 {offsets = [16, 0], sizes = [112, 32], strides = [1, 1]} : vector<136x32xf32> to vector<112x32xf32>
    %cst_44 = arith.constant dense<0.000000e+00> : vector<112x64xf32>
    %99 = tpu.matmul %98, %97, %cst_44 {dimension_numbers = #tpu.dot_dimension_numbers<[1], [0], [0], [1], [0, 0, 1, 1], [], []>} : vector<112x32xf32>, vector<32x64xbf16>, vector<112x64xf32> -> vector<112x64xf32>
    %100 = arith.addf %92, %99 : vector<112x64xf32>
    %101 = vector.extract_strided_slice %37 {offsets = [17, 0], sizes = [112, 32], strides = [1, 1]} : vector<136x32xf32> to vector<112x32xf32>
    %cst_45 = arith.constant dense<0.000000e+00> : vector<112x64xf32>
    %102 = tpu.matmul %101, %97, %cst_45 {dimension_numbers = #tpu.dot_dimension_numbers<[1], [0], [0], [1], [0, 0, 1, 1], [], []>} : vector<112x32xf32>, vector<32x64xbf16>, vector<112x64xf32> -> vector<112x64xf32>
    %103 = arith.addf %95, %102 : vector<112x64xf32>
    %c8 = arith.constant 8 : index
    %c0_46 = arith.constant 0 : index
    %c0_47 = arith.constant 0 : index
    %104 = vector.load %arg4[%c8, %c0_46, %c0_47] : memref<9x32x64xbf16, #tpu.memory_space<vmem>>, vector<1x32x64xbf16>
    %105 = vector.shape_cast %104 : vector<1x32x64xbf16> to vector<32x64xbf16>
    %106 = vector.extract_strided_slice %37 {offsets = [17, 0], sizes = [112, 32], strides = [1, 1]} : vector<136x32xf32> to vector<112x32xf32>
    %cst_48 = arith.constant dense<0.000000e+00> : vector<112x64xf32>
    %107 = tpu.matmul %106, %105, %cst_48 {dimension_numbers = #tpu.dot_dimension_numbers<[1], [0], [0], [1], [0, 0, 1, 1], [], []>} : vector<112x32xf32>, vector<32x64xbf16>, vector<112x64xf32> -> vector<112x64xf32>
    %108 = arith.addf %100, %107 : vector<112x64xf32>
    %109 = vector.extract_strided_slice %33 {offsets = [17, 0], sizes = [112, 32], strides = [1, 1]} : vector<136x32xf32> to vector<112x32xf32>
    %cst_49 = arith.constant dense<0.000000e+00> : vector<112x64xf32>
    %110 = tpu.matmul %109, %105, %cst_49 {dimension_numbers = #tpu.dot_dimension_numbers<[1], [0], [0], [1], [0, 0, 1, 1], [], []>} : vector<112x32xf32>, vector<32x64xbf16>, vector<112x64xf32> -> vector<112x64xf32>
    %111 = arith.addf %103, %110 : vector<112x64xf32>
    %112 = arith.maximumf %108, %111 : vector<112x64xf32>
    %113 = vector.shape_cast %112 : vector<112x64xf32> to vector<7x16x64xf32>
    %114 = vector.extract_strided_slice %113 {offsets = [0, 0, 0], sizes = [7, 8, 64], strides = [1, 1, 1]} : vector<7x16x64xf32> to vector<7x8x64xf32>
    %115 = vector.extract_strided_slice %113 {offsets = [0, 8, 0], sizes = [7, 8, 64], strides = [1, 1, 1]} : vector<7x16x64xf32> to vector<7x8x64xf32>
    %116 = arith.maximumf %114, %115 : vector<7x8x64xf32>
    %117 = vector.shape_cast %116 : vector<7x8x64xf32> to vector<56x64xf32>
    %c0_50 = arith.constant 0 : index
    %c0_51 = arith.constant 0 : index
    %118 = vector.load %arg5[%c0_50, %c0_51] : memref<1x64xf32, #tpu.memory_space<vmem>>, vector<1x64xf32>
    %119 = vector.broadcast %118 : vector<1x64xf32> to vector<56x64xf32>
    %120 = arith.addf %117, %119 : vector<56x64xf32>
    %cst_52 = arith.constant 0.000000e+00 : f32
    %121 = vector.broadcast %cst_52 : f32 to vector<56x64xf32>
    %122 = arith.maximumf %120, %121 : vector<56x64xf32>
    %123 = arith.truncf %122 : vector<56x64xf32> to vector<56x64xbf16>
    %c0_53 = arith.constant 0 : index
    %c0_54 = arith.constant 0 : index
    %c0_55 = arith.constant 0 : index
    %124 = vector.load %arg6[%c0_53, %c0_54, %c0_55] : memref<1x56x64xbf16, #tpu.memory_space<vmem>>, vector<1x56x64xbf16>
    %125 = vector.shape_cast %124 : vector<1x56x64xbf16> to vector<56x64xbf16>
    %126 = vector.shape_cast %123 : vector<56x64xbf16> to vector<1x56x64xbf16>
    tpu.vector_store %arg6[%c0_53, %c0_54, %c0_55], %126 {strides = array<i32>} : memref<1x56x64xbf16, #tpu.memory_space<vmem>>, vector<1x56x64xbf16>,
    return
  }
  func.func @transform_0(%arg0: i32) -> (i32, i32, i32, i32) {
    %c0_i32 = arith.constant 0 : i32
    %c0_i32_0 = arith.constant 0 : i32
    %c0_i32_1 = arith.constant 0 : i32
    %c0_i32_2 = arith.constant 0 : i32
    return %arg0, %c0_i32, %c0_i32_0, %c0_i32_1 : i32, i32, i32, i32
  }
  func.func @transform_1(%arg0: i32) -> (i32, i32) {
    %c0_i32 = arith.constant 0 : i32
    %c0_i32_0 = arith.constant 0 : i32
    %c0_i32_1 = arith.constant 0 : i32
    return %c0_i32, %c0_i32_0 : i32, i32
  }
  func.func @transform_2(%arg0: i32) -> (i32, i32) {
    %c0_i32 = arith.constant 0 : i32
    %c0_i32_0 = arith.constant 0 : i32
    %c0_i32_1 = arith.constant 0 : i32
    return %c0_i32, %c0_i32_0 : i32, i32
  }
  func.func @transform_3(%arg0: i32) -> (i32, i32, i32) {
    %c0_i32 = arith.constant 0 : i32
    %c0_i32_0 = arith.constant 0 : i32
    %c0_i32_1 = arith.constant 0 : i32
    %c0_i32_2 = arith.constant 0 : i32
    return %c0_i32, %c0_i32_0, %c0_i32_1 : i32, i32, i32
  }
  func.func @transform_4(%arg0: i32) -> (i32, i32) {
    %c0_i32 = arith.constant 0 : i32
    %c0_i32_0 = arith.constant 0 : i32
    %c0_i32_1 = arith.constant 0 : i32
    return %c0_i32, %c0_i32_0 : i32, i32
  }
  func.func @transform_5(%arg0: i32) -> (i32, i32, i32) {
    %c0_i32 = arith.constant 0 : i32
    %c0_i32_0 = arith.constant 0 : i32
    %c0_i32_1 = arith.constant 0 : i32
    return %arg0, %c0_i32, %c0_i32_0 : i32, i32, i32
  }
}

module attributes {stable_mosaic.version = 11 : i64} {
  func.func @_mlp_kernel(%arg0: i32, %arg1: memref<8x3584xbf16, #tpu.memory_space<vmem>>, %arg2: memref<3584x128xbf16, #tpu.memory_space<vmem>>, %arg3: memref<1x128xf32, #tpu.memory_space<vmem>>, %arg4: memref<128x128xbf16, #tpu.memory_space<vmem>>, %arg5: memref<1x128xf32, #tpu.memory_space<vmem>>, %arg6: memref<8x128xf32, #tpu.memory_space<vmem>>) attributes {dimension_semantics = [#tpu.dimension_semantics<parallel>], iteration_bounds = array<i64: 1>, scalar_prefetch = 0 : i64, scratch_operands = 0 : i64, tpu.core_type = #tpu.core_type<tc>, window_params = [{transform_indices = @transform_0, window_bounds = array<i64: 8, 3584>}, {pipeline_mode = #tpu.pipeline_mode<synchronous>, transform_indices = @transform_1, window_bounds = array<i64: 3584, 128>}, {pipeline_mode = #tpu.pipeline_mode<synchronous>, transform_indices = @transform_2, window_bounds = array<i64: 1, 128>}, {pipeline_mode = #tpu.pipeline_mode<synchronous>, transform_indices = @transform_3, window_bounds = array<i64: 128, 128>}, {pipeline_mode = #tpu.pipeline_mode<synchronous>, transform_indices = @transform_4, window_bounds = array<i64: 1, 128>}, {transform_indices = @transform_5, window_bounds = array<i64: 8, 128>}]} {
    %c0 = arith.constant 0 : index
    %c0_0 = arith.constant 0 : index
    %0 = vector.load %arg1[%c0, %c0_0] : memref<8x3584xbf16, #tpu.memory_space<vmem>>, vector<8x3584xbf16>
    %c0_1 = arith.constant 0 : index
    %c0_2 = arith.constant 0 : index
    %1 = vector.load %arg2[%c0_1, %c0_2] : memref<3584x128xbf16, #tpu.memory_space<vmem>>, vector<3584x128xbf16>
    %cst = arith.constant dense<0.000000e+00> : vector<8x128xf32>
    %2 = tpu.matmul %0, %1, %cst {dimension_numbers = #tpu.dot_dimension_numbers<[1], [0], [0], [1], [0, 0, 1, 1], [], []>} : vector<8x3584xbf16>, vector<3584x128xbf16>, vector<8x128xf32> -> vector<8x128xf32>
    %c0_3 = arith.constant 0 : index
    %c0_4 = arith.constant 0 : index
    %3 = vector.load %arg3[%c0_3, %c0_4] : memref<1x128xf32, #tpu.memory_space<vmem>>, vector<1x128xf32>
    %4 = vector.broadcast %3 : vector<1x128xf32> to vector<8x128xf32>
    %5 = arith.addf %2, %4 : vector<8x128xf32>
    %cst_5 = arith.constant 0.000000e+00 : f32
    %6 = vector.broadcast %cst_5 : f32 to vector<8x128xf32>
    %7 = arith.maximumf %5, %6 : vector<8x128xf32>
    %8 = arith.truncf %7 : vector<8x128xf32> to vector<8x128xbf16>
    %c0_6 = arith.constant 0 : index
    %c0_7 = arith.constant 0 : index
    %9 = vector.load %arg4[%c0_6, %c0_7] : memref<128x128xbf16, #tpu.memory_space<vmem>>, vector<128x128xbf16>
    %cst_8 = arith.constant dense<0.000000e+00> : vector<8x128xf32>
    %10 = tpu.matmul %8, %9, %cst_8 {dimension_numbers = #tpu.dot_dimension_numbers<[1], [0], [0], [1], [0, 0, 1, 1], [], []>} : vector<8x128xbf16>, vector<128x128xbf16>, vector<8x128xf32> -> vector<8x128xf32>
    %c0_9 = arith.constant 0 : index
    %c0_10 = arith.constant 0 : index
    %11 = vector.load %arg5[%c0_9, %c0_10] : memref<1x128xf32, #tpu.memory_space<vmem>>, vector<1x128xf32>
    %12 = vector.broadcast %11 : vector<1x128xf32> to vector<8x128xf32>
    %13 = arith.addf %10, %12 : vector<8x128xf32>
    %c0_11 = arith.constant 0 : index
    %c0_12 = arith.constant 0 : index
    %14 = vector.load %arg6[%c0_11, %c0_12] : memref<8x128xf32, #tpu.memory_space<vmem>>, vector<8x128xf32>
    tpu.vector_store %arg6[%c0_11, %c0_12], %13 {strides = array<i32>} : memref<8x128xf32, #tpu.memory_space<vmem>>, vector<8x128xf32>,
    return
  }
  func.func @transform_0(%arg0: i32) -> (i32, i32) {
    %c0_i32 = arith.constant 0 : i32
    %c0_i32_0 = arith.constant 0 : i32
    return %arg0, %c0_i32 : i32, i32
  }
  func.func @transform_1(%arg0: i32) -> (i32, i32) {
    %c0_i32 = arith.constant 0 : i32
    %c0_i32_0 = arith.constant 0 : i32
    %c0_i32_1 = arith.constant 0 : i32
    return %c0_i32, %c0_i32_0 : i32, i32
  }
  func.func @transform_2(%arg0: i32) -> (i32, i32) {
    %c0_i32 = arith.constant 0 : i32
    %c0_i32_0 = arith.constant 0 : i32
    %c0_i32_1 = arith.constant 0 : i32
    return %c0_i32, %c0_i32_0 : i32, i32
  }
  func.func @transform_3(%arg0: i32) -> (i32, i32) {
    %c0_i32 = arith.constant 0 : i32
    %c0_i32_0 = arith.constant 0 : i32
    %c0_i32_1 = arith.constant 0 : i32
    return %c0_i32, %c0_i32_0 : i32, i32
  }
  func.func @transform_4(%arg0: i32) -> (i32, i32) {
    %c0_i32 = arith.constant 0 : i32
    %c0_i32_0 = arith.constant 0 : i32
    %c0_i32_1 = arith.constant 0 : i32
    return %c0_i32, %c0_i32_0 : i32, i32
  }
  func.func @transform_5(%arg0: i32) -> (i32, i32) {
    %c0_i32 = arith.constant 0 : i32
    %c0_i32_0 = arith.constant 0 : i32
    return %arg0, %c0_i32 : i32, i32
  }
}

</mosaic_0001>

<bundles_post_ra>
// kernel: simple_cnn_forward.3
= control target key start
LH: loop header
LB: loop body
LE: loop exit
PB: predicated region body
PF: predicated region fallthrough
CT: control target
= control target key end

     0   :  { %vm3472_vm0 = vmmov 0   ;;  %s4250_s1 = inlined_call_operand.vmem [shape: bf16[3584,128], index: 1, kind: input, shape index: {}]   ;;  %s4251_s0 = inlined_call_operand.vmem [shape: bf16[8,3584], index: 0, kind: input, shape index: {}]   ;;  %s4252_s2 = inlined_call_operand.vmem [shape: f32[1,128], index: 2, kind: input, shape index: {}]   ;;  %s4253_s3 = inlined_call_operand.vmem [shape: bf16[128,128], index: 3, kind: input, shape index: {}]   ;;  %s4254_s4 = inlined_call_operand.vmem [shape: f32[1,128], index: 4, kind: input, shape index: {}]   ;;  %s4255_s5 = inlined_call_operand.vmem [shape: f32[8,128], index: 5, kind: output, shape index: {}]  }
   0x1   :  { %v3211_v0 = vld [vmem:[%s4250_s1 + $0x40] sm:$0xff]   ;;  %v3215_v4 = vld [vmem:[%s4250_s1 + $0x48] sm:$0xff]   ;;  %v3219_v8 = vld [vmem:[%s4250_s1 + $0x50] sm:$0xff]  }
   0x2   :  { %v3212_v1 = vld [vmem:[%s4250_s1 + $0xc0] sm:$0xff]   ;;  %2872 = vmatprep.subr.bf16.mxu0 %v3211_v0  ;;  %v3216_v5 = vld [vmem:[%s4250_s1 + $0xc8] sm:$0xff]   ;;  %v3220_v9 = vld [vmem:[%s4250_s1 + $0xd0] sm:$0xff]  }
   0x3   :  { %v3213_v2 = vld [vmem:[%s4250_s1] sm:$0xff]   ;;  %2894 = vmatprep.subr.bf16.mxu1 %v3212_v1  ;;  %v3217_v6 = vld [vmem:[%s4250_s1 + $0x8] sm:$0xff]   ;;  %v3221_v10 = vld [vmem:[%s4250_s1 + $0x10] sm:$0xff]  }
   0x4   :  { %v3214_v3 = vld [vmem:[%s4250_s1 + $0x80] sm:$0xff]   ;;  %2873 = vmatpush3.bf16.msra.mxu0 %v3213_v2  ;;  %v3218_v7 = vld [vmem:[%s4250_s1 + $0x88] sm:$0xff]   ;;  %v3222_v11 = vld [vmem:[%s4250_s1 + $0x90] sm:$0xff]  }
   0x5   :  { %2895 = vmatpush3.bf16.msra.mxu1 %v3214_v3  ;;  %2874 = vmatprep.subr.bf16.mxu0 %v3215_v4  ;;  %v3223_v12 = vld [vmem:[%s4250_s1 + $0x58] sm:$0xff]   ;;  %v3227_v16 = vld [vmem:[%s4250_s1 + $0x60] sm:$0xff]   ;;  %v3231_v20 = vld [vmem:[%s4250_s1 + $0x68] sm:$0xff]  }
   0x6   :  { %2896 = vmatprep.subr.bf16.mxu1 %v3216_v5  ;;  %v3224_v13 = vld [vmem:[%s4250_s1 + $0xd8] sm:$0xff]   ;;  %v3228_v17 = vld [vmem:[%s4250_s1 + $0xe0] sm:$0xff]   ;;  %v3232_v21 = vld [vmem:[%s4250_s1 + $0xe8] sm:$0xff]  }
   0x7   :  { %v3225_v14 = vld [vmem:[%s4250_s1 + $0x18] sm:$0xff]   ;;  %v3229_v18 = vld [vmem:[%s4250_s1 + $0x20] sm:$0xff]   ;;  %v3233_v22 = vld [vmem:[%s4250_s1 + $0x28] sm:$0xff]  }
   0x8   :  { %2875 = vmatpush3.bf16.msra.mxu0 %v3217_v6  ;;  %v3226_v15 = vld [vmem:[%s4250_s1 + $0x98] sm:$0xff]   ;;  %v3230_v19 = vld [vmem:[%s4250_s1 + $0xa0] sm:$0xff]   ;;  %v3234_v23 = vld [vmem:[%s4250_s1 + $0xa8] sm:$0xff]  }
   0x9   :  { %2897 = vmatpush3.bf16.msra.mxu1 %v3218_v7  ;;  %2876 = vmatprep.subr.bf16.mxu0 %v3219_v8  ;;  %v3235_v24 = vld [vmem:[%s4250_s1 + $0x70] sm:$0xff]   ;;  %v3239_v28 = vld [vmem:[%s4250_s1 + $0x78] sm:$0xff]   ;;  %v21_v32 = vld [vmem:[%s4251_s0] sm:$0xff] }
   0xa   :  { %2898 = vmatprep.subr.bf16.mxu1 %v3220_v9  ;;  %v3236_v25 = vld [vmem:[%s4250_s1 + $0xf0] sm:$0xff]   ;;  %v3240_v29 = vld [vmem:[%s4250_s1 + $0xf8] sm:$0xff]   ;;  %v22_v33 = vld [vmem:[%s4251_s0 + $0x8] sm:$0xff]  ;;  %v2611_v34 = vcombine.low %v21_v32, %v21_v32  ;;  %v2612_v35 = vcombine.high %v21_v32, %v21_v32 }
   0xb   :  { %v3237_v26 = vld [vmem:[%s4250_s1 + $0x30] sm:$0xff]   ;;  %v3241_v30 = vld [vmem:[%s4250_s1 + $0x38] sm:$0xff]   ;;  %v2613_v36 = vcombine.low %v22_v33, %v22_v33  ;;  %v2614_v37 = vcombine.high %v22_v33, %v22_v33  ;;  %v3247_v38 = vld [vmem:[%s4250_s1 + $0x140] sm:$0xff]  }
   0xc   :  { %2877 = vmatpush3.bf16.msra.mxu0 %v3221_v10  ;;  %v3238_v27 = vld [vmem:[%s4250_s1 + $0xb0] sm:$0xff]   ;;  %v3242_v31 = vld [vmem:[%s4250_s1 + $0xb8] sm:$0xff]   ;;  %v3248_v39 = vld [vmem:[%s4250_s1 + $0x1c0] sm:$0xff]   ;;  %1964 = vmatprep.mubr.bf16.mxu0 %v2612_v35 }
   0xd   :  { %2899 = vmatpush3.bf16.msra.mxu1 %v3222_v11  ;;  %2878 = vmatprep.subr.bf16.mxu0 %v3223_v12  ;;  %v3249_v40 = vld [vmem:[%s4250_s1 + $0x100] sm:$0xff]   ;;  %v3251_v42 = vld [vmem:[%s4250_s1 + $0x148] sm:$0xff]   ;;  %v3255_v46 = vld [vmem:[%s4250_s1 + $0x150] sm:$0xff]  }
   0xe   :  { %2900 = vmatprep.subr.bf16.mxu1 %v3224_v13  ;;  %2004 = vmatprep.mubr.bf16.mxu1 %v2614_v37  ;;  %v3250_v41 = vld [vmem:[%s4250_s1 + $0x180] sm:$0xff]   ;;  %v3252_v43 = vld [vmem:[%s4250_s1 + $0x1c8] sm:$0xff]   ;;  %v3256_v47 = vld [vmem:[%s4250_s1 + $0x1d0] sm:$0xff]  }
   0xf   :  { %v3253_v44 = vld [vmem:[%s4250_s1 + $0x108] sm:$0xff]   ;;  %v3257_v48 = vld [vmem:[%s4250_s1 + $0x110] sm:$0xff]   ;;  %v3259_v50 = vld [vmem:[%s4250_s1 + $0x158] sm:$0xff]  }
  0x10   :  { %2879 = vmatpush3.bf16.msra.mxu0 %v3225_v14  ;;  %v3254_v45 = vld [vmem:[%s4250_s1 + $0x188] sm:$0xff]   ;;  %v3258_v49 = vld [vmem:[%s4250_s1 + $0x190] sm:$0xff]   ;;  %v3260_v51 = vld [vmem:[%s4250_s1 + $0x1d8] sm:$0xff]  }
  0x11   :  { %2901 = vmatpush3.bf16.msra.mxu1 %v3226_v15  ;;  %2880 = vmatprep.subr.bf16.mxu0 %v3227_v16  ;;  %v3261_v52 = vld [vmem:[%s4250_s1 + $0x118] sm:$0xff]   ;;  %v3263_v54 = vld [vmem:[%s4250_s1 + $0x160] sm:$0xff]   ;;  %v3267_v58 = vld [vmem:[%s4250_s1 + $0x168] sm:$0xff]  }
  0x12   :  { %2902 = vmatprep.subr.bf16.mxu1 %v3228_v17  ;;  %v3262_v53 = vld [vmem:[%s4250_s1 + $0x198] sm:$0xff]   ;;  %v3264_v55 = vld [vmem:[%s4250_s1 + $0x1e0] sm:$0xff]   ;;  %v3268_v59 = vld [vmem:[%s4250_s1 + $0x1e8] sm:$0xff]  }
  0x13   :  { %v3265_v56 = vld [vmem:[%s4250_s1 + $0x120] sm:$0xff]   ;;  %v3269_v60 = vld [vmem:[%s4250_s1 + $0x128] sm:$0xff]   ;;  %v3271_v62 = vld [vmem:[%s4250_s1 + $0x170] sm:$0xff]  }
  0x14   :  { %2881 = vmatpush3.bf16.msra.mxu0 %v3229_v18  ;;  %v3266_v57 = vld [vmem:[%s4250_s1 + $0x1a0] sm:$0xff]   ;;  %v3270_v61 = vld [vmem:[%s4250_s1 + $0x1a8] sm:$0xff]   ;;  %v3272_v63 = vld [vmem:[%s4250_s1 + $0x1f0] sm:$0xff]  }
  0x15   :  { %2903 = vmatpush3.bf16.msra.mxu1 %v3230_v19  ;;  %2882 = vmatprep.subr.bf16.mxu0 %v3231_v20  ;;  %v3273_v0 = vld [vmem:[%s4250_s1 + $0x130] sm:$0xff]   ;;  %v3275_v2 = vld [vmem:[%s4250_s1 + $0x178] sm:$0xff]   ;;  %v3283_v12 = vld [vmem:[%s4250_s1 + $0x240] sm:$0xff]  }
  0x16   :  { %2904 = vmatprep.subr.bf16.mxu1 %v3232_v21  ;;  %v3274_v1 = vld [vmem:[%s4250_s1 + $0x1b0] sm:$0xff]   ;;  %v3276_v3 = vld [vmem:[%s4250_s1 + $0x1f8] sm:$0xff]   ;;  %v3284_v13 = vld [vmem:[%s4250_s1 + $0x2c0] sm:$0xff]  }
  0x17   :  { %v3277_v4 = vld [vmem:[%s4250_s1 + $0x138] sm:$0xff]   ;;  %v23_v6 = vld [vmem:[%s4251_s0 + $0x10] sm:$0xff]  ;;  %v3285_v14 = vld [vmem:[%s4250_s1 + $0x200] sm:$0xff]  }
  0x18   :  { %2883 = vmatpush3.bf16.msra.mxu0 %v3233_v22  ;;  %v3278_v5 = vld [vmem:[%s4250_s1 + $0x1b8] sm:$0xff]   ;;  %v2615_v7 = vcombine.low %v23_v6, %v23_v6  ;;  %v2616_v8 = vcombine.high %v23_v6, %v23_v6  ;;  %v3286_v15 = vld [vmem:[%s4250_s1 + $0x280] sm:$0xff]   ;;  %v3287_v16 = vld [vmem:[%s4250_s1 + $0x248] sm:$0xff]  }
  0x19   :  { %2905 = vmatpush3.bf16.msra.mxu1 %v3234_v23  ;;  %2884 = vmatprep.subr.bf16.mxu0 %v3235_v24  ;;  %v24_v9 = vld [vmem:[%s4251_s0 + $0x18] sm:$0xff]  ;;  %v3288_v17 = vld [vmem:[%s4250_s1 + $0x2c8] sm:$0xff]   ;;  %v3291_v20 = vld [vmem:[%s4250_s1 + $0x250] sm:$0xff]  }
  0x1a   :  { %2906 = vmatprep.subr.bf16.mxu1 %v3236_v25  ;;  %v2617_v10 = vcombine.low %v24_v9, %v24_v9  ;;  %v2618_v11 = vcombine.high %v24_v9, %v24_v9  ;;  %v3289_v18 = vld [vmem:[%s4250_s1 + $0x208] sm:$0xff]   ;;  %v3292_v21 = vld [vmem:[%s4250_s1 + $0x2d0] sm:$0xff]   ;;  %v3295_v24 = vld [vmem:[%s4250_s1 + $0x258] sm:$0xff]  }
  0x1b   :  { %v3290_v19 = vld [vmem:[%s4250_s1 + $0x288] sm:$0xff]   ;;  %v3293_v22 = vld [vmem:[%s4250_s1 + $0x210] sm:$0xff]   ;;  %v3296_v25 = vld [vmem:[%s4250_s1 + $0x2d8] sm:$0xff]  }
  0x1c   :  { %2885 = vmatpush3.bf16.msra.mxu0 %v3237_v26  ;;  %v3294_v23 = vld [vmem:[%s4250_s1 + $0x290] sm:$0xff]   ;;  %v3297_v26 = vld [vmem:[%s4250_s1 + $0x218] sm:$0xff]   ;;  %v3303_v32 = vld [vmem:[%s4250_s1 + $0x268] sm:$0xff]  }
  0x1d   :  { %2907 = vmatpush3.bf16.msra.mxu1 %v3238_v27  ;;  %2886 = vmatprep.subr.bf16.mxu0 %v3239_v28  ;;  %v3298_v27 = vld [vmem:[%s4250_s1 + $0x298] sm:$0xff]   ;;  %v3299_v28 = vld [vmem:[%s4250_s1 + $0x260] sm:$0xff]   ;;  %v3304_v33 = vld [vmem:[%s4250_s1 + $0x2e8] sm:$0xff]  }
  0x1e   :  { %2908 = vmatprep.subr.bf16.mxu1 %v3240_v29  ;;  %v3300_v29 = vld [vmem:[%s4250_s1 + $0x2e0] sm:$0xff]   ;;  %v3306_v35 = vld [vmem:[%s4250_s1 + $0x2a8] sm:$0xff]   ;;  %v3308_v37 = vld [vmem:[%s4250_s1 + $0x2f0] sm:$0xff]  }
  0x1f   :  { %v3339_v6 = vld [vmem:[%s4250_s1 + $0x368] sm:$0xff]  }
  0x20   :  { %2887 = vmatpush3.bf16.msra.mxu0 %v3241_v30  ;;  %v3301_v30 = vld [vmem:[%s4250_s1 + $0x220] sm:$0xff]   ;;  %v3342_v9 = vld [vmem:[%s4250_s1 + $0x3a8] sm:$0xff]  }
  0x21   :  { %2909 = vmatpush3.bf16.msra.mxu1 %v3242_v31  ;;  %2916 = vmatprep.subr.bf16.mxu0 %v3247_v38  ;;  %v3302_v31 = vld [vmem:[%s4250_s1 + $0x2a0] sm:$0xff]   ;;  %v3309_v38 = vld [vmem:[%s4250_s1 + $0x230] sm:$0xff]  }
  0x22   :  { %2938 = vmatprep.subr.bf16.mxu1 %v3248_v39  ;;  %v3310_v39 = vld [vmem:[%s4250_s1 + $0x2b0] sm:$0xff]  }
  0x23   :  { %1965 = vmatmul.mubr.bf16.vlgmr.msra.gmra.mrb[0].mxu0 %v2611_v34  ;;  %v3305_v34 = vld [vmem:[%s4250_s1 + $0x228] sm:$0xff]  }
  0x24   :  { %2005 = vmatmul.mubr.bf16.vlgmr.msra.gmra.mrb[0].mxu1 %v2613_v36  ;;  %2917 = vmatpush3.bf16.msra.mxu0 %v3249_v40  ;;  %v3307_v36 = vld [vmem:[%s4250_s1 + $0x270] sm:$0xff]   ;;  %v3311_v40 = vld [vmem:[%s4250_s1 + $0x278] sm:$0xff]  }
  0x25   :  { %2939 = vmatpush3.bf16.msra.mxu1 %v3250_v41  ;;  %2918 = vmatprep.subr.bf16.mxu0 %v3251_v42  ;;  %v3312_v41 = vld [vmem:[%s4250_s1 + $0x2f8] sm:$0xff]  }
  0x26   :  { %2940 = vmatprep.subr.bf16.mxu1 %v3252_v43  ;;  %2044 = vmatprep.mubr.bf16.mxu0 %v2616_v8  ;;  %v3313_v42 = vld [vmem:[%s4250_s1 + $0x238] sm:$0xff]   ;;  %v3341_v8 = vld [vmem:[%s4250_s1 + $0x328] sm:$0xff]  }
  0x27   :  { %2084 = vmatprep.mubr.bf16.mxu1 %v2618_v11  ;;  %v3314_v43 = vld [vmem:[%s4250_s1 + $0x2b8] sm:$0xff]   ;;  %v3344_v11 = vld [vmem:[%s4250_s1 + $0x3f0] sm:$0xff]  }
  0x28   :  { %2919 = vmatpush3.bf16.msra.mxu0 %v3253_v44  ;;  %v25_v44 = vld [vmem:[%s4251_s0 + $0x20] sm:$0xff] }
  0x29   :  { %2941 = vmatpush3.bf16.msra.mxu1 %v3254_v45  ;;  %2920 = vmatprep.subr.bf16.mxu0 %v3255_v46  ;;  %v26_v45 = vld [vmem:[%s4251_s0 + $0x28] sm:$0xff]  ;;  %v2619_v46 = vcombine.low %v25_v44, %v25_v44 }
  0x2a   :  { %2942 = vmatprep.subr.bf16.mxu1 %v3256_v47  ;;  %v2620_v47 = vcombine.high %v25_v44, %v25_v44  ;;  %v3375_v44 = vld [vmem:[%s4250_s1 + $0x468] sm:$0xff]  }
  0x2c   :  { %2921 = vmatpush3.bf16.msra.mxu0 %v3257_v48  ;;  %v2621_v48 = vcombine.low %v26_v45, %v26_v45 }
  0x2d   :  { %2943 = vmatpush3.bf16.msra.mxu1 %v3258_v49  ;;  %2922 = vmatprep.subr.bf16.mxu0 %v3259_v50  ;;  %v2622_v49 = vcombine.high %v26_v45, %v26_v45  ;;  %v3319_v50 = vld [vmem:[%s4250_s1 + $0x340] sm:$0xff]   ;;  %v3376_v45 = vld [vmem:[%s4250_s1 + $0x4e8] sm:$0xff]  }
  0x2e   :  { %2944 = vmatprep.subr.bf16.mxu1 %v3260_v51  ;;  %v3320_v51 = vld [vmem:[%s4250_s1 + $0x3c0] sm:$0xff]  }
  0x30   :  { %2923 = vmatpush3.bf16.msra.mxu0 %v3261_v52  ;;  %v3321_v52 = vld [vmem:[%s4250_s1 + $0x300] sm:$0xff]  }
  0x31   :  { %2945 = vmatpush3.bf16.msra.mxu1 %v3262_v53  ;;  %2924 = vmatprep.subr.bf16.mxu0 %v3263_v54  ;;  %v3322_v53 = vld [vmem:[%s4250_s1 + $0x380] sm:$0xff]   ;;  %v3323_v54 = vld [vmem:[%s4250_s1 + $0x348] sm:$0xff]  }
  0x32   :  { %2946 = vmatprep.subr.bf16.mxu1 %v3264_v55  ;;  %v3324_v55 = vld [vmem:[%s4250_s1 + $0x3c8] sm:$0xff]  }
  0x34   :  { %2925 = vmatpush3.bf16.msra.mxu0 %v3265_v56  ;;  %v3325_v56 = vld [vmem:[%s4250_s1 + $0x308] sm:$0xff]  }
  0x35   :  { %2947 = vmatpush3.bf16.msra.mxu1 %v3266_v57  ;;  %2926 = vmatprep.subr.bf16.mxu0 %v3267_v58  ;;  %v3326_v57 = vld [vmem:[%s4250_s1 + $0x388] sm:$0xff]   ;;  %v3327_v58 = vld [vmem:[%s4250_s1 + $0x350] sm:$0xff]  }
  0x36   :  { %2948 = vmatprep.subr.bf16.mxu1 %v3268_v59  ;;  %v3328_v59 = vld [vmem:[%s4250_s1 + $0x3d0] sm:$0xff]  }
  0x38   :  { %2927 = vmatpush3.bf16.msra.mxu0 %v3269_v60  ;;  %v3329_v60 = vld [vmem:[%s4250_s1 + $0x310] sm:$0xff]  }
  0x39   :  { %2949 = vmatpush3.bf16.msra.mxu1 %v3270_v61  ;;  %2928 = vmatprep.subr.bf16.mxu0 %v3271_v62  ;;  %v3330_v61 = vld [vmem:[%s4250_s1 + $0x390] sm:$0xff]   ;;  %v3331_v62 = vld [vmem:[%s4250_s1 + $0x358] sm:$0xff]  }
  0x3a   :  { %2950 = vmatprep.subr.bf16.mxu1 %v3272_v63  ;;  %v3332_v63 = vld [vmem:[%s4250_s1 + $0x3d8] sm:$0xff]  }
  0x3c   :  { %2929 = vmatpush3.bf16.msra.mxu0 %v3273_v0  ;;  %v3333_v0 = vld [vmem:[%s4250_s1 + $0x318] sm:$0xff]  }
  0x3d   :  { %2951 = vmatpush3.bf16.msra.mxu1 %v3274_v1  ;;  %2930 = vmatprep.subr.bf16.mxu0 %v3275_v2  ;;  %v3334_v1 = vld [vmem:[%s4250_s1 + $0x398] sm:$0xff]   ;;  %v3335_v2 = vld [vmem:[%s4250_s1 + $0x360] sm:$0xff]  }
  0x3e   :  { %2952 = vmatprep.subr.bf16.mxu1 %v3276_v3  ;;  %v3336_v3 = vld [vmem:[%s4250_s1 + $0x3e0] sm:$0xff]  }
  0x40   :  { %2931 = vmatpush3.bf16.msra.mxu0 %v3277_v4  ;;  %v3337_v4 = vld [vmem:[%s4250_s1 + $0x320] sm:$0xff]  }
  0x41   :  { %2953 = vmatpush3.bf16.msra.mxu1 %v3278_v5  ;;  %2960 = vmatprep.subr.bf16.mxu0 %v3283_v12  ;;  %v3338_v5 = vld [vmem:[%s4250_s1 + $0x3a0] sm:$0xff]   ;;  %v3345_v12 = vld [vmem:[%s4250_s1 + $0x330] sm:$0xff]  }
  0x42   :  { %2982 = vmatprep.subr.bf16.mxu1 %v3284_v13  ;;  %v3346_v13 = vld [vmem:[%s4250_s1 + $0x3b0] sm:$0xff]  }
  0x43   :  { %2045 = vmatmul.mubr.bf16.vlgmr.msra.gmra.mrb[4].mxu0 %v2615_v7  ;;  %v3340_v7 = vld [vmem:[%s4250_s1 + $0x3e8] sm:$0xff]  }
  0x44   :  { %2085 = vmatmul.mubr.bf16.vlgmr.msra.gmra.mrb[4].mxu1 %v2617_v10  ;;  %2961 = vmatpush3.bf16.msra.mxu0 %v3285_v14  ;;  %v3343_v10 = vld [vmem:[%s4250_s1 + $0x370] sm:$0xff]   ;;  %v3347_v14 = vld [vmem:[%s4250_s1 + $0x378] sm:$0xff]  }
  0x45   :  { %2983 = vmatpush3.bf16.msra.mxu1 %v3286_v15  ;;  %2962 = vmatprep.subr.bf16.mxu0 %v3287_v16  ;;  %v3348_v15 = vld [vmem:[%s4250_s1 + $0x3f8] sm:$0xff]  }
  0x46   :  { %2984 = vmatprep.subr.bf16.mxu1 %v3288_v17  ;;  %2124 = vmatprep.mubr.bf16.mxu0 %v2620_v47  ;;  %v3349_v16 = vld [vmem:[%s4250_s1 + $0x338] sm:$0xff]   ;;  %v3378_v47 = vld [vmem:[%s4250_s1 + $0x4a8] sm:$0xff]  }
  0x47   :  { %2164 = vmatprep.mubr.bf16.mxu1 %v2622_v49  ;;  %v3350_v17 = vld [vmem:[%s4250_s1 + $0x3b8] sm:$0xff]   ;;  %v3380_v49 = vld [vmem:[%s4250_s1 + $0x4f0] sm:$0xff]  }
  0x48   :  { %2963 = vmatpush3.bf16.msra.mxu0 %v3289_v18  ;;  %v27_v18 = vld [vmem:[%s4251_s0 + $0x30] sm:$0xff] }
  0x49   :  { %2985 = vmatpush3.bf16.msra.mxu1 %v3290_v19  ;;  %2964 = vmatprep.subr.bf16.mxu0 %v3291_v20  ;;  %v28_v19 = vld [vmem:[%s4251_s0 + $0x38] sm:$0xff]  ;;  %v2623_v20 = vcombine.low %v27_v18, %v27_v18 }
  0x4a   :  { %2986 = vmatprep.subr.bf16.mxu1 %v3292_v21  ;;  %v2624_v21 = vcombine.high %v27_v18, %v27_v18  ;;  %v3411_v18 = vld [vmem:[%s4250_s1 + $0x568] sm:$0xff]  }
  0x4c   :  { %2965 = vmatpush3.bf16.msra.mxu0 %v3293_v22  ;;  %v2625_v22 = vcombine.low %v28_v19, %v28_v19 }
  0x4d   :  { %2987 = vmatpush3.bf16.msra.mxu1 %v3294_v23  ;;  %2966 = vmatprep.subr.bf16.mxu0 %v3295_v24  ;;  %v3355_v23 = vld [vmem:[%s4250_s1 + $0x440] sm:$0xff]   ;;  %v2626_v24 = vcombine.high %v28_v19, %v28_v19  ;;  %v3412_v19 = vld [vmem:[%s4250_s1 + $0x5e8] sm:$0xff]  }
  0x4e   :  { %2988 = vmatprep.subr.bf16.mxu1 %v3296_v25  ;;  %v3356_v25 = vld [vmem:[%s4250_s1 + $0x4c0] sm:$0xff]  }
  0x50   :  { %2967 = vmatpush3.bf16.msra.mxu0 %v3297_v26  ;;  %v3357_v26 = vld [vmem:[%s4250_s1 + $0x400] sm:$0xff]  }
  0x51   :  { %2989 = vmatpush3.bf16.msra.mxu1 %v3298_v27  ;;  %2968 = vmatprep.subr.bf16.mxu0 %v3299_v28  ;;  %v3358_v27 = vld [vmem:[%s4250_s1 + $0x480] sm:$0xff]   ;;  %v3359_v28 = vld [vmem:[%s4250_s1 + $0x448] sm:$0xff]  }
  0x52   :  { %2990 = vmatprep.subr.bf16.mxu1 %v3300_v29  ;;  %v3360_v29 = vld [vmem:[%s4250_s1 + $0x4c8] sm:$0xff]  }
  0x54   :  { %2969 = vmatpush3.bf16.msra.mxu0 %v3301_v30  ;;  %v3361_v30 = vld [vmem:[%s4250_s1 + $0x408] sm:$0xff]  }
  0x55   :  { %2991 = vmatpush3.bf16.msra.mxu1 %v3302_v31  ;;  %2970 = vmatprep.subr.bf16.mxu0 %v3303_v32  ;;  %v3362_v31 = vld [vmem:[%s4250_s1 + $0x488] sm:$0xff]   ;;  %v3363_v32 = vld [vmem:[%s4250_s1 + $0x450] sm:$0xff]  }
  0x56   :  { %2992 = vmatprep.subr.bf16.mxu1 %v3304_v33  ;;  %v3364_v33 = vld [vmem:[%s4250_s1 + $0x4d0] sm:$0xff]  }
  0x58   :  { %2971 = vmatpush3.bf16.msra.mxu0 %v3305_v34  ;;  %v3365_v34 = vld [vmem:[%s4250_s1 + $0x410] sm:$0xff]  }
  0x59   :  { %2993 = vmatpush3.bf16.msra.mxu1 %v3306_v35  ;;  %2972 = vmatprep.subr.bf16.mxu0 %v3307_v36  ;;  %v3366_v35 = vld [vmem:[%s4250_s1 + $0x490] sm:$0xff]   ;;  %v3367_v36 = vld [vmem:[%s4250_s1 + $0x458] sm:$0xff]  }
  0x5a   :  { %2994 = vmatprep.subr.bf16.mxu1 %v3308_v37  ;;  %v3368_v37 = vld [vmem:[%s4250_s1 + $0x4d8] sm:$0xff]  }
  0x5c   :  { %2973 = vmatpush3.bf16.msra.mxu0 %v3309_v38  ;;  %v3369_v38 = vld [vmem:[%s4250_s1 + $0x418] sm:$0xff]  }
  0x5d   :  { %2995 = vmatpush3.bf16.msra.mxu1 %v3310_v39  ;;  %2974 = vmatprep.subr.bf16.mxu0 %v3311_v40  ;;  %v3370_v39 = vld [vmem:[%s4250_s1 + $0x498] sm:$0xff]   ;;  %v3371_v40 = vld [vmem:[%s4250_s1 + $0x460] sm:$0xff]  }
  0x5e   :  { %2996 = vmatprep.subr.bf16.mxu1 %v3312_v41  ;;  %v3372_v41 = vld [vmem:[%s4250_s1 + $0x4e0] sm:$0xff]  }
  0x60   :  { %2975 = vmatpush3.bf16.msra.mxu0 %v3313_v42  ;;  %v3373_v42 = vld [vmem:[%s4250_s1 + $0x420] sm:$0xff]  }
  0x61   :  { %2997 = vmatpush3.bf16.msra.mxu1 %v3314_v43  ;;  %3004 = vmatprep.subr.bf16.mxu0 %v3319_v50  ;;  %v3374_v43 = vld [vmem:[%s4250_s1 + $0x4a0] sm:$0xff]   ;;  %v3381_v50 = vld [vmem:[%s4250_s1 + $0x430] sm:$0xff]  }
  0x62   :  { %3026 = vmatprep.subr.bf16.mxu1 %v3320_v51  ;;  %v3382_v51 = vld [vmem:[%s4250_s1 + $0x4b0] sm:$0xff]  }
  0x63   :  { %2125 = vmatmul.mubr.bf16.vlgmr.msra.gmra.mrb[8].mxu0 %v2619_v46  ;;  %v3377_v46 = vld [vmem:[%s4250_s1 + $0x428] sm:$0xff]  }
  0x64   :  { %2165 = vmatmul.mubr.bf16.vlgmr.msra.gmra.mrb[8].mxu1 %v2621_v48  ;;  %3005 = vmatpush3.bf16.msra.mxu0 %v3321_v52  ;;  %v3379_v48 = vld [vmem:[%s4250_s1 + $0x470] sm:$0xff]   ;;  %v3383_v52 = vld [vmem:[%s4250_s1 + $0x478] sm:$0xff]  }
  0x65   :  { %3027 = vmatpush3.bf16.msra.mxu1 %v3322_v53  ;;  %3006 = vmatprep.subr.bf16.mxu0 %v3323_v54  ;;  %v3384_v53 = vld [vmem:[%s4250_s1 + $0x4f8] sm:$0xff]  }
  0x66   :  { %3028 = vmatprep.subr.bf16.mxu1 %v3324_v55  ;;  %2204 = vmatprep.mubr.bf16.mxu0 %v2624_v21  ;;  %v3385_v54 = vld [vmem:[%s4250_s1 + $0x438] sm:$0xff]   ;;  %v3414_v21 = vld [vmem:[%s4250_s1 + $0x5a8] sm:$0xff]  }
  0x67   :  { %2244 = vmatprep.mubr.bf16.mxu1 %v2626_v24  ;;  %v3386_v55 = vld [vmem:[%s4250_s1 + $0x4b8] sm:$0xff]   ;;  %v3417_v24 = vld [vmem:[%s4250_s1 + $0x530] sm:$0xff]  }
  0x68   :  { %3007 = vmatpush3.bf16.msra.mxu0 %v3325_v56  ;;  %v29_v56 = vld [vmem:[%s4251_s0 + $0x40] sm:$0xff] }
  0x69   :  { %3029 = vmatpush3.bf16.msra.mxu1 %v3326_v57  ;;  %3008 = vmatprep.subr.bf16.mxu0 %v3327_v58  ;;  %v2627_v57 = vcombine.low %v29_v56, %v29_v56  ;;  %v2628_v58 = vcombine.high %v29_v56, %v29_v56  ;;  %v3447_v56 = vld [vmem:[%s4250_s1 + $0x668] sm:$0xff]  }
  0x6a   :  { %3030 = vmatprep.subr.bf16.mxu1 %v3328_v59  ;;  %v30_v59 = vld [vmem:[%s4251_s0 + $0x48] sm:$0xff] }
  0x6c   :  { %3009 = vmatpush3.bf16.msra.mxu0 %v3329_v60  ;;  %v2629_v60 = vcombine.low %v30_v59, %v30_v59 }
  0x6d   :  { %3031 = vmatpush3.bf16.msra.mxu1 %v3330_v61  ;;  %3010 = vmatprep.subr.bf16.mxu0 %v3331_v62  ;;  %v2630_v61 = vcombine.high %v30_v59, %v30_v59  ;;  %v3391_v62 = vld [vmem:[%s4250_s1 + $0x540] sm:$0xff]   ;;  %v3450_v59 = vld [vmem:[%s4250_s1 + $0x6a8] sm:$0xff]  }
  0x6e   :  { %3032 = vmatprep.subr.bf16.mxu1 %v3332_v63  ;;  %v3392_v63 = vld [vmem:[%s4250_s1 + $0x5c0] sm:$0xff]  }
  0x70   :  { %3011 = vmatpush3.bf16.msra.mxu0 %v3333_v0  ;;  %v3393_v0 = vld [vmem:[%s4250_s1 + $0x500] sm:$0xff]  }
  0x71   :  { %3033 = vmatpush3.bf16.msra.mxu1 %v3334_v1  ;;  %3012 = vmatprep.subr.bf16.mxu0 %v3335_v2  ;;  %v3394_v1 = vld [vmem:[%s4250_s1 + $0x580] sm:$0xff]   ;;  %v3395_v2 = vld [vmem:[%s4250_s1 + $0x548] sm:$0xff]  }
  0x72   :  { %3034 = vmatprep.subr.bf16.mxu1 %v3336_v3  ;;  %v3396_v3 = vld [vmem:[%s4250_s1 + $0x5c8] sm:$0xff]  }
  0x74   :  { %3013 = vmatpush3.bf16.msra.mxu0 %v3337_v4  ;;  %v3397_v4 = vld [vmem:[%s4250_s1 + $0x508] sm:$0xff]  }
  0x75   :  { %3035 = vmatpush3.bf16.msra.mxu1 %v3338_v5  ;;  %3014 = vmatprep.subr.bf16.mxu0 %v3339_v6  ;;  %v3398_v5 = vld [vmem:[%s4250_s1 + $0x588] sm:$0xff]   ;;  %v3399_v6 = vld [vmem:[%s4250_s1 + $0x550] sm:$0xff]  }
  0x76   :  { %3036 = vmatprep.subr.bf16.mxu1 %v3340_v7  ;;  %v3400_v7 = vld [vmem:[%s4250_s1 + $0x5d0] sm:$0xff]  }
  0x78   :  { %3015 = vmatpush3.bf16.msra.mxu0 %v3341_v8  ;;  %v3401_v8 = vld [vmem:[%s4250_s1 + $0x510] sm:$0xff]  }
  0x79   :  { %3037 = vmatpush3.bf16.msra.mxu1 %v3342_v9  ;;  %3016 = vmatprep.subr.bf16.mxu0 %v3343_v10  ;;  %v3402_v9 = vld [vmem:[%s4250_s1 + $0x590] sm:$0xff]   ;;  %v3403_v10 = vld [vmem:[%s4250_s1 + $0x558] sm:$0xff]  }
  0x7a   :  { %3038 = vmatprep.subr.bf16.mxu1 %v3344_v11  ;;  %v3404_v11 = vld [vmem:[%s4250_s1 + $0x5d8] sm:$0xff]  }
  0x7c   :  { %3017 = vmatpush3.bf16.msra.mxu0 %v3345_v12  ;;  %v3405_v12 = vld [vmem:[%s4250_s1 + $0x518] sm:$0xff]  }
  0x7d   :  { %3039 = vmatpush3.bf16.msra.mxu1 %v3346_v13  ;;  %3018 = vmatprep.subr.bf16.mxu0 %v3347_v14  ;;  %v3406_v13 = vld [vmem:[%s4250_s1 + $0x598] sm:$0xff]   ;;  %v3407_v14 = vld [vmem:[%s4250_s1 + $0x560] sm:$0xff]  }
  0x7e   :  { %3040 = vmatprep.subr.bf16.mxu1 %v3348_v15  ;;  %v3408_v15 = vld [vmem:[%s4250_s1 + $0x5e0] sm:$0xff]  }
  0x80   :  { %3019 = vmatpush3.bf16.msra.mxu0 %v3349_v16  ;;  %v3409_v16 = vld [vmem:[%s4250_s1 + $0x520] sm:$0xff]  }
  0x81   :  { %3041 = vmatpush3.bf16.msra.mxu1 %v3350_v17  ;;  %3048 = vmatprep.subr.bf16.mxu0 %v3355_v23  ;;  %v3410_v17 = vld [vmem:[%s4250_s1 + $0x5a0] sm:$0xff]   ;;  %v3416_v23 = vld [vmem:[%s4250_s1 + $0x5f0] sm:$0xff]  }
  0x82   :  { %3070 = vmatprep.subr.bf16.mxu1 %v3356_v25  ;;  %v3418_v25 = vld [vmem:[%s4250_s1 + $0x5b0] sm:$0xff]  }
  0x83   :  { %2205 = vmatmul.mubr.bf16.vlgmr.msra.gmra.mrb[12].mxu0 %v2623_v20  ;;  %v3413_v20 = vld [vmem:[%s4250_s1 + $0x528] sm:$0xff]  }
  0x84   :  { %2245 = vmatmul.mubr.bf16.vlgmr.msra.gmra.mrb[12].mxu1 %v2625_v22  ;;  %3049 = vmatpush3.bf16.msra.mxu0 %v3357_v26  ;;  %v3415_v22 = vld [vmem:[%s4250_s1 + $0x570] sm:$0xff]   ;;  %v3419_v26 = vld [vmem:[%s4250_s1 + $0x578] sm:$0xff]  }
  0x85   :  { %3071 = vmatpush3.bf16.msra.mxu1 %v3358_v27  ;;  %3050 = vmatprep.subr.bf16.mxu0 %v3359_v28  ;;  %v3420_v27 = vld [vmem:[%s4250_s1 + $0x5f8] sm:$0xff]  }
  0x86   :  { %3072 = vmatprep.subr.bf16.mxu1 %v3360_v29  ;;  %2284 = vmatprep.mubr.bf16.mxu0 %v2628_v58  ;;  %v3421_v28 = vld [vmem:[%s4250_s1 + $0x538] sm:$0xff]   ;;  %v3449_v58 = vld [vmem:[%s4250_s1 + $0x628] sm:$0xff]  }
  0x87   :  { %2324 = vmatprep.mubr.bf16.mxu1 %v2630_v61  ;;  %v3422_v29 = vld [vmem:[%s4250_s1 + $0x5b8] sm:$0xff]   ;;  %v3452_v61 = vld [vmem:[%s4250_s1 + $0x6f0] sm:$0xff]  }
  0x88   :  { %3051 = vmatpush3.bf16.msra.mxu0 %v3361_v30  ;;  %v31_v30 = vld [vmem:[%s4251_s0 + $0x50] sm:$0xff] }
  0x89   :  { %3073 = vmatpush3.bf16.msra.mxu1 %v3362_v31  ;;  %3052 = vmatprep.subr.bf16.mxu0 %v3363_v32  ;;  %v32_v31 = vld [vmem:[%s4251_s0 + $0x58] sm:$0xff]  ;;  %v2631_v32 = vcombine.low %v31_v30, %v31_v30 }
  0x8a   :  { %3074 = vmatprep.subr.bf16.mxu1 %v3364_v33  ;;  %v2632_v33 = vcombine.high %v31_v30, %v31_v30 }
  0x8c   :  { %3053 = vmatpush3.bf16.msra.mxu0 %v3365_v34  ;;  %v2633_v34 = vcombine.low %v32_v31, %v32_v31 }
  0x8d   :  { %3075 = vmatpush3.bf16.msra.mxu1 %v3366_v35  ;;  %3054 = vmatprep.subr.bf16.mxu0 %v3367_v36  ;;  %v2634_v35 = vcombine.high %v32_v31, %v32_v31  ;;  %v3427_v36 = vld [vmem:[%s4250_s1 + $0x640] sm:$0xff]  }
  0x8e   :  { %3076 = vmatprep.subr.bf16.mxu1 %v3368_v37  ;;  %v3428_v37 = vld [vmem:[%s4250_s1 + $0x6c0] sm:$0xff]  }
  0x90   :  { %3055 = vmatpush3.bf16.msra.mxu0 %v3369_v38  ;;  %v3429_v38 = vld [vmem:[%s4250_s1 + $0x600] sm:$0xff]  }
  0x91   :  { %3077 = vmatpush3.bf16.msra.mxu1 %v3370_v39  ;;  %3056 = vmatprep.subr.bf16.mxu0 %v3371_v40  ;;  %v3430_v39 = vld [vmem:[%s4250_s1 + $0x680] sm:$0xff]   ;;  %v3431_v40 = vld [vmem:[%s4250_s1 + $0x648] sm:$0xff]  }
  0x92   :  { %3078 = vmatprep.subr.bf16.mxu1 %v3372_v41  ;;  %v3432_v41 = vld [vmem:[%s4250_s1 + $0x6c8] sm:$0xff]  }
  0x94   :  { %3057 = vmatpush3.bf16.msra.mxu0 %v3373_v42  ;;  %v3433_v42 = vld [vmem:[%s4250_s1 + $0x608] sm:$0xff]  }
  0x95   :  { %3079 = vmatpush3.bf16.msra.mxu1 %v3374_v43  ;;  %3058 = vmatprep.subr.bf16.mxu0 %v3375_v44  ;;  %v3434_v43 = vld [vmem:[%s4250_s1 + $0x688] sm:$0xff]   ;;  %v3435_v44 = vld [vmem:[%s4250_s1 + $0x650] sm:$0xff]  }
  0x96   :  { %3080 = vmatprep.subr.bf16.mxu1 %v3376_v45  ;;  %v3436_v45 = vld [vmem:[%s4250_s1 + $0x6d0] sm:$0xff]  }
  0x98   :  { %3059 = vmatpush3.bf16.msra.mxu0 %v3377_v46  ;;  %v3437_v46 = vld [vmem:[%s4250_s1 + $0x610] sm:$0xff]  }
  0x99   :  { %3081 = vmatpush3.bf16.msra.mxu1 %v3378_v47  ;;  %3060 = vmatprep.subr.bf16.mxu0 %v3379_v48  ;;  %v3438_v47 = vld [vmem:[%s4250_s1 + $0x690] sm:$0xff]   ;;  %v3439_v48 = vld [vmem:[%s4250_s1 + $0x658] sm:$0xff]  }
  0x9a   :  { %3082 = vmatprep.subr.bf16.mxu1 %v3380_v49  ;;  %v3440_v49 = vld [vmem:[%s4250_s1 + $0x6d8] sm:$0xff]  }
  0x9c   :  { %3061 = vmatpush3.bf16.msra.mxu0 %v3381_v50  ;;  %v3441_v50 = vld [vmem:[%s4250_s1 + $0x618] sm:$0xff]  }
  0x9d   :  { %3083 = vmatpush3.bf16.msra.mxu1 %v3382_v51  ;;  %3062 = vmatprep.subr.bf16.mxu0 %v3383_v52  ;;  %v3442_v51 = vld [vmem:[%s4250_s1 + $0x698] sm:$0xff]   ;;  %v3443_v52 = vld [vmem:[%s4250_s1 + $0x660] sm:$0xff]  }
  0x9e   :  { %3084 = vmatprep.subr.bf16.mxu1 %v3384_v53  ;;  %v3444_v53 = vld [vmem:[%s4250_s1 + $0x6e0] sm:$0xff]  }
  0xa0   :  { %3063 = vmatpush3.bf16.msra.mxu0 %v3385_v54  ;;  %v3445_v54 = vld [vmem:[%s4250_s1 + $0x620] sm:$0xff]  }
  0xa1   :  { %3085 = vmatpush3.bf16.msra.mxu1 %v3386_v55  ;;  %3092 = vmatprep.subr.bf16.mxu0 %v3391_v62  ;;  %v3446_v55 = vld [vmem:[%s4250_s1 + $0x6a0] sm:$0xff]   ;;  %v3453_v62 = vld [vmem:[%s4250_s1 + $0x630] sm:$0xff]  }
  0xa2   :  { %3114 = vmatprep.subr.bf16.mxu1 %v3392_v63  ;;  %v3454_v63 = vld [vmem:[%s4250_s1 + $0x6b0] sm:$0xff]  }
  0xa3   :  { %2285 = vmatmul.mubr.bf16.vlgmr.msra.gmra.mrb[16].mxu0 %v2627_v57  ;;  %v3448_v57 = vld [vmem:[%s4250_s1 + $0x6e8] sm:$0xff]  }
  0xa4   :  { %2325 = vmatmul.mubr.bf16.vlgmr.msra.gmra.mrb[16].mxu1 %v2629_v60  ;;  %3093 = vmatpush3.bf16.msra.mxu0 %v3393_v0  ;;  %v3451_v60 = vld [vmem:[%s4250_s1 + $0x670] sm:$0xff]   ;;  %v3455_v0 = vld [vmem:[%s4250_s1 + $0x678] sm:$0xff]  }
  0xa5   :  { %3115 = vmatpush3.bf16.msra.mxu1 %v3394_v1  ;;  %3094 = vmatprep.subr.bf16.mxu0 %v3395_v2  ;;  %v3456_v1 = vld [vmem:[%s4250_s1 + $0x6f8] sm:$0xff]  }
  0xa6   :  { %3116 = vmatprep.subr.bf16.mxu1 %v3396_v3  ;;  %2364 = vmatprep.mubr.bf16.mxu0 %v2632_v33  ;;  %v3457_v2 = vld [vmem:[%s4250_s1 + $0x638] sm:$0xff]  }
  0xa7   :  { %2404 = vmatprep.mubr.bf16.mxu1 %v2634_v35  ;;  %v3458_v3 = vld [vmem:[%s4250_s1 + $0x6b8] sm:$0xff]   ;;  %v3471_v35 = vmov 0.0  }
  0xa8   :  { %3095 = vmatpush3.bf16.msra.mxu0 %v3397_v4  ;;  %v33_v4 = vld [vmem:[%s4251_s0 + $0x60] sm:$0xff] }
  0xa9   :  { %3117 = vmatpush3.bf16.msra.mxu1 %v3398_v5  ;;  %3096 = vmatprep.subr.bf16.mxu0 %v3399_v6  ;;  %v34_v5 = vld [vmem:[%s4251_s0 + $0x68] sm:$0xff]  ;;  %v2635_v6 = vcombine.low %v33_v4, %v33_v4 }
  0xaa   :  { %3118 = vmatprep.subr.bf16.mxu1 %v3400_v7  ;;  %v2636_v7 = vcombine.high %v33_v4, %v33_v4 }
  0xac   :  { %3097 = vmatpush3.bf16.msra.mxu0 %v3401_v8  ;;  %v2637_v8 = vcombine.low %v34_v5, %v34_v5 }
  0xad   :  { %3119 = vmatpush3.bf16.msra.mxu1 %v3402_v9  ;;  %3098 = vmatprep.subr.bf16.mxu0 %v3403_v10  ;;  %v2638_v9 = vcombine.high %v34_v5, %v34_v5 }
  0xae   :  { %3120 = vmatprep.subr.bf16.mxu1 %v3404_v11 }
  0xb0   :  { %3099 = vmatpush3.bf16.msra.mxu0 %v3405_v12  ;;  %v2610_v12 = vld [vmem:[%s4252_s2] ss:$0 sm:$0xff] }
  0xb1   :  { %3121 = vmatpush3.bf16.msra.mxu1 %v3406_v13  ;;  %3100 = vmatprep.subr.bf16.mxu0 %v3407_v14 }
  0xb2   :  { %3122 = vmatprep.subr.bf16.mxu1 %v3408_v15 }
  0xb4   :  { %3101 = vmatpush3.bf16.msra.mxu0 %v3409_v16 }
  0xb5   :  { %3123 = vmatpush3.bf16.msra.mxu1 %v3410_v17  ;;  %3102 = vmatprep.subr.bf16.mxu0 %v3411_v18 }
  0xb6   :  { %3124 = vmatprep.subr.bf16.mxu1 %v3412_v19 }
  0xb8   :  { %3103 = vmatpush3.bf16.msra.mxu0 %v3413_v20 }
  0xb9   :  { %3125 = vmatpush3.bf16.msra.mxu1 %v3414_v21  ;;  %3104 = vmatprep.subr.bf16.mxu0 %v3415_v22 }
  0xba   :  { %3126 = vmatprep.subr.bf16.mxu1 %v3416_v23 }
  0xbc   :  { %3105 = vmatpush3.bf16.msra.mxu0 %v3417_v24 }
  0xbd   :  { %3127 = vmatpush3.bf16.msra.mxu1 %v3418_v25  ;;  %3106 = vmatprep.subr.bf16.mxu0 %v3419_v26 }
  0xbe   :  { %3128 = vmatprep.subr.bf16.mxu1 %v3420_v27 }
  0xc0   :  { %3107 = vmatpush3.bf16.msra.mxu0 %v3421_v28 }
  0xc1   :  { %3129 = vmatpush3.bf16.msra.mxu1 %v3422_v29  ;;  %3136 = vmatprep.subr.bf16.mxu0 %v3427_v36  ;;  %v3463_v36 = vld [vmem:[%s4253_s3] sm:$0xff]  }
  0xc2   :  { %3158 = vmatprep.subr.bf16.mxu1 %v3428_v37  ;;  %v3464_v37 = vld [vmem:[%s4253_s3 + $0x8] sm:$0xff]  }
  0xc3   :  { %2365 = vmatmul.mubr.bf16.vlgmr.msra.gmra.mrb[20].mxu0 %v2631_v32 }
  0xc4   :  { %2405 = vmatmul.mubr.bf16.vlgmr.msra.gmra.mrb[20].mxu1 %v2633_v34  ;;  %3137 = vmatpush3.bf16.msra.mxu0 %v3429_v38  ;;  %v3465_v38 = vld [vmem:[%s4253_s3 + $0x10] sm:$0xff]  }
  0xc5   :  { %3159 = vmatpush3.bf16.msra.mxu1 %v3430_v39  ;;  %3138 = vmatprep.subr.bf16.mxu0 %v3431_v40  ;;  %v3466_v39 = vld [vmem:[%s4253_s3 + $0x18] sm:$0xff]   ;;  %v3467_v40 = vld [vmem:[%s4253_s3 + $0x20] sm:$0xff]  }
  0xc6   :  { %3160 = vmatprep.subr.bf16.mxu1 %v3432_v41  ;;  %2444 = vmatprep.mubr.bf16.mxu0 %v2636_v7 }
  0xc7   :  { %2484 = vmatprep.mubr.bf16.mxu1 %v2638_v9 }
  0xc8   :  { %3139 = vmatpush3.bf16.msra.mxu0 %v3433_v42 }
  0xc9   :  { %3161 = vmatpush3.bf16.msra.mxu1 %v3434_v43  ;;  %3140 = vmatprep.subr.bf16.mxu0 %v3435_v44 }
  0xca   :  { %3162 = vmatprep.subr.bf16.mxu1 %v3436_v45 }
  0xcc   :  { %3141 = vmatpush3.bf16.msra.mxu0 %v3437_v46 }
  0xcd   :  { %3163 = vmatpush3.bf16.msra.mxu1 %v3438_v47  ;;  %3142 = vmatprep.subr.bf16.mxu0 %v3439_v48 }
  0xce   :  { %3164 = vmatprep.subr.bf16.mxu1 %v3440_v49 }
  0xd0   :  { %3143 = vmatpush3.bf16.msra.mxu0 %v3441_v50  ;;  %v3468_v50 = vld [vmem:[%s4253_s3 + $0x28] sm:$0xff]  }
  0xd1   :  { %3165 = vmatpush3.bf16.msra.mxu1 %v3442_v51  ;;  %3144 = vmatprep.subr.bf16.mxu0 %v3443_v52 }
  0xd2   :  { %3166 = vmatprep.subr.bf16.mxu1 %v3444_v53 }
  0xd4   :  { %3145 = vmatpush3.bf16.msra.mxu0 %v3445_v54  ;;  %v3469_v54 = vld [vmem:[%s4253_s3 + $0x30] sm:$0xff]  }
  0xd5   :  { %3167 = vmatpush3.bf16.msra.mxu1 %v3446_v55  ;;  %3146 = vmatprep.subr.bf16.mxu0 %v3447_v56  ;;  %v3470_v55 = vld [vmem:[%s4253_s3 + $0x38] sm:$0xff]  }
  0xd6   :  { %3168 = vmatprep.subr.bf16.mxu1 %v3448_v57 }
  0xd8   :  { %3147 = vmatpush3.bf16.msra.mxu0 %v3449_v58 }
  0xd9   :  { %3169 = vmatpush3.bf16.msra.mxu1 %v3450_v59  ;;  %3148 = vmatprep.subr.bf16.mxu0 %v3451_v60 }
  0xda   :  { %3170 = vmatprep.subr.bf16.mxu1 %v3452_v61 }
  0xdc   :  { %3149 = vmatpush3.bf16.msra.mxu0 %v3453_v62 }
  0xdd   :  { %3171 = vmatpush3.bf16.msra.mxu1 %v3454_v63  ;;  %3150 = vmatprep.subr.bf16.mxu0 %v3455_v0 }
  0xde   :  { %3172 = vmatprep.subr.bf16.mxu1 %v3456_v1 }
  0xe0   :  { %3151 = vmatpush3.bf16.msra.mxu0 %v3457_v2 }
  0xe1   :  { %3173 = vmatpush3.bf16.msra.mxu1 %v3458_v3  ;;  %3189 = vmatprep.subr.bf16.mxu0 %v3471_v35 }
  0xe3   :  { %2445 = vmatmul.mubr.bf16.vlgmr.msra.gmra.mrb[24].mxu0 %v2635_v6 }
  0xe4   :  { %2485 = vmatmul.mubr.bf16.vlgmr.msra.gmra.mrb[24].mxu1 %v2637_v8  ;;  %3190 = vmatpush3.bf16.msra.mxu0 %v3463_v36 }
  0xe5   :  { %3191 = vmatprep.subr.bf16.mxu0 %v3471_v35  ;;  %3205 = vmatprep.mubr.msk.bf16.mxu0 %vm3472_vm0, %v3471_v35 }
  0xe8   :  { %3192 = vmatpush3.bf16.msra.mxu0 %v3464_v37 }
  0xe9   :  { %3193 = vmatprep.subr.bf16.mxu0 %v3471_v35 }
  0xec   :  { %3194 = vmatpush3.bf16.msra.mxu0 %v3465_v38 }
  0xed   :  { %3195 = vmatprep.subr.bf16.mxu0 %v3471_v35 }
  0xf0   :  { %3196 = vmatpush3.bf16.msra.mxu0 %v3466_v39 }
  0xf1   :  { %3197 = vmatprep.subr.bf16.mxu0 %v3471_v35 }
  0xf4   :  { %3198 = vmatpush3.bf16.msra.mxu0 %v3467_v40 }
  0xf5   :  { %3199 = vmatprep.subr.bf16.mxu0 %v3471_v35 }
  0xf6   :  { %v2888_v10 = vpop.f32.mrb[0].mxu0 }
  0xf7   :  { %v2910_v11 = vpop.f32.mrb[0].mxu1  ;;  %v2889_v13 = vpop.f32.mrb[1].mxu0 }
  0xf8   :  { %v2911_v14 = vpop.f32.mrb[1].mxu1  ;;  %v2890_v15 = vadd.f32 %v2889_v13, %v2888_v10  ;;  %v2891_v17 = vpop.f32.mrb[2].mxu0  ;;  %3200 = vmatpush3.bf16.msra.mxu0 %v3468_v50 }
  0xf9   :  { %v2912_v16 = vadd.f32 %v2911_v14, %v2910_v11  ;;  %v2913_v18 = vpop.f32.mrb[2].mxu1  ;;  %v2892_v19 = vpop.f32.mrb[3].mxu0  ;;  %3201 = vmatprep.subr.bf16.mxu0 %v3471_v35 }
  0xfa   :  { %v2914_v20 = vpop.f32.mrb[3].mxu1  ;;  %v1967_v21 = vadd.f32 %v2890_v15, %v2610_v12 }
  0xfc   :  { %v2007_v22 = vadd.f32 %v2912_v16, %v1967_v21  ;;  %3202 = vmatpush3.bf16.msra.mxu0 %v3469_v54 }
  0xfd   :  { %3203 = vmatprep.subr.bf16.mxu0 %v3471_v35 }
 0x100   :  { %3204 = vmatpush3.bf16.msra.mxu0 %v3470_v55 }
 0x116   :  { %v2932_v23 = vpop.f32.mrb[4].mxu0 }
 0x117   :  { %v2954_v24 = vpop.f32.mrb[4].mxu1  ;;  %v2933_v25 = vpop.f32.mrb[5].mxu0 }
 0x118   :  { %v2955_v26 = vpop.f32.mrb[5].mxu1  ;;  %v2934_v27 = vadd.f32 %v2933_v25, %v2932_v23  ;;  %v2935_v29 = vpop.f32.mrb[6].mxu0 }
 0x119   :  { %v2956_v28 = vadd.f32 %v2955_v26, %v2954_v24  ;;  %v2957_v30 = vpop.f32.mrb[6].mxu1  ;;  %v2936_v31 = vpop.f32.mrb[7].mxu0 }
 0x11a   :  { %v2958_v32 = vpop.f32.mrb[7].mxu1  ;;  %v2047_v33 = vadd.f32 %v2934_v27, %v2007_v22 }
 0x11c   :  { %v2087_v34 = vadd.f32 %v2956_v28, %v2047_v33 }
 0x136   :  { %v2976_v41 = vpop.f32.mrb[8].mxu0 }
 0x137   :  { %v2998_v42 = vpop.f32.mrb[8].mxu1  ;;  %v2977_v43 = vpop.f32.mrb[9].mxu0 }
 0x138   :  { %v2978_v44 = vadd.f32 %v2977_v43, %v2976_v41  ;;  %v2999_v45 = vpop.f32.mrb[9].mxu1  ;;  %v2979_v46 = vpop.f32.mrb[10].mxu0 }
 0x139   :  { %v3000_v47 = vadd.f32 %v2999_v45, %v2998_v42  ;;  %v3001_v48 = vpop.f32.mrb[10].mxu1  ;;  %v2980_v49 = vpop.f32.mrb[11].mxu0  ;;  %v2863_v42 = vld [vmem:[%s4254_s4] ss:$0 sm:$0xff] }
 0x13a   :  { %v2127_v51 = vadd.f32 %v2978_v44, %v2087_v34  ;;  %v3002_v52 = vpop.f32.mrb[11].mxu1 }
 0x13c   :  { %v2167_v53 = vadd.f32 %v3000_v47, %v2127_v51 }
 0x156   :  { %v3020_v56 = vpop.f32.mrb[12].mxu0 }
 0x157   :  { %v3042_v57 = vpop.f32.mrb[12].mxu1  ;;  %v3021_v58 = vpop.f32.mrb[13].mxu0 }
 0x158   :  { %v3022_v59 = vadd.f32 %v3021_v58, %v3020_v56  ;;  %v3043_v60 = vpop.f32.mrb[13].mxu1  ;;  %v3023_v61 = vpop.f32.mrb[14].mxu0 }
 0x159   :  { %v3044_v62 = vadd.f32 %v3043_v60, %v3042_v57  ;;  %v3045_v63 = vpop.f32.mrb[14].mxu1  ;;  %v3024_v0 = vpop.f32.mrb[15].mxu0 }
 0x15a   :  { %v2207_v1 = vadd.f32 %v3022_v59, %v2167_v53  ;;  %v3046_v2 = vpop.f32.mrb[15].mxu1 }
 0x15c   :  { %v2247_v3 = vadd.f32 %v3044_v62, %v2207_v1 }
 0x176   :  { %v3064_v4 = vpop.f32.mrb[16].mxu0 }
 0x177   :  { %v3086_v5 = vpop.f32.mrb[16].mxu1  ;;  %v3065_v6 = vpop.f32.mrb[17].mxu0 }
 0x178   :  { %v3087_v7 = vpop.f32.mrb[17].mxu1  ;;  %v3066_v8 = vadd.f32 %v3065_v6, %v3064_v4  ;;  %v3067_v10 = vpop.f32.mrb[18].mxu0 }
 0x179   :  { %v3088_v9 = vadd.f32 %v3087_v7, %v3086_v5  ;;  %v3089_v11 = vpop.f32.mrb[18].mxu1  ;;  %v3068_v12 = vpop.f32.mrb[19].mxu0 }
 0x17a   :  { %v3090_v13 = vpop.f32.mrb[19].mxu1  ;;  %v2287_v14 = vadd.f32 %v3066_v8, %v2247_v3 }
 0x17c   :  { %v2327_v15 = vadd.f32 %v3088_v9, %v2287_v14 }
 0x196   :  { %v3108_v16 = vpop.f32.mrb[20].mxu0 }
 0x197   :  { %v3130_v17 = vpop.f32.mrb[20].mxu1  ;;  %v3109_v18 = vpop.f32.mrb[21].mxu0 }
 0x198   :  { %v3110_v19 = vadd.f32 %v3109_v18, %v3108_v16  ;;  %v3131_v20 = vpop.f32.mrb[21].mxu1  ;;  %v3111_v21 = vpop.f32.mrb[22].mxu0 }
 0x199   :  { %v3132_v22 = vadd.f32 %v3131_v20, %v3130_v17  ;;  %v3133_v23 = vpop.f32.mrb[22].mxu1  ;;  %v3112_v24 = vpop.f32.mrb[23].mxu0 }
 0x19a   :  { %v2367_v25 = vadd.f32 %v3110_v19, %v2327_v15  ;;  %v3134_v26 = vpop.f32.mrb[23].mxu1 }
 0x19c   :  { %v2407_v27 = vadd.f32 %v3132_v22, %v2367_v25 }
 0x1b6   :  { %v3152_v28 = vpop.f32.mrb[24].mxu0 }
 0x1b7   :  { %v3174_v29 = vpop.f32.mrb[24].mxu1  ;;  %v3153_v30 = vpop.f32.mrb[25].mxu0 }
 0x1b8   :  { %v3154_v31 = vadd.f32 %v3153_v30, %v3152_v28  ;;  %v3175_v32 = vpop.f32.mrb[25].mxu1  ;;  %v3155_v33 = vpop.f32.mrb[26].mxu0 }
 0x1b9   :  { %v3176_v34 = vadd.f32 %v3175_v32, %v3174_v29  ;;  %v3177_v35 = vpop.f32.mrb[26].mxu1  ;;  %v3156_v36 = vpop.f32.mrb[27].mxu0 }
 0x1ba   :  { %v2447_v37 = vadd.f32 %v3154_v31, %v2407_v27  ;;  %v3178_v38 = vpop.f32.mrb[27].mxu1 }
 0x1bc   :  { %v2487_v39 = vadd.f32 %v3176_v34, %v2447_v37 }
 0x1be   :  { %v2492_v40 = vmax.f32 %v2487_v39, 0.0 }
 0x1c0   :  { %v2493_v41 = vpack.c.bf16 %v2492_v40, %v2492_v40 }
 0x1c2   :  { %3206 = vmatmul.mubr.bf16.vlgmr.msra.gmra.mrb[28].mxu0 %v2493_v41 }
 0x295   :  { %v2599_v43 = vpop.f32.mrb[28].mxu0 }
 0x296   :  { %v2600_v44 = vadd.f32 %v2863_v42, %v2599_v43  ;;  %v3207_v45 = vpop.f32.mrb[29].mxu0 }
 0x297   :  { %v2602_v46 = vpop.f32.mrb[30].mxu0 }
 0x298   :  { %2605 = vst [vmem:[%s4255_s5] sm:$0xff] %v2600_v44  ;;  %v3208_v47 = vpop.f32.mrb[31].mxu0 }

// kernel: simple_cnn_forward.2
= control target key start
LH: loop header
LB: loop body
LE: loop exit
PB: predicated region body
PF: predicated region fallthrough
CT: control target
= control target key end

     0   :  { %s5841_s18 = smov 0   ;;  %s7395_s0 = inlined_call_operand.vmem [shape: bf16[2,4,224,9], index: 0, kind: input, shape index: {}]   ;;  %s7396_s1 = inlined_call_operand.vmem [shape: bf16[9,32], index: 1, kind: input, shape index: {}]   ;;  %s7397_s2 = inlined_call_operand.vmem [shape: f32[1,32], index: 2, kind: input, shape index: {}]   ;;  %s7398_s3 = inlined_call_operand.vmem [shape: bf16[9,32,64], index: 3, kind: input, shape index: {}]   ;;  %s7399_s4 = inlined_call_operand.vmem [shape: f32[1,64], index: 4, kind: input, shape index: {}]   ;;  %s7400_s5 = inlined_call_operand.vmem [shape: bf16[2,56,64], index: 5, kind: output, shape index: {}]  }
   0x1 LB: > { %s4145_s19 = sadd.s32 4294967295, %s5807_s18   ;;  %p4149_p0 = scmp.ge.s32.totalorder %s5807_s18, 1  ;;  %s5807_s18 = sphi %s5841_s18, %s15_s18  }
   0x2   : > { %p187_p1 = scmp.lt.s32.totalorder %s5807_s18, 3 }
   0x4   : > { %p188_p2 = pnand %p4149_p0, %p187_p1 }
   0x6   : > { %191 = sbr.rel (%p188_p2) target bundleno = 1032 (0x408), region = 40 }
   0xd   : > { %v5724_v0 = vld [vmem:[%s7396_s1] sm:$0x1f]   ;;  %vm794_vm0 = vcmask 1043456   ;;  %vm795_vm1 = vcmask 1044480   ;;  %p215_p3 = scmp.lt.s32.totalorder %s4145_s19, 1  ;;  %v5809_v1 = vmov 65535  }
   0xe   : > { %v796_v2 = vsel %vm794_vm0, 4294967295, %v5809_v1  ;;  %vm625_vm2 = vcmask 72704   ;;  %vm1619_vm5 = vcmask 261120   ;;  %vm1920_vm8 = vcmask 1046528  }
   0xf   : > { %v797_v3 = vsel %vm795_vm1, %v796_v2, 0  ;;  %s7622_s19 = smov (!%p215_p3, %s4145_s19), 1 }
  0x10   : > { %v799_v4 = vand.u32 %v5724_v0, %v797_v3  ;;  %s5712_s22 = smul.u32 448, %s7622_s19 }
  0x11   : > { %s5713_s24 = smul.u32 28, %s7622_s19 }
  0x12   : > { %4924 = vmatprep.subr.bf16.mxu0 %v799_v4  ;;  %s5858_s25 = scalar_lea.vmem %s7395_s0, %s5712_s22 }
  0x13   : > { %4925 = vmatpush3.bf16.msra.mxu0 %v799_v4  ;;  %v5725_v5 = vld [vmem:[%s5858_s25] sm:$0xff]   ;;  %v5726_v6 = vld [vmem:[%s5858_s25 + $0x8] sm:$0xff]   ;;  %v5727_v7 = vld [vmem:[%s5858_s25 + $0x10] sm:$0xff]   ;;  %s7356_s27 = scalar_lea.vmem %s7400_s5, %s5713_s24 }
  0x14   : > { %4926 = vmatprep.mubr.msk.bf16.mxu0 %vm625_vm2, %v5725_v5  ;;  %v5728_v8 = vld [vmem:[%s5858_s25 + $0x18] sm:$0xff]   ;;  %v5729_v9 = vld [vmem:[%s5858_s25 + $0x20] sm:$0xff]   ;;  %v5730_v10 = vld [vmem:[%s5858_s25 + $0x28] sm:$0xff]  }
  0x15   : > { %v5731_v11 = vld [vmem:[%s5858_s25 + $0x30] sm:$0xff]   ;;  %v5732_v12 = vld [vmem:[%s5858_s25 + $0x38] sm:$0xff]   ;;  %v5733_v13 = vld [vmem:[%s5858_s25 + $0x40] sm:$0xff]  }
  0x16   : > { %4927 = vmatmul.mubr.msk.bf16.vlgmr.msra.gmra.mrb[0].mxu0 %vm625_vm2, %v5726_v6  ;;  %v5734_v14 = vld [vmem:[%s5858_s25 + $0x48] sm:$0xff]   ;;  %v5735_v15 = vld [vmem:[%s5858_s25 + $0x50] sm:$0xff]   ;;  %v5736_v16 = vld [vmem:[%s5858_s25 + $0x58] sm:$0xff]  }
  0x17   : > { %4930 = vmatprep.mubr.msk.bf16.mxu0 %vm625_vm2, %v5727_v7  ;;  %v5737_v17 = vld [vmem:[%s5858_s25 + $0x60] sm:$0xff]   ;;  %v5738_v18 = vld [vmem:[%s5858_s25 + $0x68] sm:$0xff]   ;;  %v5739_v19 = vld [vmem:[%s5858_s25 + $0x70] sm:$0xff]  }
  0x18   : > { %v5740_v20 = vld [vmem:[%s5858_s25 + $0x78] sm:$0xff]   ;;  %v5741_v21 = vld [vmem:[%s5858_s25 + $0x80] sm:$0xff]   ;;  %v5742_v22 = vld [vmem:[%s5858_s25 + $0x88] sm:$0xff]  }
  0x19   : > { %v5743_v23 = vld [vmem:[%s5858_s25 + $0x90] sm:$0xff]   ;;  %v5744_v24 = vld [vmem:[%s5858_s25 + $0x98] sm:$0xff]   ;;  %v5745_v25 = vld [vmem:[%s5858_s25 + $0xa0] sm:$0xff]  }
  0x1a   : > { %v5746_v26 = vld [vmem:[%s5858_s25 + $0xa8] sm:$0xff]   ;;  %v5747_v27 = vld [vmem:[%s5858_s25 + $0xb0] sm:$0xff]   ;;  %v5748_v28 = vld [vmem:[%s5858_s25 + $0xb8] sm:$0xff]  }
  0x1b   : > { %v5749_v29 = vld [vmem:[%s5858_s25 + $0xc0] sm:$0xff]   ;;  %v5750_v30 = vld [vmem:[%s5858_s25 + $0xc8] sm:$0xff]   ;;  %v5751_v31 = vld [vmem:[%s5858_s25 + $0xd0] sm:$0xff]  }
  0x1c   : > { %v5752_v32 = vld [vmem:[%s5858_s25 + $0xd8] sm:$0xff]   ;;  %v5753_v33 = vld [vmem:[%s5858_s25 + $0xe0] sm:$0xff]   ;;  %v5754_v34 = vld [vmem:[%s5858_s25 + $0xe8] sm:$0xff]  }
  0x1d   : > { %v5755_v35 = vld [vmem:[%s5858_s25 + $0xf0] sm:$0xff]   ;;  %v5756_v36 = vld [vmem:[%s5858_s25 + $0xf8] sm:$0xff]   ;;  %v5757_v37 = vld [vmem:[%s5858_s25 + $0x100] sm:$0xff]  }
  0x1e   : > { %4931 = vmatmul.mubr.msk.bf16.gmra.mrb[4].mxu0 %vm625_vm2, %v5728_v8  ;;  %v5758_v38 = vld [vmem:[%s5858_s25 + $0x108] sm:$0xff]   ;;  %v5759_v39 = vld [vmem:[%s5858_s25 + $0x110] sm:$0xff]   ;;  %v5760_v40 = vld [vmem:[%s5858_s25 + $0x118] sm:$0xff]  }
  0x1f   : > { %4934 = vmatprep.mubr.msk.bf16.mxu0 %vm625_vm2, %v5729_v9  ;;  %v5761_v41 = vld [vmem:[%s5858_s25 + $0x120] sm:$0xff]   ;;  %v5762_v42 = vld [vmem:[%s5858_s25 + $0x128] sm:$0xff]   ;;  %v5763_v43 = vld [vmem:[%s5858_s25 + $0x130] sm:$0xff]  }
  0x20   : > { %v5764_v44 = vld [vmem:[%s5858_s25 + $0x138] sm:$0xff]   ;;  %v5765_v45 = vld [vmem:[%s5858_s25 + $0x140] sm:$0xff]   ;;  %v5766_v46 = vld [vmem:[%s5858_s25 + $0x148] sm:$0xff]  }
  0x21   : > { %v5767_v47 = vld [vmem:[%s5858_s25 + $0x150] sm:$0xff]   ;;  %v5768_v48 = vld [vmem:[%s5858_s25 + $0x158] sm:$0xff]   ;;  %v5769_v49 = vld [vmem:[%s5858_s25 + $0x160] sm:$0xff]  }
  0x22   : > { %v5770_v50 = vld [vmem:[%s5858_s25 + $0x168] sm:$0xff]   ;;  %v5771_v51 = vld [vmem:[%s5858_s25 + $0x170] sm:$0xff]   ;;  %v5772_v52 = vld [vmem:[%s5858_s25 + $0x178] sm:$0xff]  }
  0x23   : > { %v5773_v53 = vld [vmem:[%s5858_s25 + $0x180] sm:$0xff]   ;;  %v5774_v54 = vld [vmem:[%s5858_s25 + $0x188] sm:$0xff]   ;;  %v5775_v55 = vld [vmem:[%s5858_s25 + $0x190] sm:$0xff]  }
  0x24   : > { %v5776_v56 = vld [vmem:[%s5858_s25 + $0x198] sm:$0xff]   ;;  %v5777_v57 = vld [vmem:[%s5858_s25 + $0x1a0] sm:$0xff]   ;;  %v5778_v58 = vld [vmem:[%s5858_s25 + $0x1a8] sm:$0xff]  }
  0x25   : > { %v5779_v59 = vld [vmem:[%s5858_s25 + $0x1b0] sm:$0xff]   ;;  %v5780_v62 = vld [vmem:[%s5858_s25 + $0x1b8] sm:$0xff]  }
  0x26   : > { %4935 = vmatmul.mubr.msk.bf16.gmra.mrb[8].mxu0 %vm625_vm2, %v5730_v10 }
  0x27   : > { %4938 = vmatprep.mubr.msk.bf16.mxu0 %vm625_vm2, %v5731_v11 }
  0x2e   : > { %4939 = vmatmul.mubr.msk.bf16.gmra.mrb[12].mxu0 %vm625_vm2, %v5732_v12 }
  0x2f   : > { %4942 = vmatprep.mubr.msk.bf16.mxu0 %vm625_vm2, %v5733_v13 }
  0x36   : > { %4943 = vmatmul.mubr.msk.bf16.gmra.mrb[16].mxu0 %vm625_vm2, %v5734_v14 }
  0x37   : > { %4946 = vmatprep.mubr.msk.bf16.mxu0 %vm625_vm2, %v5735_v15 }
  0x3e   : > { %4947 = vmatmul.mubr.msk.bf16.gmra.mrb[20].mxu0 %vm625_vm2, %v5736_v16 }
  0x3f   : > { %4950 = vmatprep.mubr.msk.bf16.mxu0 %vm625_vm2, %v5737_v17 }
  0x46   : > { %4951 = vmatmul.mubr.msk.bf16.gmra.mrb[24].mxu0 %vm625_vm2, %v5738_v18 }
  0x47   : > { %4954 = vmatprep.mubr.msk.bf16.mxu0 %vm625_vm2, %v5739_v19  ;;  %v6019_v19 = vld [vmem:[%s7398_s3 + $0x10] sm:$0xff]  }
  0x48   : > { %5038 = vmatprep.subr.bf16.mxu0 %v6019_v19 }
  0x49   : > { %5039 = vmatpush3.bf16.msra.mxu0 %v6019_v19 }
  0x4e   : > { %4955 = vmatmul.mubr.msk.bf16.gmra.mrb[28].mxu0 %vm625_vm2, %v5740_v20 }
  0x4f   : > { %4958 = vmatprep.mubr.msk.bf16.mxu0 %vm625_vm2, %v5741_v21 }
  0x56   : > { %4959 = vmatmul.mubr.msk.bf16.gmra.mrb[32].mxu0 %vm625_vm2, %v5742_v22  ;;  %v6030_v22 = vld [vmem:[%s7398_s3 + $0x18] sm:$0xff]  }
  0x57   : > { %4962 = vmatprep.mubr.msk.bf16.mxu0 %vm625_vm2, %v5743_v23  ;;  %7462 = vst [vmem:[#allocation13_spill] sm:$0xff] %v6030_v22  ;;  %v6035_v23 = vld [vmem:[%s7398_s3 + $0x20] sm:$0xff]   ;;  %5040 = vmatprep.subr.bf16.mxu0 %v6030_v22 }
  0x58   : > { %7463 = vst [vmem:[#allocation14_spill] sm:$0xff] %v6035_v23  ;;  %5163 = vmatprep.subr.bf16.mxu1 %v6035_v23  ;;  %5041 = vmatpush3.bf16.msra.mxu0 %v6030_v22 }
  0x59   : > { %5164 = vmatpush3.bf16.msra.mxu1 %v6035_v23 }
  0x5e   : > { %4963 = vmatmul.mubr.msk.bf16.gmra.mrb[36].mxu0 %vm625_vm2, %v5744_v24 }
  0x5f   : > { %4966 = vmatprep.mubr.msk.bf16.mxu0 %vm625_vm2, %v5745_v25 }
  0x66   : > { %4967 = vmatmul.mubr.msk.bf16.gmra.mrb[40].mxu0 %vm625_vm2, %v5746_v26  ;;  %v5784_v26 = vld [vmem:[%s7398_s3 + $0x28] sm:$0xff]  }
  0x67   : > { %4970 = vmatprep.mubr.msk.bf16.mxu0 %vm625_vm2, %v5747_v27  ;;  %5165 = vmatprep.subr.bf16.mxu1 %v5784_v26 }
  0x68   : > { %5166 = vmatpush3.bf16.msra.mxu1 %v5784_v26 }
  0x6e   : > { %4971 = vmatmul.mubr.msk.bf16.gmra.mrb[44].mxu0 %vm625_vm2, %v5748_v28  ;;  %v7401_v28 = vmov 0.0  }
  0x6f   : > { %4974 = vmatprep.mubr.msk.bf16.mxu0 %vm625_vm2, %v5749_v29 }
  0x76   : > { %4975 = vmatmul.mubr.msk.bf16.gmra.mrb[48].mxu0 %vm625_vm2, %v5750_v30 }
  0x77   : > { %4978 = vmatprep.mubr.msk.bf16.mxu0 %vm625_vm2, %v5751_v31 }
  0x7e   : > { %4979 = vmatmul.mubr.msk.bf16.gmra.mrb[52].mxu0 %vm625_vm2, %v5752_v32 }
  0x7f   : > { %4982 = vmatprep.mubr.msk.bf16.mxu0 %vm625_vm2, %v5753_v33 }
  0x86   : > { %4983 = vmatmul.mubr.msk.bf16.gmra.mrb[56].mxu0 %vm625_vm2, %v5754_v34 }
  0x87   : > { %4986 = vmatprep.mubr.msk.bf16.mxu0 %vm625_vm2, %v5755_v35 }
  0x8e   : > { %4987 = vmatmul.mubr.msk.bf16.gmra.mrb[60].mxu0 %vm625_vm2, %v5756_v36 }
  0x8f   : > { %4990 = vmatprep.mubr.msk.bf16.mxu0 %vm625_vm2, %v5757_v37 }
  0x96   : > { %4991 = vmatmul.mubr.msk.bf16.gmra.mrb[64].mxu0 %vm625_vm2, %v5758_v38 }
  0x97   : > { %4994 = vmatprep.mubr.msk.bf16.mxu0 %vm625_vm2, %v5759_v39 }
  0x9e   : > { %4995 = vmatmul.mubr.msk.bf16.gmra.mrb[68].mxu0 %vm625_vm2, %v5760_v40 }
  0x9f   : > { %4998 = vmatprep.mubr.msk.bf16.mxu0 %vm625_vm2, %v5761_v41 }
  0xa6   : > { %4999 = vmatmul.mubr.msk.bf16.gmra.mrb[72].mxu0 %vm625_vm2, %v5762_v42 }
  0xa7   : > { %5002 = vmatprep.mubr.msk.bf16.mxu0 %vm625_vm2, %v5763_v43  ;;  %v6142_v43 = vld [vmem:[%s7398_s3] sm:$0xff]  }
  0xa8   : > { %5063 = vmatprep.subr.bf16.mxu0 %v6142_v43 }
  0xae   : > { %5003 = vmatmul.mubr.msk.bf16.gmra.mrb[76].mxu0 %vm625_vm2, %v5764_v44 }
  0xaf   : > { %5006 = vmatprep.mubr.msk.bf16.mxu0 %vm625_vm2, %v5765_v45 }
  0xb6   : > { %5007 = vmatmul.mubr.msk.bf16.gmra.mrb[80].mxu0 %vm625_vm2, %v5766_v46 }
  0xb7   : > { %5010 = vmatprep.mubr.msk.bf16.mxu0 %vm625_vm2, %v5767_v47 }
  0xbe   : > { %5011 = vmatmul.mubr.msk.bf16.gmra.mrb[84].mxu0 %vm625_vm2, %v5768_v48 }
  0xbf   : > { %5014 = vmatprep.mubr.msk.bf16.mxu0 %vm625_vm2, %v5769_v49 }
  0xc6   : > { %5015 = vmatmul.mubr.msk.bf16.gmra.mrb[88].mxu0 %vm625_vm2, %v5770_v50 }
  0xc7   : > { %5018 = vmatprep.mubr.msk.bf16.mxu0 %vm625_vm2, %v5771_v51 }
  0xce   : > { %5019 = vmatmul.mubr.msk.bf16.gmra.mrb[92].mxu0 %vm625_vm2, %v5772_v52 }
  0xcf   : > { %5022 = vmatprep.mubr.msk.bf16.mxu0 %vm625_vm2, %v5773_v53 }
  0xd6   : > { %5023 = vmatmul.mubr.msk.bf16.gmra.mrb[96].mxu0 %vm625_vm2, %v5774_v54 }
  0xd7   : > { %5026 = vmatprep.mubr.msk.bf16.mxu0 %vm625_vm2, %v5775_v55 }
  0xde   : > { %5027 = vmatmul.mubr.msk.bf16.gmra.mrb[100].mxu0 %vm625_vm2, %v5776_v56 }
  0xdf   : > { %5030 = vmatprep.mubr.msk.bf16.mxu0 %vm625_vm2, %v5777_v57 }
  0xe6   : > { %5031 = vmatmul.mubr.msk.bf16.gmra.mrb[104].mxu0 %vm625_vm2, %v5778_v58 }
  0xe7   : > { %5034 = vmatprep.mubr.msk.bf16.mxu0 %vm625_vm2, %v5779_v59  ;;  %v6114_v59 = vld [vmem:[%s7398_s3 + $0x30] sm:$0xff]  }
  0xe8   : > { %5188 = vmatprep.subr.bf16.mxu1 %v6114_v59 }
  0xe9   : > { %v5970_v60 = vpop.f32.mrb[0].mxu0 }
  0xea   : > { %v5972_v61 = vpop.f32.mrb[1].mxu0 }
  0xeb   : > { %v5975_v63 = vpop.f32.mrb[2].mxu0 }
  0xec   : > { %v5977_v0 = vpop.f32.mrb[3].mxu0 }
  0xee   : > { %5035 = vmatmul.mubr.msk.bf16.gmra.mrb[108].mxu0 %vm625_vm2, %v5780_v62 }
  0xef   : > { %5042 = vmatprep.mubr.f32.mxu0 %v7401_v28 }
  0xf1   : > { %v5980_v1 = vpop.f32.mrb[4].mxu0 }
  0xf2   : > { %v5982_v2 = vpop.f32.mrb[5].mxu0 }
  0xf3   : > { %v5984_v3 = vpop.f32.mrb[6].mxu0 }
  0xf4   : > { %v5986_v4 = vpop.f32.mrb[7].mxu0 }
  0xf9   : > { %v5988_v5 = vpop.f32.mrb[8].mxu0 }
  0xfa   : > { %v5990_v6 = vpop.f32.mrb[9].mxu0 }
  0xfb   : > { %v5992_v7 = vpop.f32.mrb[10].mxu0 }
  0xfc   : > { %v5994_v8 = vpop.f32.mrb[11].mxu0 }
 0x101   : > { %v5996_v9 = vpop.f32.mrb[12].mxu0 }
 0x102   : > { %v5998_v10 = vpop.f32.mrb[13].mxu0 }
 0x103   : > { %7451 = vst [vmem:[#allocation2_spill] sm:$0xff] %v5998_v10  ;;  %v6000_v11 = vpop.f32.mrb[14].mxu0 }
 0x104   : > { %7452 = vst [vmem:[#allocation3_spill] sm:$0xff] %v6000_v11  ;;  %v6002_v12 = vpop.f32.mrb[15].mxu0 }
 0x105   : > { %7453 = vst [vmem:[#allocation4_spill] sm:$0xff] %v6002_v12 }
 0x109   : > { %v6004_v13 = vpop.f32.mrb[16].mxu0 }
 0x10a   : > { %7454 = vst [vmem:[#allocation5_spill] sm:$0xff] %v6004_v13  ;;  %v6006_v14 = vpop.f32.mrb[17].mxu0 }
 0x10b   : > { %7455 = vst [vmem:[#allocation6_spill] sm:$0xff] %v6006_v14  ;;  %v6008_v15 = vpop.f32.mrb[18].mxu0 }
 0x10c   : > { %7456 = vst [vmem:[#allocation7_spill] sm:$0xff] %v6008_v15  ;;  %v6010_v16 = vpop.f32.mrb[19].mxu0 }
 0x10d   : > { %7457 = vst [vmem:[#allocation8_spill] sm:$0xff] %v6010_v16 }
 0x111   : > { %v6012_v17 = vpop.f32.mrb[20].mxu0 }
 0x112   : > { %7458 = vst [vmem:[#allocation9_spill] sm:$0xff] %v6012_v17  ;;  %v6014_v18 = vpop.f32.mrb[21].mxu0 }
 0x113   : > { %7459 = vst [vmem:[#allocation10_spill] sm:$0xff] %v6014_v18  ;;  %v6021_v20 = vpop.f32.mrb[22].mxu0 }
 0x114   : > { %7460 = vst [vmem:[#allocation11_spill] sm:$0xff] %v6021_v20  ;;  %v6023_v21 = vpop.f32.mrb[23].mxu0 }
 0x115   : > { %7461 = vst [vmem:[#allocation12_spill] sm:$0xff] %v6023_v21 }
 0x119   : > { %v6039_v24 = vpop.f32.mrb[24].mxu0 }
 0x11a   : > { %7464 = vst [vmem:[#allocation15_spill] sm:$0xff] %v6039_v24  ;;  %v6043_v25 = vpop.f32.mrb[25].mxu0 }
 0x11b   : > { %7465 = vst [vmem:[#allocation16_spill] sm:$0xff] %v6043_v25  ;;  %v6048_v27 = vpop.f32.mrb[26].mxu0 }
 0x11c   : > { %7466 = vst [vmem:[#allocation17_spill] sm:$0xff] %v6048_v27  ;;  %v6051_v29 = vpop.f32.mrb[27].mxu0 }
 0x11d   : > { %7467 = vst [vmem:[#allocation18_spill] sm:$0xff] %v6051_v29 }
 0x121   : > { %v6053_v30 = vpop.f32.mrb[28].mxu0 }
 0x122   : > { %v6057_v32 = vpop.f32.mrb[29].mxu0 }
 0x123   : > { %v6061_v34 = vpop.f32.mrb[30].mxu0 }
 0x124   : > { %v6065_v36 = vpop.f32.mrb[31].mxu0 }
 0x129   : > { %v6069_v38 = vpop.f32.mrb[32].mxu0 }
 0x12a   : > { %v6073_v40 = vpop.f32.mrb[33].mxu0 }
 0x12b   : > { %v6077_v42 = vpop.f32.mrb[34].mxu0 }
 0x12c   : > { %v6081_v44 = vpop.f32.mrb[35].mxu0 }
 0x131   : > { %v6085_v46 = vpop.f32.mrb[36].mxu0 }
 0x132   : > { %v6089_v48 = vpop.f32.mrb[37].mxu0 }
 0x133   : > { %v6093_v50 = vpop.f32.mrb[38].mxu0 }
 0x134   : > { %v6097_v52 = vpop.f32.mrb[39].mxu0 }
 0x139   : > { %v6101_v54 = vpop.f32.mrb[40].mxu0 }
 0x13a   : > { %v6105_v56 = vpop.f32.mrb[41].mxu0 }
 0x13b   : > { %7468 = vst [vmem:[#allocation19_spill] sm:$0xff] %v6105_v56  ;;  %v6109_v58 = vpop.f32.mrb[42].mxu0 }
 0x13c   : > { %7469 = vst [vmem:[#allocation20_spill] sm:$0xff] %v6109_v58  ;;  %v6118_v26 = vpop.f32.mrb[43].mxu0  ;;  %v7498_v58 = vmax.f32 %v5970_v60, %v6053_v30  ;;  %v7502_v60 = vmax.f32 %v5975_v63, %v6061_v34 }
 0x13d   : > { %7470 = vst [vmem:[#allocation21_spill] sm:$0xff] %v6118_v26 }
 0x141   : > { %v6123_v53 = vpop.f32.mrb[44].mxu0 }
 0x142   : > { %7471 = vst [vmem:[#allocation22_spill] sm:$0xff] %v6123_v53  ;;  %v6127_v51 = vpop.f32.mrb[45].mxu0 }
 0x143   : > { %7472 = vst [vmem:[#allocation23_spill] sm:$0xff] %v6127_v51  ;;  %v6131_v47 = vpop.f32.mrb[46].mxu0 }
 0x144   : > { %7473 = vst [vmem:[#allocation24_spill] sm:$0xff] %v6131_v47  ;;  %v6135_v45 = vpop.f32.mrb[47].mxu0  ;;  %v1429_v47 = vlaneseq }
 0x145   : > { %7474 = vst [vmem:[#allocation25_spill] sm:$0xff] %v6135_v45 }
 0x146   : > { %v6217_v51 = vshrl.u32 %v1429_v47, 7 }
 0x148   : > { %v1458_v47 = vand.u32 15, %v6217_v51 }
 0x149   : > { %v6145_v57 = vpop.f32.mrb[48].mxu0 }
 0x14a   : > { %7475 = vst [vmem:[#allocation26_spill] sm:$0xff] %v6145_v57  ;;  %v6149_v41 = vpop.f32.mrb[49].mxu0  ;;  %vm6248_vm4 = vcmp.eq.s32.totalorder %v1458_v47, 7 }
 0x14b   : > { %7476 = vst [vmem:[#allocation27_spill] sm:$0xff] %v6149_v41  ;;  %v6153_v39 = vpop.f32.mrb[50].mxu0 }
 0x14c   : > { %7477 = vst [vmem:[#allocation28_spill] sm:$0xff] %v6153_v39  ;;  %v6157_v28 = vpop.f32.mrb[51].mxu0 }
 0x14d   : > { %7478 = vst [vmem:[#allocation29_spill] sm:$0xff] %v6157_v28 }
 0x151   : > { %v6161_v35 = vpop.f32.mrb[52].mxu0 }
 0x152   : > { %7479 = vst [vmem:[#allocation30_spill] sm:$0xff] %v6161_v35  ;;  %v6165_v33 = vpop.f32.mrb[53].mxu0 }
 0x153   : > { %7480 = vst [vmem:[#allocation31_spill] sm:$0xff] %v6165_v33  ;;  %v6169_v31 = vpop.f32.mrb[54].mxu0 }
 0x154   : > { %7481 = vst [vmem:[#allocation32_spill] sm:$0xff] %v6169_v31  ;;  %v6173_v23 = vpop.f32.mrb[55].mxu0 }
 0x155   : > { %7482 = vst [vmem:[#allocation33_spill] sm:$0xff] %v6173_v23 }
 0x159   : > { %v4984_v22 = vpop.f32.mrb[56].mxu0 }
 0x15a   : > { %v1059_v28 = vpop.f32.mrb[57].mxu0 }
 0x15b   : > { %v4985_v21 = vpop.f32.mrb[58].mxu0 }
 0x15c   : > { %v1062_v39 = vpop.f32.mrb[59].mxu0 }
 0x161   : > { %v6177_v49 = vpop.f32.mrb[60].mxu0 }
 0x162   : > { %v6179_v35 = vpop.f32.mrb[61].mxu0 }
 0x163   : > { %v6181_v24 = vpop.f32.mrb[62].mxu0 }
 0x164   : > { %v6183_v62 = vpop.f32.mrb[63].mxu0 }
 0x169   : > { %v6185_v33 = vpop.f32.mrb[64].mxu0 }
 0x16a   : > { %v6187_v55 = vpop.f32.mrb[65].mxu0 }
 0x16b   : > { %v6189_v31 = vpop.f32.mrb[66].mxu0 }
 0x16c   : > { %v6191_v27 = vpop.f32.mrb[67].mxu0 }
 0x171   : > { %v6193_v37 = vpop.f32.mrb[68].mxu0 }
 0x172   : > { %v6195_v23 = vpop.f32.mrb[69].mxu0 }
 0x173   : > { %v6197_v29 = vpop.f32.mrb[70].mxu0 }
 0x174   : > { %v6199_v25 = vpop.f32.mrb[71].mxu0 }
 0x175   : > { %7483 = vst [vmem:[#allocation34_spill] sm:$0xff] %v6199_v25 }
 0x179   : > { %v6201_v20 = vpop.f32.mrb[72].mxu0 }
 0x17a   : > { %7484 = vst [vmem:[#allocation35_spill] sm:$0xff] %v6201_v20  ;;  %v6203_v41 = vpop.f32.mrb[73].mxu0 }
 0x17b   : > { %7485 = vst [vmem:[#allocation36_spill] sm:$0xff] %v6203_v41  ;;  %v6205_v18 = vpop.f32.mrb[74].mxu0  ;;  %v1436_v41 = vadd.s32 48, %v6217_v51 }
 0x17c   : > { %7486 = vst [vmem:[#allocation37_spill] sm:$0xff] %v6205_v18  ;;  %v6207_v57 = vpop.f32.mrb[75].mxu0  ;;  %v1432_v18 = vadd.s32 16, %v6217_v51 }
 0x17d   : > { %7487 = vst [vmem:[#allocation38_spill] sm:$0xff] %v6207_v57 }
 0x181   : > { %v6209_v17 = vpop.f32.mrb[76].mxu0 }
 0x182   : > { %7488 = vst [vmem:[#allocation39_spill] sm:$0xff] %v6209_v17  ;;  %v6211_v45 = vpop.f32.mrb[77].mxu0  ;;  %v1431_v17 = vadd.s32 8, %v6217_v51 }
 0x183   : > { %7489 = vst [vmem:[#allocation40_spill] sm:$0xff] %v6211_v45  ;;  %v6213_v16 = vpop.f32.mrb[78].mxu0  ;;  %v1433_v45 = vadd.s32 24, %v6217_v51 }
 0x184   : > { %7490 = vst [vmem:[#allocation41_spill] sm:$0xff] %v6213_v16  ;;  %v6215_v15 = vpop.f32.mrb[79].mxu0  ;;  %v1460_v16 = vand.u32 15, %v1432_v18  ;;  %v1459_v26 = vand.u32 15, %v1431_v17  ;;  %v1434_v17 = vadd.s32 32, %v6217_v51 }
 0x185   : > { %7491 = vst [vmem:[#allocation42_spill] sm:$0xff] %v6215_v15 }
 0x186   : > { %vm6237_vm3 = vcmp.eq.s32.totalorder %v1460_v16, 7  ;;  %vm6256_vm6 = vcmp.eq.s32.totalorder %v1459_v26, 8 }
 0x189   : > { %v6219_v14 = vpop.f32.mrb[80].mxu0 }
 0x18a   : > { %7492 = vst [vmem:[#allocation43_spill] sm:$0xff] %v6219_v14  ;;  %v6221_v53 = vpop.f32.mrb[81].mxu0 }
 0x18b   : > { %7493 = vst [vmem:[#allocation44_spill] sm:$0xff] %v6221_v53  ;;  %v6223_v13 = vpop.f32.mrb[82].mxu0  ;;  %v1461_v53 = vand.u32 15, %v1433_v45  ;;  %v7499_v45 = vmax.f32 %v5972_v61, %v6057_v32  ;;  %v7508_v32 = vmov 0.0  }
 0x18c   : > { %7494 = vst [vmem:[#allocation45_spill] sm:$0xff] %v6223_v13  ;;  %v6226_v57 = vpop.f32.mrb[83].mxu0  ;;  %v6235_v13 = vld [vmem:[%s7397_s2] ss:$0 sm:$0xff] }
 0x18d   : > { %7495 = vst [vmem:[#allocation46_spill] sm:$0xff] %v6226_v57  ;;  %vm6260_vm7 = vcmp.eq.s32.totalorder %v1461_v53, 8 }
 0x191   : > { %v5012_v15 = vpop.f32.mrb[84].mxu0 }
 0x192   : > { %v1312_v20 = vmax.f32 %v4984_v22, %v5012_v15  ;;  %v1171_v14 = vpop.f32.mrb[85].mxu0  ;;  %v1464_v22 = vand.u32 15, %v1436_v41 }
 0x193   : > { %v1310_v12 = vmax.f32 %v1059_v28, %v1171_v14  ;;  %v5013_v18 = vpop.f32.mrb[86].mxu0 }
 0x194   : > { %v1340_v11 = vmax.f32 %v7498_v58, %v1312_v20  ;;  %v1313_v25 = vmax.f32 %v4985_v21, %v5013_v18  ;;  %v1174_v15 = vpop.f32.mrb[87].mxu0  ;;  %vm6272_vm9 = vcmp.eq.s32.totalorder %v1464_v22, 7  ;;  %v6278_v58 = vadd.s32 80, %v6217_v51 }
 0x195   : > { %v1338_v56 = vmax.f32 %v7499_v45, %v1310_v12  ;;  %v1311_v10 = vmax.f32 %v1062_v39, %v1174_v15  ;;  %v7507_v12 = vmax.f32 %v5977_v0, %v6065_v36  ;;  %v1462_v39 = vand.u32 15, %v1434_v17  ;;  %v6294_v15 = vld [vmem:[%s7398_s3 + $0x8] sm:$0xff]  }
 0x196   : > { %v1375_v14 = vadd.f32 %v6235_v13, %v1340_v11  ;;  %v1341_v20 = vmax.f32 %v7502_v60, %v1313_v25  ;;  %v6269_v11 = vrot.slane %v7508_v32, 1  ;;  %v6281_v0 = vadd.s32 64, %v6217_v51 }
 0x197   : > { %v1373_v61 = vadd.f32 %v6235_v13, %v1338_v56  ;;  %v1339_v30 = vmax.f32 %v7507_v12, %v1311_v10  ;;  %v6289_v18 = vadd.s32 112, %v6217_v51  ;;  %v7513_v21 = vmax.f32 %v5984_v3, %v6077_v42 }
 0x198   : > { %v1403_v63 = vmax.f32 %v1375_v14, 0.0  ;;  %v1376_v25 = vadd.f32 %v6235_v13, %v1341_v20  ;;  %v7514_v3 = vmax.f32 %v5986_v4, %v6081_v44  ;;  %vm6351_vm10 = vcmp.eq.s32.totalorder %v1462_v39, 7 }
 0x199   : > { %v1401_v41 = vmax.f32 %v1373_v61, 0.0  ;;  %v1374_v53 = vadd.f32 %v6235_v13, %v1339_v30  ;;  %v5016_v56 = vpop.f32.mrb[88].mxu0  ;;  %v1445_v44 = vadd.s32 120, %v6217_v51 }
 0x19a   : > { %v6285_v10 = vsel %vm6237_vm3, 0.0, %v1403_v63  ;;  %v1404_v36 = vmax.f32 %v1376_v25, 0.0  ;;  %v1316_v26 = vmax.f32 %v6177_v49, %v5016_v56  ;;  %v1187_v47 = vpop.f32.mrb[89].mxu0  ;;  %v7511_v49 = vmax.f32 %v5980_v1, %v6069_v38 }
 0x19b   : > { %v6298_v22 = vsel %vm6248_vm4, 0.0, %v1401_v41  ;;  %v1402_v17 = vmax.f32 %v1374_v53, 0.0  ;;  %v1314_v57 = vmax.f32 %v6179_v35, %v1187_v47  ;;  %v5017_v45 = vpop.f32.mrb[90].mxu0  ;;  %v2321_v14 = vrot.slane %v6285_v10, 1 }
 0x19c   : > { %v1344_v60 = vmax.f32 %v7511_v49, %v1316_v26  ;;  %v1317_v20 = vmax.f32 %v6181_v24, %v5017_v45  ;;  %v1190_v61 = vpop.f32.mrb[91].mxu0  ;;  %5043 = vmatmul.mubr.msk.f32.vlgmr.msra.gmra.mrb[112].mxu0 %vm1619_vm5, %v6298_v22  ;;  %v2319_v16 = vrot.slane %v6298_v22, 1  ;;  %v6311_v12 = vsel %vm6260_vm7, 0.0, %v1404_v36 }
 0x19d   : > { %v6315_v35 = vsel %vm6256_vm6, 0.0, %v1402_v17  ;;  %v7512_v1 = vmax.f32 %v5982_v2, %v6073_v40  ;;  %v1315_v24 = vmax.f32 %v6183_v62, %v1190_v61  ;;  %5045 = vmatprep.mubr.msk.f32.mxu0 %vm1619_vm5, %v6285_v10  ;;  %5064 = vmatpush3.bf16.msra.mxu0 %v6142_v43  ;;  %v7436_v30 = vrot.slane %v6311_v12, 1  ;;  %v6339_v62 = vld [vmem:[%s7398_s3 + $0x38] sm:$0xff]  }
 0x19e   : > { %v1379_v28 = vadd.f32 %v6235_v13, %v1344_v60  ;;  %v6329_v63 = vmax.f32 %v7513_v21, %v1317_v20  ;;  %v2320_v2 = vsel %vm1920_vm8, %v6269_v11, %v2319_v16  ;;  %v6334_v40 = vsel %vm1920_vm8, %v2319_v16, %v2321_v14  ;;  %5065 = vmatprep.subr.bf16.mxu0 %v6294_v15 }
 0x19f   : > { %v1342_v38 = vmax.f32 %v7512_v1, %v1314_v57  ;;  %v6346_v42 = vmax.f32 %v7514_v3, %v1315_v24  ;;  %5167 = vmatprep.mubr.msk.f32.mxu1 %vm1619_vm5, %v2320_v2  ;;  %v1442_v41 = vadd.s32 96, %v6217_v51  ;;  %v1922_v53 = vrot.slane %v6315_v35, 1 }
 0x1a0   : > { %v1407_v56 = vmax.f32 %v1379_v28, 0.0  ;;  %5168 = vmatmul.mubr.msk.f32.vlgmr.msra.gmra.mrb[0].mxu1 %vm1619_vm5, %v6334_v40  ;;  %v1468_v26 = vand.u32 15, %v6278_v58  ;;  %v1466_v49 = vand.u32 15, %v6281_v0  ;;  %v1472_v60 = vand.u32 15, %v6289_v18 }
 0x1a1   : > { %v1377_v25 = vadd.f32 %v6235_v13, %v1342_v38  ;;  %v5020_v4 = vpop.f32.mrb[92].mxu0  ;;  %5189 = vmatpush3.bf16.msra.mxu1 %v6114_v59  ;;  %5066 = vmatpush3.bf16.msra.mxu0 %v6294_v15  ;;  %v6363_v17 = vsel %vm1920_vm8, %v6269_v11, %v1922_v53  ;;  %v6368_v39 = vsel %vm1920_vm8, %v1922_v53, %v7436_v30  ;;  %v1470_v1 = vand.u32 15, %v1442_v41  ;;  %v7576_v30 = vld [vmem:[#allocation41_spill] sm:$0xff] }
 0x1a2   : > { %v6372_v58 = vsel %vm6272_vm9, 0.0, %v1407_v56  ;;  %v1320_v57 = vmax.f32 %v6185_v33, %v5020_v4  ;;  %v1203_v45 = vpop.f32.mrb[93].mxu0  ;;  %5190 = vmatprep.subr.bf16.mxu1 %v6339_v62  ;;  %5088 = vmatprep.subr.bf16.mxu0 %v6019_v19  ;;  %v7517_v33 = vmax.f32 %v5988_v5, %v6085_v46  ;;  %v1443_v28 = vadd.s32 104, %v6217_v51 }
 0x1a3   : > { %v1405_v47 = vmax.f32 %v1377_v25, 0.0  ;;  %v1318_v61 = vmax.f32 %v6187_v55, %v1203_v45  ;;  %v5021_v34 = vpop.f32.mrb[94].mxu0  ;;  %v2325_v16 = vrot.slane %v6372_v58, 1  ;;  %v7518_v55 = vmax.f32 %v5990_v6, %v6089_v48 }
 0x1a4   : > { %v1348_v0 = vmax.f32 %v7517_v33, %v1320_v57  ;;  %v1321_v18 = vmax.f32 %v6189_v31, %v5021_v34  ;;  %v1206_v38 = vpop.f32.mrb[95].mxu0  ;;  %v1448_v5 = vadd.s32 144, %v6217_v51  ;;  %v1473_v31 = vand.u32 15, %v1445_v44 }
 0x1a5   : > { %v6381_v20 = vsel %vm6351_vm10, 0.0, %v1405_v47  ;;  %v1346_v21 = vmax.f32 %v7518_v55, %v1318_v61  ;;  %v1319_v2 = vmax.f32 %v6191_v27, %v1206_v38  ;;  %5191 = vmatpush3.bf16.msra.mxu1 %v6339_v62  ;;  %v7519_v25 = vmax.f32 %v5992_v7, %v6093_v50  ;;  %v7529_v55 = vld [vmem:[#allocation2_spill] sm:$0xff] }
 0x1a6   : > { %5046 = vmatmul.mubr.msk.f32.gmra.mrb[114].mxu0 %vm1619_vm5, %v6381_v20  ;;  %v2323_v24 = vrot.slane %v6381_v20, 1  ;;  %v1383_v46 = vadd.f32 %v6235_v13, %v1348_v0  ;;  %5213 = vmatprep.subr.bf16.mxu1 %v6114_v59  ;;  %vm1496_vm11 = vcmp.eq.s32.totalorder %v1468_v26, 7  ;;  %v7521_v41 = vmax.f32 %v5994_v8, %v6097_v52 }
 0x1a7   : > { %5048 = vmatprep.mubr.msk.f32.mxu0 %vm1619_vm5, %v6372_v58  ;;  %v6405_v3 = vmax.f32 %v7519_v25, %v1321_v18  ;;  %v1381_v48 = vadd.f32 %v6235_v13, %v1346_v21  ;;  %v1446_v7 = vadd.s32 128, %v6217_v51  ;;  %vm1494_vm12 = vcmp.eq.s32.totalorder %v1466_v49, 7  ;;  %v7534_v25 = vld [vmem:[#allocation20_spill] sm:$0xff]  ;;  %v7559_v49 = vld [vmem:[#allocation7_spill] sm:$0xff] }
 0x1a8   : > { %v6408_v6 = vsel %vm1920_vm8, %v2321_v14, %v2323_v24  ;;  %v6411_v27 = vsel %vm1920_vm8, %v2323_v24, %v2325_v16  ;;  %v6418_v53 = vmax.f32 %v7521_v41, %v1319_v2  ;;  %v1411_v50 = vmax.f32 %v1383_v46, 0.0  ;;  %v7533_v46 = vld [vmem:[#allocation3_spill] sm:$0xff]  ;;  %v7551_v14 = vld [vmem:[#allocation5_spill] sm:$0xff] }
 0x1a9   : > { %7520 = vst [vmem:[#allocation47_spill] sm:$0xff] %v6411_v27  ;;  %5170 = vmatprep.mubr.msk.f32.mxu1 %vm1619_vm5, %v6408_v6  ;;  %vm6425_vm13 = vcmp.eq.s32.totalorder %v1472_v60, 7  ;;  %v6430_v56 = vadd.s32 40, %v6217_v51  ;;  %v1409_v8 = vmax.f32 %v1381_v48, 0.0  ;;  %v5024_v52 = vpop.f32.mrb[96].mxu0  ;;  %vm6432_vm14 = vcmp.eq.s32.totalorder %v1470_v1, 7 }
 0x1aa   : > { %5171 = vmatmul.mubr.msk.f32.gmra.mrb[2].mxu1 %vm1619_vm5, %v6411_v27  ;;  %v1471_v26 = vand.u32 15, %v1443_v28  ;;  %v1449_v47 = vadd.s32 152, %v6217_v51  ;;  %v6437_v4 = vsel %vm1496_vm11, 0.0, %v1411_v50  ;;  %v1324_v44 = vmax.f32 %v6193_v37, %v5024_v52  ;;  %v1219_v57 = vpop.f32.mrb[97].mxu0  ;;  %v7538_v52 = vld [vmem:[#allocation4_spill] sm:$0xff] }
 0x1ab   : > { %v1476_v45 = vand.u32 15, %v1448_v5  ;;  %vm6440_vm15 = vcmp.eq.s32.totalorder %v1473_v31, 8  ;;  %v6444_v60 = vsel %vm1494_vm12, 0.0, %v1409_v8  ;;  %v1322_v61 = vmax.f32 %v6195_v23, %v1219_v57  ;;  %v5025_v34 = vpop.f32.mrb[98].mxu0  ;;  %v7530_v23 = vld [vmem:[#allocation19_spill] sm:$0xff]  ;;  %v7532_v5 = vld [vmem:[#allocation34_spill] sm:$0xff] }
 0x1ac   : > { %v2329_v1 = vrot.slane %v6437_v4, 1  ;;  %v1474_v33 = vand.u32 15, %v1446_v7  ;;  %v7528_v0 = vmax.f32 %v5996_v9, %v6101_v54  ;;  %v1325_v37 = vmax.f32 %v6197_v29, %v5025_v34  ;;  %v1222_v38 = vpop.f32.mrb[99].mxu0  ;;  %5049 = vmatmul.mubr.msk.f32.gmra.mrb[116].mxu0 %vm1619_vm5, %v6444_v60  ;;  %v7565_v34 = vld [vmem:[#allocation25_spill] sm:$0xff] }
 0x1ad   : > { %v2327_v24 = vrot.slane %v6444_v60, 1  ;;  %v1447_v28 = vadd.s32 136, %v6217_v51  ;;  %v7531_v21 = vmax.f32 %v7529_v55, %v7530_v23  ;;  %v1323_v31 = vmax.f32 %v7532_v5, %v1222_v38  ;;  %5051 = vmatprep.mubr.msk.f32.mxu0 %vm1619_vm5, %v6437_v4  ;;  %v7581_v23 = vld [vmem:[#allocation11_spill] sm:$0xff] }
 0x1ae   : > { %v1352_v18 = vmax.f32 %v7528_v0, %v1324_v44  ;;  %v1452_v9 = vadd.s32 176, %v6217_v51  ;;  %v1477_v29 = vand.u32 15, %v1449_v47  ;;  %v7535_v48 = vmax.f32 %v7533_v46, %v7534_v25  ;;  %v7539_v44 = vld [vmem:[#allocation21_spill] sm:$0xff] }
 0x1af   : > { %v1350_v2 = vmax.f32 %v7531_v21, %v1322_v61  ;;  %v6468_v7 = vsel %vm1920_vm8, %v2325_v16, %v2327_v24  ;;  %v6471_v50 = vsel %vm1920_vm8, %v2327_v24, %v2329_v1  ;;  %v7540_v57 = vmax.f32 %v7538_v52, %v7539_v44  ;;  %v7554_v44 = vld [vmem:[#allocation37_spill] sm:$0xff] }
 0x1b0   : > { %v1387_v54 = vadd.f32 %v6235_v13, %v1352_v18  ;;  %v1353_v41 = vmax.f32 %v7535_v48, %v1325_v37  ;;  %7536 = vst [vmem:[#allocation2_spill] sm:$0xff] %v6468_v7  ;;  %7537 = vst [vmem:[#allocation19_spill] sm:$0xff] %v6471_v50  ;;  %5173 = vmatprep.mubr.msk.f32.mxu1 %vm1619_vm5, %v6468_v7  ;;  %vm6479_vm0 = vcmp.eq.s32.totalorder %v1476_v45, 7  ;;  %vm6483_vm1 = vcmp.eq.s32.totalorder %v1471_v26, 8  ;;  %v7573_v47 = vld [vmem:[#allocation9_spill] sm:$0xff] }
 0x1b1   : > { %v1385_v8 = vadd.f32 %v6235_v13, %v1350_v2  ;;  %v1351_v61 = vmax.f32 %v7540_v57, %v1323_v31  ;;  %5174 = vmatmul.mubr.msk.f32.gmra.mrb[4].mxu1 %vm1619_vm5, %v6471_v50  ;;  %vm6490_vm2 = vcmp.eq.s32.totalorder %v1474_v33, 7  ;;  %v1475_v37 = vand.u32 15, %v1447_v28  ;;  %v5028_v24 = vpop.f32.mrb[100].mxu0  ;;  %v7549_v2 = vld [vmem:[#allocation35_spill] sm:$0xff]  ;;  %v7600_v7 = vld [vmem:[#allocation45_spill] sm:$0xff] }
 0x1b2   : > { %v1415_v16 = vmax.f32 %v1387_v54, 0.0  ;;  %v1388_v0 = vadd.f32 %v6235_v13, %v1353_v41  ;;  %v1480_v55 = vand.u32 15, %v1452_v9  ;;  %v6496_v26 = vadd.s32 160, %v6217_v51  ;;  %v1235_v28 = vpop.f32.mrb[101].mxu0  ;;  %v7552_v41 = vld [vmem:[#allocation22_spill] sm:$0xff] }
 0x1b3   : > { %v1413_v38 = vmax.f32 %v1385_v8, 0.0  ;;  %v1386_v45 = vadd.f32 %v6235_v13, %v1351_v61  ;;  %vm6498_vm3 = vcmp.eq.s32.totalorder %v1477_v29, 8  ;;  %v1328_v5 = vmax.f32 %v7549_v2, %v5028_v24  ;;  %v7550_v29 = vld [vmem:[#allocation36_spill] sm:$0xff]  ;;  %v5029_v25 = vpop.f32.mrb[102].mxu0  ;;  %v7558_v2 = vld [vmem:[#allocation38_spill] sm:$0xff] }
 0x1b4   : > { %v6504_v21 = vsel %vm6425_vm13, 0.0, %v1415_v16  ;;  %v1416_v33 = vmax.f32 %v1388_v0, 0.0  ;;  %v6508_v31 = vadd.s32 184, %v6217_v51  ;;  %v1326_v46 = vmax.f32 %v7550_v29, %v1235_v28  ;;  %v1238_v61 = vpop.f32.mrb[103].mxu0  ;;  %v7555_v0 = vld [vmem:[#allocation6_spill] sm:$0xff] }
 0x1b5   : > { %v6512_v9 = vsel %vm6432_vm14, 0.0, %v1413_v38  ;;  %v1414_v54 = vmax.f32 %v1386_v45, 0.0  ;;  %v2333_v48 = vrot.slane %v6504_v21, 1  ;;  %v7553_v8 = vmax.f32 %v7551_v14, %v7552_v41  ;;  %v7556_v38 = vld [vmem:[#allocation23_spill] sm:$0xff] }
 0x1b6   : > { %v1329_v57 = vmax.f32 %v7554_v44, %v5029_v25  ;;  %5052 = vmatmul.mubr.msk.f32.gmra.mrb[118].mxu0 %vm1619_vm5, %v6512_v9  ;;  %v2331_v36 = vrot.slane %v6512_v9, 1  ;;  %v6525_v16 = vsel %vm6440_vm15, 0.0, %v1416_v33  ;;  %v7557_v45 = vmax.f32 %v7555_v0, %v7556_v38  ;;  %v7560_v33 = vld [vmem:[#allocation24_spill] sm:$0xff] }
 0x1b7   : > { %v1356_v52 = vmax.f32 %v7553_v8, %v1328_v5  ;;  %v1327_v28 = vmax.f32 %v7558_v2, %v1238_v61  ;;  %5054 = vmatprep.mubr.msk.f32.mxu0 %vm1619_vm5, %v6504_v21  ;;  %v6535_v5 = vsel %vm6483_vm1, 0.0, %v1414_v54  ;;  %v1451_v29 = vadd.s32 168, %v6217_v51  ;;  %v7564_v61 = vld [vmem:[#allocation8_spill] sm:$0xff] }
 0x1b8   : > { %v1354_v24 = vmax.f32 %v7557_v45, %v1326_v46  ;;  %v7561_v14 = vmax.f32 %v7559_v49, %v7560_v33  ;;  %v6543_v8 = vsel %vm1920_vm8, %v2329_v1, %v2331_v36  ;;  %v6546_v46 = vsel %vm1920_vm8, %v2331_v36, %v2333_v48  ;;  %v7571_v33 = vld [vmem:[#allocation39_spill] sm:$0xff] }
 0x1b9   : > { %v1391_v25 = vadd.f32 %v6235_v13, %v1356_v52  ;;  %7562 = vst [vmem:[#allocation34_spill] sm:$0xff] %v6543_v8  ;;  %7563 = vst [vmem:[#allocation3_spill] sm:$0xff] %v6546_v46  ;;  %v7566_v54 = vmax.f32 %v7564_v61, %v7565_v34  ;;  %5176 = vmatprep.mubr.msk.f32.mxu1 %vm1619_vm5, %v6543_v8  ;;  %v1478_v52 = vand.u32 15, %v6496_v26  ;;  %vm6555_vm4 = vcmp.eq.s32.totalorder %v1475_v37, 8  ;;  %v5032_v26 = vpop.f32.mrb[104].mxu0  ;;  %v7572_v61 = vld [vmem:[#allocation40_spill] sm:$0xff] }
 0x1ba   : > { %v1357_v41 = vmax.f32 %v7561_v14, %v1329_v57  ;;  %v1389_v44 = vadd.f32 %v6235_v13, %v1354_v24  ;;  %5177 = vmatmul.mubr.msk.f32.gmra.mrb[6].mxu1 %vm1619_vm5, %v6546_v46  ;;  %vm6562_vm6 = vcmp.eq.s32.totalorder %v1480_v55, 7  ;;  %v1481_v45 = vand.u32 15, %v6508_v31  ;;  %v1251_v14 = vpop.f32.mrb[105].mxu0  ;;  %v7580_v8 = vld [vmem:[#allocation42_spill] sm:$0xff] }
 0x1bb   : > { %v1355_v0 = vmax.f32 %v7566_v54, %v1327_v28  ;;  %v1419_v1 = vmax.f32 %v1391_v25, 0.0  ;;  %v6569_v37 = vadd.s32 208, %v6217_v51  ;;  %v1479_v28 = vand.u32 15, %v1451_v29  ;;  %v5033_v54 = vpop.f32.mrb[106].mxu0 }
 0x1bc   : > { %v1392_v57 = vadd.f32 %v6235_v13, %v1357_v41  ;;  %v1417_v24 = vmax.f32 %v1389_v44, 0.0  ;;  %v1332_v55 = vmax.f32 %v7571_v33, %v5032_v26  ;;  %v6577_v41 = vadd.s32 192, %v6217_v51  ;;  %v1254_v33 = vpop.f32.mrb[107].mxu0 }
 0x1bd   : > { %v1390_v2 = vadd.f32 %v6235_v13, %v1355_v0  ;;  %v6573_v25 = vsel %vm6479_vm0, 0.0, %v1419_v1  ;;  %v1330_v34 = vmax.f32 %v7572_v61, %v1251_v14  ;;  %v7574_v0 = vld [vmem:[#allocation26_spill] sm:$0xff]  ;;  %v1333_v26 = vmax.f32 %v7576_v30, %v5033_v54  ;;  %v7578_v14 = vld [vmem:[#allocation27_spill] sm:$0xff] }
 0x1be   : > { %v1420_v49 = vmax.f32 %v1392_v57, 0.0  ;;  %v6581_v31 = vsel %vm6490_vm2, 0.0, %v1417_v24  ;;  %v2337_v29 = vrot.slane %v6573_v25, 1  ;;  %v7575_v1 = vmax.f32 %v7573_v47, %v7574_v0 }
 0x1bf   : > { %v1418_v44 = vmax.f32 %v1390_v2, 0.0  ;;  %5055 = vmatmul.mubr.msk.f32.gmra.mrb[120].mxu0 %vm1619_vm5, %v6581_v31  ;;  %v2335_v18 = vrot.slane %v6581_v31, 1  ;;  %v7577_v2 = vld [vmem:[#allocation10_spill] sm:$0xff]  ;;  %v1331_v50 = vmax.f32 %v7580_v8, %v1254_v33  ;;  %vm6618_vm7 = vcmp.eq.s32.totalorder %v1478_v52, 7  ;;  %v7589_v33 = vld [vmem:[#allocation29_spill] sm:$0xff] }
 0x1c0   : > { %v1360_v57 = vmax.f32 %v7575_v1, %v1332_v55  ;;  %v6594_v24 = vsel %vm6498_vm3, 0.0, %v1420_v49  ;;  %v7579_v61 = vmax.f32 %v7577_v2, %v7578_v14  ;;  %5057 = vmatprep.mubr.msk.f32.mxu0 %vm1619_vm5, %v6573_v25  ;;  %v1457_v55 = vadd.s32 216, %v6217_v51  ;;  %v7582_v49 = vld [vmem:[#allocation28_spill] sm:$0xff]  ;;  %v7609_v52 = vld [vmem:[#allocation33_spill] sm:$0xff] }
 0x1c1   : > { %v6604_v30 = vsel %vm6555_vm4, 0.0, %v1418_v44  ;;  %v7583_v47 = vmax.f32 %v7581_v23, %v7582_v49  ;;  %v6612_v1 = vsel %vm1920_vm8, %v2333_v48, %v2335_v18  ;;  %v6615_v8 = vsel %vm1920_vm8, %v2335_v18, %v2337_v29  ;;  %v7588_v44 = vld [vmem:[#allocation12_spill] sm:$0xff] }
 0x1c2   : > { %v1358_v46 = vmax.f32 %v7579_v61, %v1330_v34  ;;  %v1395_v54 = vadd.f32 %v6235_v13, %v1360_v57  ;;  %7584 = vst [vmem:[#allocation20_spill] sm:$0xff] %v6612_v1  ;;  %7585 = vst [vmem:[#allocation4_spill] sm:$0xff] %v6615_v8  ;;  %v7590_v2 = vmax.f32 %v7588_v44, %v7589_v33  ;;  %5179 = vmatprep.mubr.msk.f32.mxu1 %vm1619_vm5, %v6612_v1  ;;  %v5036_v61 = vpop.f32.mrb[108].mxu0  ;;  %v7596_v33 = vld [vmem:[#allocation44_spill] sm:$0xff]  ;;  %v7598_v1 = vld [vmem:[#allocation30_spill] sm:$0xff] }
 0x1c3   : > { %v1361_v0 = vmax.f32 %v7583_v47, %v1333_v26  ;;  %vm6627_vm9 = vcmp.eq.s32.totalorder %v1481_v45, 8  ;;  %5180 = vmatmul.mubr.msk.f32.gmra.mrb[8].mxu1 %vm1619_vm5, %v6615_v8  ;;  %vm6635_vm10 = vcmp.eq.s32.totalorder %v1479_v28, 8  ;;  %v1482_v45 = vand.u32 15, %v6577_v41  ;;  %v7595_v47 = vld [vmem:[#allocation43_spill] sm:$0xff]  ;;  %v7606_v26 = vld [vmem:[#allocation32_spill] sm:$0xff] }
 0x1c4   : > { %v1393_v34 = vadd.f32 %v6235_v13, %v1358_v46  ;;  %v1359_v57 = vmax.f32 %v7590_v2, %v1331_v50  ;;  %v1423_v48 = vmax.f32 %v1395_v54, 0.0  ;;  %v1484_v46 = vand.u32 15, %v6569_v37  ;;  %v1267_v37 = vpop.f32.mrb[109].mxu0  ;;  %v7597_v8 = vld [vmem:[#allocation15_spill] sm:$0xff] }
 0x1c5   : > { %v1396_v18 = vadd.f32 %v6235_v13, %v1361_v0  ;;  %v1455_v23 = vadd.s32 200, %v6217_v51  ;;  %v1336_v0 = vmax.f32 %v7595_v47, %v5036_v61  ;;  %v1485_v28 = vand.u32 15, %v1457_v55 }
 0x1c6   : > { %v1421_v50 = vmax.f32 %v1393_v34, 0.0  ;;  %v1394_v14 = vadd.f32 %v6235_v13, %v1359_v57  ;;  %v6644_v54 = vsel %vm6562_vm6, 0.0, %v1423_v48  ;;  %v1334_v2 = vmax.f32 %v7596_v33, %v1267_v37  ;;  %v5037_v57 = vpop.f32.mrb[110].mxu0  ;;  %v7604_v37 = vld [vmem:[#allocation46_spill] sm:$0xff] }
 0x1c7   : > { %v1424_v49 = vmax.f32 %v1396_v18, 0.0  ;;  %v2341_v41 = vrot.slane %v6644_v54, 1  ;;  %v7599_v36 = vmax.f32 %v7597_v8, %v7598_v1  ;;  %v1337_v18 = vmax.f32 %v7600_v7, %v5037_v57  ;;  %v1270_v27 = vpop.f32.mrb[111].mxu0 }
 0x1c8   : > { %v6649_v44 = vsel %vm6618_vm7, 0.0, %v1421_v50  ;;  %v1422_v34 = vmax.f32 %v1394_v14, 0.0  ;;  %v7601_v50 = vld [vmem:[#allocation16_spill] sm:$0xff]  ;;  %v7602_v14 = vld [vmem:[#allocation31_spill] sm:$0xff]  ;;  %v1335_v33 = vmax.f32 %v7604_v37, %v1270_v27  ;;  %v1483_v1 = vand.u32 15, %v1455_v23 }
 0x1c9   : > { %v1364_v48 = vmax.f32 %v7599_v36, %v1336_v0  ;;  %5058 = vmatmul.mubr.msk.f32.gmra.mrb[122].mxu0 %vm1619_vm5, %v6649_v44  ;;  %v2339_v55 = vrot.slane %v6649_v44, 1  ;;  %v6662_v38 = vsel %vm6627_vm9, 0.0, %v1424_v49  ;;  %v7603_v61 = vmax.f32 %v7601_v50, %v7602_v14  ;;  %v7605_v0 = vld [vmem:[#allocation17_spill] sm:$0xff]  ;;  %v7608_v50 = vld [vmem:[#allocation18_spill] sm:$0xff] }
 0x1ca   : > { %5060 = vmatprep.mubr.msk.f32.mxu0 %vm1619_vm5, %v6644_v54  ;;  %v6672_v7 = vsel %vm6635_vm10, 0.0, %v1422_v34  ;;  %v7607_v49 = vmax.f32 %v7605_v0, %v7606_v26  ;;  %vm1512_vm11 = vcmp.eq.s32.totalorder %v1484_v46, 7  ;;  %v7610_v34 = vmax.f32 %v7608_v50, %v7609_v52 }
 0x1cb   : > { %v1362_v47 = vmax.f32 %v7603_v61, %v1334_v2  ;;  %v1399_v8 = vadd.f32 %v6235_v13, %v1364_v48  ;;  %v6679_v36 = vsel %vm1920_vm8, %v2337_v29, %v2339_v55  ;;  %v6682_v2 = vsel %vm1920_vm8, %v2339_v55, %v2341_v41 }
 0x1cc   : > { %v1365_v57 = vmax.f32 %v7607_v49, %v1337_v18  ;;  %v1363_v14 = vmax.f32 %v7610_v34, %v1335_v33  ;;  %5182 = vmatprep.mubr.msk.f32.mxu1 %vm1619_vm5, %v6679_v36  ;;  %vm1510_vm12 = vcmp.eq.s32.totalorder %v1482_v45, 7  ;;  %v1437_v46 = vadd.s32 56, %v6217_v51 }
 0x1cd   : > { %v1397_v27 = vadd.f32 %v6235_v13, %v1362_v47  ;;  %v1427_v23 = vmax.f32 %v1399_v8, 0.0  ;;  %5183 = vmatmul.mubr.msk.f32.gmra.mrb[10].mxu1 %vm1619_vm5, %v6682_v2  ;;  %vm1541_vm13 = vcmp.eq.s32.totalorder %v1485_v28, 8  ;;  %v1463_v47 = vand.u32 15, %v6430_v56 }
 0x1ce   : > { %v1400_v48 = vadd.f32 %v6235_v13, %v1365_v57  ;;  %v1398_v18 = vadd.f32 %v6235_v13, %v1363_v14  ;;  %vm1539_vm14 = vcmp.eq.s32.totalorder %v1483_v1, 8  ;;  %v1378_v45 = vadd.f32 %v6235_v13, %v6346_v42 }
 0x1cf   : > { %v1425_v29 = vmax.f32 %v1397_v27, 0.0  ;;  %v6695_v55 = vsel %vm1512_vm11, 0.0, %v1427_v23  ;;  %v1380_v0 = vadd.f32 %v6235_v13, %v6329_v63  ;;  %v1439_v26 = vadd.s32 72, %v6217_v51 }
 0x1d0   : > { %v1428_v61 = vmax.f32 %v1400_v48, 0.0  ;;  %v1426_v33 = vmax.f32 %v1398_v18, 0.0  ;;  %v2345_v8 = vrot.slane %v6695_v55, 1  ;;  %v1465_v42 = vand.u32 15, %v1437_v46 }
 0x1d1   : > { %v6700_v37 = vsel %vm1510_vm12, 0.0, %v1425_v29  ;;  %v1441_v1 = vadd.s32 88, %v6217_v51  ;;  %v1406_v50 = vmax.f32 %v1378_v45, 0.0  ;;  %v1382_v52 = vadd.f32 %v6235_v13, %v6418_v53 }
 0x1d2   : > { %5061 = vmatmul.mubr.msk.f32.gmra.mrb[124].mxu0 %vm1619_vm5, %v6700_v37  ;;  %v2343_v28 = vrot.slane %v6700_v37, 1  ;;  %v6709_v56 = vsel %vm1541_vm13, 0.0, %v1428_v61  ;;  %v6713_v49 = vsel %vm1539_vm14, 0.0, %v1426_v33  ;;  %v6717_v57 = vsel %vm1920_vm8, %v2345_v8, %v6269_v11 }
 0x1d3   : > { %5067 = vmatprep.mubr.f32.mxu0 %v7508_v32  ;;  %v1408_v51 = vmax.f32 %v1380_v0, 0.0  ;;  %v1384_v34 = vadd.f32 %v6235_v13, %v6405_v3  ;;  %vm1519_vm15 = vcmp.eq.s32.totalorder %v1463_v47, 8  ;;  %vm1521_vm0 = vcmp.eq.s32.totalorder %v1465_v42, 8  ;;  %v7611_v3 = vld [vmem:[#allocation13_spill] sm:$0xff]  ;;  %v6827_v47 = vld [vmem:[%s7398_s3 + $0x48] sm:$0xff]  }
 0x1d4   : > { %v6720_v63 = vsel %vm1920_vm8, %v2341_v41, %v2343_v28  ;;  %v6723_v27 = vsel %vm1920_vm8, %v2343_v28, %v2345_v8  ;;  %v1467_v41 = vand.u32 15, %v1439_v26  ;;  %v1469_v53 = vand.u32 15, %v1441_v1 }
 0x1d5   : > { %5185 = vmatprep.mubr.msk.f32.mxu1 %vm1619_vm5, %v6720_v63  ;;  %v1410_v14 = vmax.f32 %v1382_v52, 0.0  ;;  %v6740_v13 = vsel %vm1519_vm15, 0.0, %v1406_v50  ;;  %v1412_v23 = vmax.f32 %v1384_v34, 0.0  ;;  %v6747_v48 = vsel %vm1521_vm0, 0.0, %v1408_v51 }
 0x1d6   : > { %5068 = vmatmul.mubr.msk.f32.vlgmr.msra.gmra.mrb[112].mxu0 %vm1619_vm5, %v6315_v35  ;;  %5186 = vmatmul.mubr.msk.f32.gmra.mrb[12].mxu1 %vm1619_vm5, %v6723_v27  ;;  %vm1523_vm1 = vcmp.eq.s32.totalorder %v1467_v41, 8  ;;  %vm1525_vm2 = vcmp.eq.s32.totalorder %v1469_v53, 8  ;;  %v1928_v29 = vrot.slane %v6747_v48, 1  ;;  %v7612_v46 = vrot.slane %v6311_v12, 1 }
 0x1d7   : > { %5070 = vmatprep.mubr.msk.f32.mxu0 %vm1619_vm5, %v6311_v12  ;;  %5192 = vmatprep.mubr.msk.f32.mxu1 %vm1619_vm5, %v6315_v35  ;;  %v6761_v35 = vld [vmem:[%s7398_s3 + $0x40] sm:$0xff]   ;;  %v1934_v8 = vrot.slane %v6535_v5, 1  ;;  %v1938_v26 = vrot.slane %v6604_v30, 1  ;;  %v1940_v1 = vrot.slane %v6594_v24, 1  ;;  %v1942_v52 = vrot.slane %v6672_v7, 1 }
 0x1d8   : > { %5089 = vmatpush3.bf16.msra.mxu0 %v6019_v19  ;;  %v6755_v19 = vsel %vm1523_vm1, 0.0, %v1410_v14  ;;  %v1944_v34 = vrot.slane %v6662_v38, 1  ;;  %v1946_v53 = vrot.slane %v6713_v49, 1 }
 0x1d9   : > { %5090 = vmatprep.subr.bf16.mxu0 %v7611_v3  ;;  %v1930_v18 = vrot.slane %v6755_v19, 1  ;;  %v6887_v41 = vsel %vm1920_vm8, %v1938_v26, %v1940_v1  ;;  %v6895_v14 = vsel %vm1920_vm8, %v1940_v1, %v1942_v52  ;;  %v7620_v1 = vld [vmem:[#allocation4_spill] sm:$0xff] }
 0x1da   : > { %5071 = vmatmul.mubr.msk.f32.gmra.mrb[114].mxu0 %vm1619_vm5, %v6740_v13  ;;  %5193 = vmatmul.mubr.msk.f32.vlgmr.msra.gmra.mrb[14].mxu1 %vm1619_vm5, %v6311_v12 }
 0x1db   : > { %5214 = vmatpush3.bf16.msra.mxu1 %v6114_v59  ;;  %5073 = vmatprep.mubr.msk.f32.mxu0 %vm1619_vm5, %v6747_v48  ;;  %v6767_v59 = vsel %vm1525_vm2, 0.0, %v1412_v23  ;;  %v6841_v0 = vsel %vm1920_vm8, %v1928_v29, %v1930_v18  ;;  %v6903_v23 = vsel %vm1920_vm8, %v1942_v52, %v1944_v34  ;;  %v5795_v52 = vld [vmem:[%s7398_s3 + $0x70] sm:$0xff]  }
 0x1dc   : > { %5195 = vmatprep.mubr.msk.f32.mxu1 %vm1619_vm5, %v6740_v13  ;;  %5215 = vmatprep.subr.bf16.mxu1 %v6339_v62  ;;  %v1932_v45 = vrot.slane %v6767_v59, 1 }
 0x1dd   : > { %5091 = vmatpush3.bf16.msra.mxu0 %v7611_v3  ;;  %v1948_v3 = vrot.slane %v6709_v56, 1 }
 0x1de   : > { %5074 = vmatmul.mubr.msk.f32.gmra.mrb[116].mxu0 %vm1619_vm5, %v6755_v19  ;;  %5196 = vmatmul.mubr.msk.f32.gmra.mrb[16].mxu1 %vm1619_vm5, %v6747_v48  ;;  %v6851_v28 = vsel %vm1920_vm8, %v1930_v18, %v1932_v45  ;;  %v6860_v42 = vsel %vm1920_vm8, %v1932_v45, %v1934_v8  ;;  %v5799_v18 = vld [vmem:[%s7398_s3 + $0x20] sm:$0xff]   ;;  %v7614_v45 = vld [vmem:[#allocation47_spill] sm:$0xff] }
 0x1df   : > { %5076 = vmatprep.mubr.msk.f32.mxu0 %vm1619_vm5, %v6767_v59  ;;  %5198 = vmatprep.mubr.msk.f32.mxu1 %vm1619_vm5, %v6755_v19 }
 0x1e0   : > { %5216 = vmatpush3.bf16.msra.mxu1 %v6339_v62  ;;  %5113 = vmatprep.subr.bf16.mxu0 %v6142_v43  ;;  %v1926_v62 = vrot.slane %v6740_v13, 1 }
 0x1e1   : > { %5238 = vmatprep.subr.bf16.mxu1 %v6761_v35 }
 0x1e2   : > { %5077 = vmatmul.mubr.msk.f32.gmra.mrb[118].mxu0 %vm1619_vm5, %v6535_v5  ;;  %5199 = vmatmul.mubr.msk.f32.gmra.mrb[18].mxu1 %vm1619_vm5, %v6767_v59  ;;  %v6818_v61 = vsel %vm1920_vm8, %v7612_v46, %v1926_v62  ;;  %v6832_v33 = vsel %vm1920_vm8, %v1926_v62, %v1928_v29  ;;  %v6910_v62 = vsel %vm1920_vm8, %v1944_v34, %v1946_v53  ;;  %v5800_v46 = vld [vmem:[%s7398_s3 + $0x28] sm:$0xff]  }
 0x1e3   : > { %5079 = vmatprep.mubr.msk.f32.mxu0 %vm1619_vm5, %v6525_v16  ;;  %5201 = vmatprep.mubr.msk.f32.mxu1 %vm1619_vm5, %v6535_v5  ;;  %v6919_v29 = vsel %vm1920_vm8, %v1946_v53, %v1948_v3 }
 0x1e6   : > { %5080 = vmatmul.mubr.msk.f32.gmra.mrb[120].mxu0 %vm1619_vm5, %v6604_v30  ;;  %5202 = vmatmul.mubr.msk.f32.gmra.mrb[20].mxu1 %vm1619_vm5, %v6525_v16 }
 0x1e7   : > { %5082 = vmatprep.mubr.msk.f32.mxu0 %vm1619_vm5, %v6594_v24  ;;  %5204 = vmatprep.mubr.msk.f32.mxu1 %vm1619_vm5, %v6604_v30 }
 0x1ea   : > { %5083 = vmatmul.mubr.msk.f32.gmra.mrb[122].mxu0 %vm1619_vm5, %v6672_v7  ;;  %5205 = vmatmul.mubr.msk.f32.gmra.mrb[22].mxu1 %vm1619_vm5, %v6594_v24 }
 0x1eb   : > { %5085 = vmatprep.mubr.msk.f32.mxu0 %vm1619_vm5, %v6662_v38  ;;  %5207 = vmatprep.mubr.msk.f32.mxu1 %vm1619_vm5, %v6672_v7 }
 0x1ee   : > { %5086 = vmatmul.mubr.msk.f32.gmra.mrb[124].mxu0 %vm1619_vm5, %v6713_v49  ;;  %5208 = vmatmul.mubr.msk.f32.gmra.mrb[24].mxu1 %vm1619_vm5, %v6662_v38 }
 0x1ef   : > { %5092 = vmatprep.mubr.msk.f32.mxu0 %vm1619_vm5, %v6363_v17  ;;  %5210 = vmatprep.mubr.msk.f32.mxu1 %vm1619_vm5, %v6713_v49 }
 0x1f2   : > { %5093 = vmatmul.mubr.msk.f32.vlgmr.msra.gmra.mrb[126].mxu0 %vm1619_vm5, %v6368_v39  ;;  %5211 = vmatmul.mubr.msk.f32.gmra.mrb[26].mxu1 %vm1619_vm5, %v6709_v56 }
 0x1f3   : > { %5095 = vmatprep.mubr.msk.f32.mxu0 %vm1619_vm5, %v6818_v61  ;;  %5217 = vmatprep.mubr.msk.f32.mxu1 %vm1619_vm5, %v6298_v22 }
 0x1f4   : > { %5114 = vmatpush3.bf16.msra.mxu0 %v6142_v43  ;;  %v1936_v43 = vrot.slane %v6525_v16, 1 }
 0x1f5   : > { %5115 = vmatprep.subr.bf16.mxu0 %v6294_v15 }
 0x1f6   : > { %5096 = vmatmul.mubr.msk.f32.gmra.mrb[128].mxu0 %vm1619_vm5, %v6832_v33  ;;  %5218 = vmatmul.mubr.msk.f32.vlgmr.msra.gmra.mrb[0].mxu1 %vm1619_vm5, %v6285_v10  ;;  %v6870_v50 = vsel %vm1920_vm8, %v1934_v8, %v1936_v43  ;;  %v6879_v51 = vsel %vm1920_vm8, %v1936_v43, %v1938_v26  ;;  %v7615_v8 = vld [vmem:[#allocation2_spill] sm:$0xff]  ;;  %v7616_v43 = vld [vmem:[#allocation19_spill] sm:$0xff] }
 0x1f7   : > { %5239 = vmatpush3.bf16.msra.mxu1 %v6761_v35  ;;  %5098 = vmatprep.mubr.msk.f32.mxu0 %vm1619_vm5, %v6841_v0  ;;  %v7618_v26 = vld [vmem:[#allocation3_spill] sm:$0xff] }
 0x1f8   : > { %5220 = vmatprep.mubr.msk.f32.mxu1 %vm1619_vm5, %v6381_v20  ;;  %5240 = vmatprep.subr.bf16.mxu1 %v6827_v47 }
 0x1f9   : > { %5116 = vmatpush3.bf16.msra.mxu0 %v6294_v15  ;;  %v7613_v15 = vld [vmem:[#allocation14_spill] sm:$0xff] }
 0x1fa   : > { %5099 = vmatmul.mubr.msk.f32.gmra.mrb[130].mxu0 %vm1619_vm5, %v6851_v28  ;;  %5221 = vmatmul.mubr.msk.f32.gmra.mrb[2].mxu1 %vm1619_vm5, %v6372_v58 }
 0x1fb   : > { %5101 = vmatprep.mubr.msk.f32.mxu0 %vm1619_vm5, %v6860_v42  ;;  %5223 = vmatprep.mubr.msk.f32.mxu1 %vm1619_vm5, %v6444_v60 }
 0x1fc   : > { %5241 = vmatpush3.bf16.msra.mxu1 %v6827_v47  ;;  %5138 = vmatprep.subr.bf16.mxu0 %v7613_v15  ;;  %v7619_v15 = vld [vmem:[#allocation20_spill] sm:$0xff] }
 0x1fd   : > { %5263 = vmatprep.subr.bf16.mxu1 %v6761_v35 }
 0x1fe   : > { %5102 = vmatmul.mubr.msk.f32.gmra.mrb[132].mxu0 %vm1619_vm5, %v6870_v50  ;;  %5224 = vmatmul.mubr.msk.f32.gmra.mrb[4].mxu1 %vm1619_vm5, %v6437_v4 }
 0x1ff   : > { %5104 = vmatprep.mubr.msk.f32.mxu0 %vm1619_vm5, %v6879_v51  ;;  %5226 = vmatprep.mubr.msk.f32.mxu1 %vm1619_vm5, %v6512_v9 }
 0x202   : > { %5105 = vmatmul.mubr.msk.f32.gmra.mrb[134].mxu0 %vm1619_vm5, %v6887_v41  ;;  %5227 = vmatmul.mubr.msk.f32.gmra.mrb[6].mxu1 %vm1619_vm5, %v6504_v21 }
 0x203   : > { %5107 = vmatprep.mubr.msk.f32.mxu0 %vm1619_vm5, %v6895_v14  ;;  %5229 = vmatprep.mubr.msk.f32.mxu1 %vm1619_vm5, %v6581_v31 }
 0x206   : > { %5108 = vmatmul.mubr.msk.f32.gmra.mrb[136].mxu0 %vm1619_vm5, %v6903_v23  ;;  %5230 = vmatmul.mubr.msk.f32.gmra.mrb[8].mxu1 %vm1619_vm5, %v6573_v25 }
 0x207   : > { %5110 = vmatprep.mubr.msk.f32.mxu0 %vm1619_vm5, %v6910_v62  ;;  %5232 = vmatprep.mubr.msk.f32.mxu1 %vm1619_vm5, %v6649_v44 }
 0x20a   : > { %5111 = vmatmul.mubr.msk.f32.gmra.mrb[138].mxu0 %vm1619_vm5, %v6919_v29  ;;  %5233 = vmatmul.mubr.msk.f32.gmra.mrb[10].mxu1 %vm1619_vm5, %v6644_v54 }
 0x20b   : > { %5235 = vmatprep.mubr.msk.f32.mxu1 %vm1619_vm5, %v6700_v37  ;;  %5117 = vmatprep.mubr.f32.mxu0 %v7508_v32 }
 0x20e   : > { %5118 = vmatmul.mubr.msk.f32.vlgmr.msra.gmra.mrb[126].mxu0 %vm1619_vm5, %v6298_v22  ;;  %5236 = vmatmul.mubr.msk.f32.gmra.mrb[12].mxu1 %vm1619_vm5, %v6695_v55 }
 0x20f   : > { %5120 = vmatprep.mubr.msk.f32.mxu0 %vm1619_vm5, %v6285_v10  ;;  %5242 = vmatprep.mubr.msk.f32.mxu1 %vm1619_vm5, %v6298_v22  ;;  %v5791_v22 = vld [vmem:[%s7398_s3 + $0x50] sm:$0xff]  }
 0x210   : > { %5139 = vmatpush3.bf16.msra.mxu0 %v5799_v18 }
 0x211   : > { %5140 = vmatprep.subr.bf16.mxu0 %v5800_v46 }
 0x212   : > { %5121 = vmatmul.mubr.msk.f32.gmra.mrb[128].mxu0 %vm1619_vm5, %v6381_v20  ;;  %5243 = vmatmul.mubr.msk.f32.vlgmr.msra.gmra.mrb[14].mxu1 %vm1619_vm5, %v6285_v10 }
 0x213   : > { %5264 = vmatpush3.bf16.msra.mxu1 %v6761_v35  ;;  %5123 = vmatprep.mubr.msk.f32.mxu0 %vm1619_vm5, %v6372_v58  ;;  %v5792_v35 = vld [vmem:[%s7398_s3 + $0x58] sm:$0xff]  }
 0x214   : > { %5245 = vmatprep.mubr.msk.f32.mxu1 %vm1619_vm5, %v6381_v20  ;;  %5265 = vmatprep.subr.bf16.mxu1 %v6827_v47 }
 0x215   : > { %5141 = vmatpush3.bf16.msra.mxu0 %v5800_v46 }
 0x216   : > { %5124 = vmatmul.mubr.msk.f32.gmra.mrb[130].mxu0 %vm1619_vm5, %v6444_v60  ;;  %5246 = vmatmul.mubr.msk.f32.gmra.mrb[16].mxu1 %vm1619_vm5, %v6372_v58 }
 0x217   : > { %5126 = vmatprep.mubr.msk.f32.mxu0 %vm1619_vm5, %v6437_v4  ;;  %5248 = vmatprep.mubr.msk.f32.mxu1 %vm1619_vm5, %v6444_v60 }
 0x218   : > { %5266 = vmatpush3.bf16.msra.mxu1 %v6827_v47  ;;  %v5793_v47 = vld [vmem:[%s7398_s3 + $0x60] sm:$0xff]  }
 0x219   : > { %5288 = vmatprep.subr.bf16.mxu1 %v5791_v22 }
 0x21a   : > { %5127 = vmatmul.mubr.msk.f32.gmra.mrb[132].mxu0 %vm1619_vm5, %v6512_v9  ;;  %5249 = vmatmul.mubr.msk.f32.gmra.mrb[18].mxu1 %vm1619_vm5, %v6437_v4 }
 0x21b   : > { %5129 = vmatprep.mubr.msk.f32.mxu0 %vm1619_vm5, %v6504_v21  ;;  %5251 = vmatprep.mubr.msk.f32.mxu1 %vm1619_vm5, %v6512_v9 }
 0x21e   : > { %5130 = vmatmul.mubr.msk.f32.gmra.mrb[134].mxu0 %vm1619_vm5, %v6581_v31  ;;  %5252 = vmatmul.mubr.msk.f32.gmra.mrb[20].mxu1 %vm1619_vm5, %v6504_v21 }
 0x21f   : > { %5132 = vmatprep.mubr.msk.f32.mxu0 %vm1619_vm5, %v6573_v25  ;;  %5254 = vmatprep.mubr.msk.f32.mxu1 %vm1619_vm5, %v6581_v31 }
 0x222   : > { %5133 = vmatmul.mubr.msk.f32.gmra.mrb[136].mxu0 %vm1619_vm5, %v6649_v44  ;;  %5255 = vmatmul.mubr.msk.f32.gmra.mrb[22].mxu1 %vm1619_vm5, %v6573_v25 }
 0x223   : > { %5135 = vmatprep.mubr.msk.f32.mxu0 %vm1619_vm5, %v6644_v54  ;;  %5257 = vmatprep.mubr.msk.f32.mxu1 %vm1619_vm5, %v6649_v44 }
 0x226   : > { %5136 = vmatmul.mubr.msk.f32.gmra.mrb[138].mxu0 %vm1619_vm5, %v6700_v37  ;;  %5258 = vmatmul.mubr.msk.f32.gmra.mrb[24].mxu1 %vm1619_vm5, %v6644_v54 }
 0x227   : > { %5142 = vmatprep.mubr.msk.f32.mxu0 %vm1619_vm5, %v6363_v17  ;;  %5260 = vmatprep.mubr.msk.f32.mxu1 %vm1619_vm5, %v6700_v37  ;;  %v7057_v17 = vsel %vm1920_vm8, %v1948_v3, %v6269_v11 }
 0x22a   : > { %5143 = vmatmul.mubr.msk.f32.vlgmr.msra.gmra.mrb[112].mxu0 %vm1619_vm5, %v6368_v39  ;;  %5261 = vmatmul.mubr.msk.f32.gmra.mrb[26].mxu1 %vm1619_vm5, %v6695_v55 }
 0x22b   : > { %5145 = vmatprep.mubr.msk.f32.mxu0 %vm1619_vm5, %v6818_v61  ;;  %5267 = vmatprep.mubr.msk.f32.mxu1 %vm1619_vm5, %v6368_v39 }
 0x22e   : > { %5146 = vmatmul.mubr.msk.f32.gmra.mrb[114].mxu0 %vm1619_vm5, %v6832_v33  ;;  %5268 = vmatmul.mubr.msk.f32.vlgmr.msra.gmra.mrb[0].mxu1 %vm1619_vm5, %v6818_v61 }
 0x22f   : > { %5289 = vmatpush3.bf16.msra.mxu1 %v5791_v22  ;;  %5148 = vmatprep.mubr.msk.f32.mxu0 %vm1619_vm5, %v6841_v0 }
 0x230   : > { %5270 = vmatprep.mubr.msk.f32.mxu1 %vm1619_vm5, %v6832_v33  ;;  %5290 = vmatprep.subr.bf16.mxu1 %v5792_v35 }
 0x232   : > { %5149 = vmatmul.mubr.msk.f32.gmra.mrb[116].mxu0 %vm1619_vm5, %v6851_v28  ;;  %5271 = vmatmul.mubr.msk.f32.gmra.mrb[2].mxu1 %vm1619_vm5, %v6841_v0 }
 0x233   : > { %5151 = vmatprep.mubr.msk.f32.mxu0 %vm1619_vm5, %v6860_v42  ;;  %5273 = vmatprep.mubr.msk.f32.mxu1 %vm1619_vm5, %v6851_v28 }
 0x234   : > { %5291 = vmatpush3.bf16.msra.mxu1 %v5792_v35 }
 0x235   : > { %5313 = vmatprep.subr.bf16.mxu1 %v5791_v22 }
 0x236   : > { %5152 = vmatmul.mubr.msk.f32.gmra.mrb[118].mxu0 %vm1619_vm5, %v6870_v50  ;;  %5274 = vmatmul.mubr.msk.f32.gmra.mrb[4].mxu1 %vm1619_vm5, %v6860_v42 }
 0x237   : > { %5154 = vmatprep.mubr.msk.f32.mxu0 %vm1619_vm5, %v6879_v51  ;;  %5276 = vmatprep.mubr.msk.f32.mxu1 %vm1619_vm5, %v6870_v50 }
 0x23a   : > { %5155 = vmatmul.mubr.msk.f32.gmra.mrb[120].mxu0 %vm1619_vm5, %v6887_v41  ;;  %5277 = vmatmul.mubr.msk.f32.gmra.mrb[6].mxu1 %vm1619_vm5, %v6879_v51 }
 0x23b   : > { %5157 = vmatprep.mubr.msk.f32.mxu0 %vm1619_vm5, %v6895_v14  ;;  %5279 = vmatprep.mubr.msk.f32.mxu1 %vm1619_vm5, %v6887_v41 }
 0x23e   : > { %5158 = vmatmul.mubr.msk.f32.gmra.mrb[122].mxu0 %vm1619_vm5, %v6903_v23  ;;  %5280 = vmatmul.mubr.msk.f32.gmra.mrb[8].mxu1 %vm1619_vm5, %v6895_v14 }
 0x23f   : > { %5160 = vmatprep.mubr.msk.f32.mxu0 %vm1619_vm5, %v6910_v62  ;;  %5282 = vmatprep.mubr.msk.f32.mxu1 %vm1619_vm5, %v6903_v23 }
 0x242   : > { %5161 = vmatmul.mubr.msk.f32.gmra.mrb[124].mxu0 %vm1619_vm5, %v6919_v29  ;;  %5283 = vmatmul.mubr.msk.f32.gmra.mrb[10].mxu1 %vm1619_vm5, %v6910_v62 }
 0x243   : > { %5285 = vmatprep.mubr.msk.f32.mxu1 %vm1619_vm5, %v6919_v29 }
 0x246   : > { %5286 = vmatmul.mubr.msk.f32.gmra.mrb[12].mxu1 %vm1619_vm5, %v7057_v17 }
 0x247   : > { %5292 = vmatprep.mubr.msk.f32.mxu1 %vm1619_vm5, %v6368_v39  ;;  %v5794_v39 = vld [vmem:[%s7398_s3 + $0x68] sm:$0xff]  }
 0x24a   : > { %5293 = vmatmul.mubr.msk.f32.vlgmr.msra.gmra.mrb[14].mxu1 %vm1619_vm5, %v6818_v61 }
 0x24b   : > { %5314 = vmatpush3.bf16.msra.mxu1 %v5791_v22  ;;  %5295 = vmatprep.mubr.msk.f32.mxu1 %vm1619_vm5, %v6832_v33 }
 0x24c   : > { %5315 = vmatprep.subr.bf16.mxu1 %v5792_v35 }
 0x24e   : > { %5296 = vmatmul.mubr.msk.f32.gmra.mrb[16].mxu1 %vm1619_vm5, %v6841_v0 }
 0x24f   : > { %5298 = vmatprep.mubr.msk.f32.mxu1 %vm1619_vm5, %v6851_v28  ;;  %5316 = vmatpush3.bf16.msra.mxu1 %v5792_v35 }
 0x250   : > { %5338 = vmatprep.subr.bf16.mxu1 %v5793_v47 }
 0x252   : > { %5299 = vmatmul.mubr.msk.f32.gmra.mrb[18].mxu1 %vm1619_vm5, %v6860_v42 }
 0x253   : > { %5301 = vmatprep.mubr.msk.f32.mxu1 %vm1619_vm5, %v6870_v50 }
 0x256   : > { %5302 = vmatmul.mubr.msk.f32.gmra.mrb[20].mxu1 %vm1619_vm5, %v6879_v51 }
 0x257   : > { %5304 = vmatprep.mubr.msk.f32.mxu1 %vm1619_vm5, %v6887_v41 }
 0x25a   : > { %5305 = vmatmul.mubr.msk.f32.gmra.mrb[22].mxu1 %vm1619_vm5, %v6895_v14 }
 0x25b   : > { %5307 = vmatprep.mubr.msk.f32.mxu1 %vm1619_vm5, %v6903_v23 }
 0x25e   : > { %5308 = vmatmul.mubr.msk.f32.gmra.mrb[24].mxu1 %vm1619_vm5, %v6910_v62 }
 0x25f   : > { %5310 = vmatprep.mubr.msk.f32.mxu1 %vm1619_vm5, %v6919_v29 }
 0x262   : > { %5311 = vmatmul.mubr.msk.f32.gmra.mrb[26].mxu1 %vm1619_vm5, %v7057_v17 }
 0x263   : > { %5317 = vmatprep.mubr.msk.f32.mxu1 %vm1619_vm5, %v6334_v40  ;;  %v7617_v40 = vld [vmem:[#allocation34_spill] sm:$0xff] }
 0x266   : > { %5318 = vmatmul.mubr.msk.f32.vlgmr.msra.gmra.mrb[0].mxu1 %vm1619_vm5, %v6408_v6 }
 0x267   : > { %5339 = vmatpush3.bf16.msra.mxu1 %v5793_v47  ;;  %5320 = vmatprep.mubr.msk.f32.mxu1 %vm1619_vm5, %v7614_v45 }
 0x268   : > { %5340 = vmatprep.subr.bf16.mxu1 %v5794_v39 }
 0x26a   : > { %5321 = vmatmul.mubr.msk.f32.gmra.mrb[2].mxu1 %vm1619_vm5, %v7615_v8 }
 0x26b   : > { %5323 = vmatprep.mubr.msk.f32.mxu1 %vm1619_vm5, %v7616_v43  ;;  %5341 = vmatpush3.bf16.msra.mxu1 %v5794_v39 }
 0x26c   : > { %5363 = vmatprep.subr.bf16.mxu1 %v5793_v47 }
 0x26e   : > { %5324 = vmatmul.mubr.msk.f32.gmra.mrb[4].mxu1 %vm1619_vm5, %v7617_v40 }
 0x26f   : > { %5326 = vmatprep.mubr.msk.f32.mxu1 %vm1619_vm5, %v7618_v26 }
 0x272   : > { %5327 = vmatmul.mubr.msk.f32.gmra.mrb[6].mxu1 %vm1619_vm5, %v7619_v15 }
 0x273   : > { %5329 = vmatprep.mubr.msk.f32.mxu1 %vm1619_vm5, %v7620_v1 }
 0x276   : > { %5330 = vmatmul.mubr.msk.f32.gmra.mrb[8].mxu1 %vm1619_vm5, %v6679_v36 }
 0x277   : > { %5332 = vmatprep.mubr.msk.f32.mxu1 %vm1619_vm5, %v6682_v2 }
 0x27a   : > { %5333 = vmatmul.mubr.msk.f32.gmra.mrb[10].mxu1 %vm1619_vm5, %v6720_v63 }
 0x27b   : > { %5335 = vmatprep.mubr.msk.f32.mxu1 %vm1619_vm5, %v6723_v27 }
 0x27e   : > { %5336 = vmatmul.mubr.msk.f32.gmra.mrb[12].mxu1 %vm1619_vm5, %v6717_v57 }
 0x27f   : > { %5342 = vmatprep.mubr.msk.f32.mxu1 %vm1619_vm5, %v6311_v12  ;;  %v5796_v12 = vld [vmem:[%s7398_s3 + $0x78] sm:$0xff]  }
 0x282   : > { %5343 = vmatmul.mubr.msk.f32.vlgmr.msra.gmra.mrb[14].mxu1 %vm1619_vm5, %v6740_v13 }
 0x283   : > { %5364 = vmatpush3.bf16.msra.mxu1 %v5793_v47  ;;  %5345 = vmatprep.mubr.msk.f32.mxu1 %vm1619_vm5, %v6747_v48 }
 0x284   : > { %5365 = vmatprep.subr.bf16.mxu1 %v5794_v39 }
 0x286   : > { %5346 = vmatmul.mubr.msk.f32.gmra.mrb[16].mxu1 %vm1619_vm5, %v6755_v19 }
 0x287   : > { %5348 = vmatprep.mubr.msk.f32.mxu1 %vm1619_vm5, %v6767_v59  ;;  %5366 = vmatpush3.bf16.msra.mxu1 %v5794_v39 }
 0x288   : > { %5388 = vmatprep.subr.bf16.mxu1 %v5795_v52 }
 0x28a   : > { %5349 = vmatmul.mubr.msk.f32.gmra.mrb[18].mxu1 %vm1619_vm5, %v6535_v5 }
 0x28b   : > { %5351 = vmatprep.mubr.msk.f32.mxu1 %vm1619_vm5, %v6525_v16  ;;  %v5797_v16 = vld [vmem:[%s7398_s3 + $0x80] sm:$0xff]  }
 0x28e   : > { %5352 = vmatmul.mubr.msk.f32.gmra.mrb[20].mxu1 %vm1619_vm5, %v6604_v30 }
 0x28f   : > { %5354 = vmatprep.mubr.msk.f32.mxu1 %vm1619_vm5, %v6594_v24 }
 0x292   : > { %5355 = vmatmul.mubr.msk.f32.gmra.mrb[22].mxu1 %vm1619_vm5, %v6672_v7 }
 0x293   : > { %5357 = vmatprep.mubr.msk.f32.mxu1 %vm1619_vm5, %v6662_v38 }
 0x296   : > { %5358 = vmatmul.mubr.msk.f32.gmra.mrb[24].mxu1 %vm1619_vm5, %v6713_v49 }
 0x297   : > { %5360 = vmatprep.mubr.msk.f32.mxu1 %vm1619_vm5, %v6709_v56 }
 0x29a   : > { %5361 = vmatmul.mubr.f32.gmra.mrb[26].mxu1 %v7508_v32 }
 0x29b   : > { %5367 = vmatprep.mubr.msk.f32.mxu1 %vm1619_vm5, %v6285_v10 }
 0x29e   : > { %5368 = vmatmul.mubr.msk.f32.vlgmr.msra.gmra.mrb[0].mxu1 %vm1619_vm5, %v6381_v20 }
 0x29f   : > { %5389 = vmatpush3.bf16.msra.mxu1 %v5795_v52  ;;  %5370 = vmatprep.mubr.msk.f32.mxu1 %vm1619_vm5, %v6372_v58 }
 0x2a0   : > { %5390 = vmatprep.subr.bf16.mxu1 %v5796_v12 }
 0x2a2   : > { %5371 = vmatmul.mubr.msk.f32.gmra.mrb[2].mxu1 %vm1619_vm5, %v6444_v60 }
 0x2a3   : > { %5373 = vmatprep.mubr.msk.f32.mxu1 %vm1619_vm5, %v6437_v4  ;;  %5391 = vmatpush3.bf16.msra.mxu1 %v5796_v12 }
 0x2a4   : > { %5413 = vmatprep.subr.bf16.mxu1 %v5795_v52 }
 0x2a6   : > { %5374 = vmatmul.mubr.msk.f32.gmra.mrb[4].mxu1 %vm1619_vm5, %v6512_v9 }
 0x2a7   : > { %5376 = vmatprep.mubr.msk.f32.mxu1 %vm1619_vm5, %v6504_v21 }
 0x2aa   : > { %5377 = vmatmul.mubr.msk.f32.gmra.mrb[6].mxu1 %vm1619_vm5, %v6581_v31 }
 0x2ab   : > { %5379 = vmatprep.mubr.msk.f32.mxu1 %vm1619_vm5, %v6573_v25 }
 0x2ae   : > { %5380 = vmatmul.mubr.msk.f32.gmra.mrb[8].mxu1 %vm1619_vm5, %v6649_v44 }
 0x2af   : > { %5382 = vmatprep.mubr.msk.f32.mxu1 %vm1619_vm5, %v6644_v54 }
 0x2b2   : > { %5383 = vmatmul.mubr.msk.f32.gmra.mrb[10].mxu1 %vm1619_vm5, %v6700_v37 }
 0x2b3   : > { %5385 = vmatprep.mubr.msk.f32.mxu1 %vm1619_vm5, %v6695_v55 }
 0x2b6   : > { %5386 = vmatmul.mubr.f32.gmra.mrb[12].mxu1 %v7508_v32 }
 0x2b7   : > { %5392 = vmatprep.mubr.msk.f32.mxu1 %vm1619_vm5, %v6285_v10  ;;  %v5798_v10 = vld [vmem:[%s7398_s3 + $0x88] sm:$0xff]  }
 0x2ba   : > { %5393 = vmatmul.mubr.msk.f32.vlgmr.msra.gmra.mrb[14].mxu1 %vm1619_vm5, %v6381_v20 }
 0x2bb   : > { %5414 = vmatpush3.bf16.msra.mxu1 %v5795_v52  ;;  %5395 = vmatprep.mubr.msk.f32.mxu1 %vm1619_vm5, %v6372_v58 }
 0x2bc   : > { %5415 = vmatprep.subr.bf16.mxu1 %v5796_v12 }
 0x2be   : > { %5396 = vmatmul.mubr.msk.f32.gmra.mrb[16].mxu1 %vm1619_vm5, %v6444_v60 }
 0x2bf   : > { %5398 = vmatprep.mubr.msk.f32.mxu1 %vm1619_vm5, %v6437_v4  ;;  %5416 = vmatpush3.bf16.msra.mxu1 %v5796_v12 }
 0x2c0   : > { %5438 = vmatprep.subr.bf16.mxu1 %v5797_v16 }
 0x2c2   : > { %5399 = vmatmul.mubr.msk.f32.gmra.mrb[18].mxu1 %vm1619_vm5, %v6512_v9 }
 0x2c3   : > { %5401 = vmatprep.mubr.msk.f32.mxu1 %vm1619_vm5, %v6504_v21 }
 0x2c6   : > { %5402 = vmatmul.mubr.msk.f32.gmra.mrb[20].mxu1 %vm1619_vm5, %v6581_v31 }
 0x2c7   : > { %5404 = vmatprep.mubr.msk.f32.mxu1 %vm1619_vm5, %v6573_v25 }
 0x2ca   : > { %5405 = vmatmul.mubr.msk.f32.gmra.mrb[22].mxu1 %vm1619_vm5, %v6649_v44 }
 0x2cb   : > { %5407 = vmatprep.mubr.msk.f32.mxu1 %vm1619_vm5, %v6644_v54 }
 0x2ce   : > { %5408 = vmatmul.mubr.msk.f32.gmra.mrb[24].mxu1 %vm1619_vm5, %v6700_v37 }
 0x2cf   : > { %5410 = vmatprep.mubr.msk.f32.mxu1 %vm1619_vm5, %v6695_v55 }
 0x2d2   : > { %5411 = vmatmul.mubr.f32.gmra.mrb[26].mxu1 %v7508_v32 }
 0x2d3   : > { %5417 = vmatprep.mubr.msk.f32.mxu1 %vm1619_vm5, %v6818_v61 }
 0x2d6   : > { %5418 = vmatmul.mubr.msk.f32.vlgmr.msra.gmra.mrb[0].mxu1 %vm1619_vm5, %v6832_v33 }
 0x2d7   : > { %5439 = vmatpush3.bf16.msra.mxu1 %v5797_v16  ;;  %5420 = vmatprep.mubr.msk.f32.mxu1 %vm1619_vm5, %v6841_v0 }
 0x2d8   : > { %5440 = vmatprep.subr.bf16.mxu1 %v5798_v10 }
 0x2da   : > { %5421 = vmatmul.mubr.msk.f32.gmra.mrb[2].mxu1 %vm1619_vm5, %v6851_v28 }
 0x2db   : > { %5423 = vmatprep.mubr.msk.f32.mxu1 %vm1619_vm5, %v6860_v42  ;;  %5441 = vmatpush3.bf16.msra.mxu1 %v5798_v10 }
 0x2dc   : > { %5463 = vmatprep.subr.bf16.mxu1 %v5797_v16 }
 0x2de   : > { %5424 = vmatmul.mubr.msk.f32.gmra.mrb[4].mxu1 %vm1619_vm5, %v6870_v50 }
 0x2df   : > { %5426 = vmatprep.mubr.msk.f32.mxu1 %vm1619_vm5, %v6879_v51 }
 0x2e1   : > { %v7230_v32 = vpop.f32.mrb[126].mxu0 }
 0x2e2   : > { %v7232_v58 = vpop.f32.mrb[127].mxu0  ;;  %5427 = vmatmul.mubr.msk.f32.gmra.mrb[6].mxu1 %vm1619_vm5, %v6887_v41 }
 0x2e3   : > { %5429 = vmatprep.mubr.msk.f32.mxu1 %vm1619_vm5, %v6895_v14 }
 0x2e5   : > { %v7238_v20 = vpop.f32.mrb[128].mxu0 }
 0x2e6   : > { %v7240_v4 = vpop.f32.mrb[129].mxu0  ;;  %5430 = vmatmul.mubr.msk.f32.gmra.mrb[8].mxu1 %vm1619_vm5, %v6903_v23 }
 0x2e7   : > { %5432 = vmatprep.mubr.msk.f32.mxu1 %vm1619_vm5, %v6910_v62 }
 0x2e9   : > { %v7246_v60 = vpop.f32.mrb[130].mxu0 }
 0x2ea   : > { %v7248_v21 = vpop.f32.mrb[131].mxu0  ;;  %5433 = vmatmul.mubr.msk.f32.gmra.mrb[10].mxu1 %vm1619_vm5, %v6919_v29 }
 0x2eb   : > { %5435 = vmatprep.mubr.msk.f32.mxu1 %vm1619_vm5, %v7057_v17 }
 0x2ed   : > { %v7254_v9 = vpop.f32.mrb[132].mxu0 }
 0x2ee   : > { %v7256_v5 = vpop.f32.mrb[133].mxu0  ;;  %5436 = vmatmul.mubr.msk.f32.gmra.mrb[12].mxu1 %vm1619_vm5, %v6269_v11 }
 0x2ef   : > { %5442 = vmatprep.mubr.msk.f32.mxu1 %vm1619_vm5, %v6818_v61 }
 0x2f1   : > { %v7262_v25 = vpop.f32.mrb[134].mxu0 }
 0x2f2   : > { %v7264_v31 = vpop.f32.mrb[135].mxu0  ;;  %5443 = vmatmul.mubr.msk.f32.vlgmr.msra.gmra.mrb[14].mxu1 %vm1619_vm5, %v6832_v33 }
 0x2f3   : > { %5464 = vmatpush3.bf16.msra.mxu1 %v5797_v16  ;;  %5445 = vmatprep.mubr.msk.f32.mxu1 %vm1619_vm5, %v6841_v0 }
 0x2f4   : > { %5465 = vmatprep.subr.bf16.mxu1 %v5798_v10 }
 0x2f5   : > { %v7270_v24 = vpop.f32.mrb[136].mxu0 }
 0x2f6   : > { %v7272_v30 = vpop.f32.mrb[137].mxu0  ;;  %5446 = vmatmul.mubr.msk.f32.gmra.mrb[16].mxu1 %vm1619_vm5, %v6851_v28 }
 0x2f7   : > { %5448 = vmatprep.mubr.msk.f32.mxu1 %vm1619_vm5, %v6860_v42  ;;  %5466 = vmatpush3.bf16.msra.mxu1 %v5798_v10  ;;  %v7345_v10 = vld [vmem:[%s7399_s4] ss:$0 sm:$0xff] }
 0x2f9   : > { %v7278_v54 = vpop.f32.mrb[138].mxu0 }
 0x2fa   : > { %v7280_v44 = vpop.f32.mrb[139].mxu0  ;;  %5449 = vmatmul.mubr.msk.f32.gmra.mrb[18].mxu1 %vm1619_vm5, %v6870_v50 }
 0x2fb   : > { %5451 = vmatprep.mubr.msk.f32.mxu1 %vm1619_vm5, %v6879_v51 }
 0x2fd   : > { %v5144_v38 = vpop.f32.mrb[112].mxu0 }
 0x2fe   : > { %v2235_v7 = vpop.f32.mrb[113].mxu0  ;;  %5452 = vmatmul.mubr.msk.f32.gmra.mrb[20].mxu1 %vm1619_vm5, %v6887_v41 }
 0x2ff   : > { %5454 = vmatprep.mubr.msk.f32.mxu1 %vm1619_vm5, %v6895_v14 }
 0x301   : > { %v5147_v55 = vpop.f32.mrb[114].mxu0 }
 0x302   : > { %v2245_v37 = vpop.f32.mrb[115].mxu0  ;;  %5455 = vmatmul.mubr.msk.f32.gmra.mrb[22].mxu1 %vm1619_vm5, %v6903_v23 }
 0x303   : > { %5457 = vmatprep.mubr.msk.f32.mxu1 %vm1619_vm5, %v6910_v62 }
 0x305   : > { %v5150_v56 = vpop.f32.mrb[116].mxu0 }
 0x306   : > { %v2255_v49 = vpop.f32.mrb[117].mxu0  ;;  %5458 = vmatmul.mubr.msk.f32.gmra.mrb[24].mxu1 %vm1619_vm5, %v6919_v29 }
 0x307   : > { %5460 = vmatprep.mubr.msk.f32.mxu1 %vm1619_vm5, %v7057_v17 }
 0x309   : > { %v5153_v13 = vpop.f32.mrb[118].mxu0 }
 0x30a   : > { %v2265_v48 = vpop.f32.mrb[119].mxu0  ;;  %5461 = vmatmul.mubr.msk.f32.gmra.mrb[26].mxu1 %vm1619_vm5, %v6269_v11 }
 0x30b   : > { %5467 = vmatprep.mubr.msk.f32.mxu1 %vm1619_vm5, %v6408_v6 }
 0x30d   : > { %v5156_v19 = vpop.f32.mrb[120].mxu0 }
 0x30e   : > { %v2275_v59 = vpop.f32.mrb[121].mxu0  ;;  %5468 = vmatmul.mubr.msk.f32.vlgmr.msra.gmra.mrb[0].mxu1 %vm1619_vm5, %v7614_v45 }
 0x30f   : > { %5470 = vmatprep.mubr.msk.f32.mxu1 %vm1619_vm5, %v7615_v8 }
 0x311   : > { %v5159_v61 = vpop.f32.mrb[122].mxu0 }
 0x312   : > { %v2285_v33 = vpop.f32.mrb[123].mxu0  ;;  %5471 = vmatmul.mubr.msk.f32.gmra.mrb[2].mxu1 %vm1619_vm5, %v7616_v43 }
 0x313   : > { %5473 = vmatprep.mubr.msk.f32.mxu1 %vm1619_vm5, %v7617_v40 }
 0x315   : > { %v5162_v0 = vpop.f32.mrb[124].mxu0 }
 0x316   : > { %v2295_v28 = vpop.f32.mrb[125].mxu0  ;;  %5474 = vmatmul.mubr.msk.f32.gmra.mrb[4].mxu1 %vm1619_vm5, %v7618_v26 }
 0x317   : > { %5476 = vmatprep.mubr.msk.f32.mxu1 %vm1619_vm5, %v7619_v15 }
 0x31a   : > { %5477 = vmatmul.mubr.msk.f32.gmra.mrb[6].mxu1 %vm1619_vm5, %v7620_v1 }
 0x31b   : > { %5479 = vmatprep.mubr.msk.f32.mxu1 %vm1619_vm5, %v6679_v36 }
 0x31e   : > { %5480 = vmatmul.mubr.msk.f32.gmra.mrb[8].mxu1 %vm1619_vm5, %v6682_v2 }
 0x31f   : > { %5482 = vmatprep.mubr.msk.f32.mxu1 %vm1619_vm5, %v6720_v63 }
 0x322   : > { %5483 = vmatmul.mubr.msk.f32.gmra.mrb[10].mxu1 %vm1619_vm5, %v6723_v27 }
 0x323   : > { %5485 = vmatprep.mubr.msk.f32.mxu1 %vm1619_vm5, %v6717_v57 }
 0x326   : > { %5486 = vmatmul.mubr.msk.f32.gmra.mrb[12].mxu1 %vm1619_vm5, %v6269_v11  ;;  %vm4082_vm5 = vcmask 519168  }
 0x3c5   : > { %v5444_v6 = vpop.f32.mrb[14].mxu1 }
 0x3c6   : > { %v5488_v42 = vadd.f32 %v5444_v6, %v5144_v38  ;;  %v3811_v50 = vpop.f32.mrb[15].mxu1 }
 0x3c7   : > { %v5489_v51 = vadd.f32 %v3811_v50, %v2235_v7 }
 0x3c9   : > { %v5447_v36 = vpop.f32.mrb[16].mxu1 }
 0x3ca   : > { %v5490_v34 = vadd.f32 %v5447_v36, %v5147_v55  ;;  %v3821_v41 = vpop.f32.mrb[17].mxu1 }
 0x3cb   : > { %v5491_v2 = vadd.f32 %v3821_v41, %v2245_v37 }
 0x3cd   : > { %v5450_v53 = vpop.f32.mrb[18].mxu1 }
 0x3ce   : > { %v5492_v14 = vadd.f32 %v5450_v53, %v5150_v56  ;;  %v3831_v63 = vpop.f32.mrb[19].mxu1 }
 0x3cf   : > { %v5493_v3 = vadd.f32 %v3831_v63, %v2255_v49 }
 0x3d1   : > { %v5453_v23 = vpop.f32.mrb[20].mxu1 }
 0x3d2   : > { %v5494_v27 = vadd.f32 %v5453_v23, %v5153_v13  ;;  %v3841_v62 = vpop.f32.mrb[21].mxu1 }
 0x3d3   : > { %v5495_v29 = vadd.f32 %v3841_v62, %v2265_v48 }
 0x3d5   : > { %v5456_v57 = vpop.f32.mrb[22].mxu1 }
 0x3d6   : > { %v7328_v18 = vadd.f32 %v5456_v57, %v5156_v19  ;;  %v3851_v11 = vpop.f32.mrb[23].mxu1 }
 0x3d7   : > { %v7330_v46 = vadd.f32 %v3851_v11, %v2275_v59 }
 0x3d9   : > { %v5459_v22 = vpop.f32.mrb[24].mxu1 }
 0x3da   : > { %v7332_v35 = vadd.f32 %v5459_v22, %v5159_v61  ;;  %v3861_v17 = vpop.f32.mrb[25].mxu1 }
 0x3db   : > { %v7334_v47 = vadd.f32 %v3861_v17, %v2285_v33 }
 0x3dd   : > { %v5462_v39 = vpop.f32.mrb[26].mxu1 }
 0x3de   : > { %v7336_v45 = vadd.f32 %v5462_v39, %v5162_v0  ;;  %v3871_v8 = vpop.f32.mrb[27].mxu1 }
 0x3df   : > { %v7338_v43 = vadd.f32 %v3871_v8, %v2295_v28 }
 0x3e1   : > { %v5469_v40 = vpop.f32.mrb[0].mxu1 }
 0x3e2   : > { %v5502_v26 = vadd.f32 %v5469_v40, %v7230_v32  ;;  %v3928_v15 = vpop.f32.mrb[1].mxu1 }
 0x3e3   : > { %v5503_v1 = vadd.f32 %v3928_v15, %v7232_v58 }
 0x3e4   : > { %v4012_v52 = vmax.f32 %v5488_v42, %v5502_v26 }
 0x3e5   : > { %v4011_v12 = vmax.f32 %v5489_v51, %v5503_v1  ;;  %v5472_v16 = vpop.f32.mrb[2].mxu1 }
 0x3e6   : > { %v5504_v38 = vadd.f32 %v5472_v16, %v7238_v20  ;;  %v3938_v7 = vpop.f32.mrb[3].mxu1 }
 0x3e7   : > { %v4025_v55 = vmax.f32 %v4011_v12, %v4012_v52  ;;  %v5505_v37 = vadd.f32 %v3938_v7, %v7240_v4 }
 0x3e8   : > { %v4014_v56 = vmax.f32 %v5490_v34, %v5504_v38 }
 0x3e9   : > { %v4039_v32 = vadd.f32 %v7345_v10, %v4025_v55  ;;  %v4013_v49 = vmax.f32 %v5491_v2, %v5505_v37  ;;  %v5475_v58 = vpop.f32.mrb[4].mxu1 }
 0x3ea   : > { %v5506_v13 = vadd.f32 %v5475_v58, %v7246_v60  ;;  %v3948_v48 = vpop.f32.mrb[5].mxu1 }
 0x3eb   : > { %v4046_v19 = vmax.f32 %v4039_v32, 0.0  ;;  %v4026_v59 = vmax.f32 %v4013_v49, %v4014_v56  ;;  %v5507_v61 = vadd.f32 %v3948_v48, %v7248_v21 }
 0x3ec   : > { %v4016_v20 = vmax.f32 %v5492_v14, %v5506_v13 }
 0x3ed   : > { %v4572_v4 = vpack.c.bf16 %v4046_v19, %v4046_v19  ;;  %v4040_v33 = vadd.f32 %v7345_v10, %v4026_v59  ;;  %v4015_v0 = vmax.f32 %v5493_v3, %v5507_v61  ;;  %v5478_v28 = vpop.f32.mrb[6].mxu1 }
 0x3ee   : > { %v5508_v60 = vadd.f32 %v5478_v28, %v7254_v9  ;;  %v3958_v6 = vpop.f32.mrb[7].mxu1 }
 0x3ef   : > { %4083 = vst.msk [vmem:[%s7356_s27] sm:$0xf] %vm4082_vm5, %v4572_v4  ;;  %v4047_v21 = vmax.f32 %v4040_v33, 0.0  ;;  %v4027_v42 = vmax.f32 %v4015_v0, %v4016_v20  ;;  %v5509_v50 = vadd.f32 %v3958_v6, %v7256_v5 }
 0x3f0   : > { %v4018_v51 = vmax.f32 %v5494_v27, %v5508_v60 }
 0x3f1   : > { %v4573_v36 = vpack.c.bf16 %v4047_v21, %v4047_v21  ;;  %v4041_v34 = vadd.f32 %v7345_v10, %v4027_v42  ;;  %v4017_v41 = vmax.f32 %v5495_v29, %v5509_v50  ;;  %v5481_v2 = vpop.f32.mrb[8].mxu1 }
 0x3f2   : > { %v5510_v53 = vadd.f32 %v5481_v2, %v7262_v25  ;;  %v3968_v14 = vpop.f32.mrb[9].mxu1 }
 0x3f3   : > { %4084 = vst.msk [vmem:[%s7356_s27 + $0x4] sm:$0xf] %vm4082_vm5, %v4573_v36  ;;  %v4048_v9 = vmax.f32 %v4041_v34, 0.0  ;;  %v4028_v63 = vmax.f32 %v4017_v41, %v4018_v51  ;;  %v5511_v3 = vadd.f32 %v3968_v14, %v7264_v31 }
 0x3f4   : > { %v4020_v23 = vmax.f32 %v7328_v18, %v5510_v53 }
 0x3f5   : > { %v4574_v62 = vpack.c.bf16 %v4048_v9, %v4048_v9  ;;  %v4042_v5 = vadd.f32 %v7345_v10, %v4028_v63  ;;  %v4019_v27 = vmax.f32 %v7330_v46, %v5511_v3  ;;  %v5484_v57 = vpop.f32.mrb[10].mxu1 }
 0x3f6   : > { %v5512_v29 = vadd.f32 %v5484_v57, %v7270_v24  ;;  %v3978_v11 = vpop.f32.mrb[11].mxu1 }
 0x3f7   : > { %4085 = vst.msk [vmem:[%s7356_s27 + $0x8] sm:$0xf] %vm4082_vm5, %v4574_v62  ;;  %v4049_v25 = vmax.f32 %v4042_v5, 0.0  ;;  %v4029_v22 = vmax.f32 %v4019_v27, %v4020_v23  ;;  %v5513_v17 = vadd.f32 %v3978_v11, %v7272_v30 }
 0x3f8   : > { %v4022_v31 = vmax.f32 %v7332_v35, %v5512_v29 }
 0x3f9   : > { %v4575_v18 = vpack.c.bf16 %v4049_v25, %v4049_v25  ;;  %v4043_v39 = vadd.f32 %v7345_v10, %v4029_v22  ;;  %v4021_v8 = vmax.f32 %v7334_v47, %v5513_v17  ;;  %v5487_v40 = vpop.f32.mrb[12].mxu1 }
 0x3fa   : > { %v5514_v46 = vadd.f32 %v5487_v40, %v7278_v54  ;;  %v3988_v24 = vpop.f32.mrb[13].mxu1 }
 0x3fb   : > { %4086 = vst.msk [vmem:[%s7356_s27 + $0xc] sm:$0xf] %vm4082_vm5, %v4575_v18  ;;  %v4050_v26 = vmax.f32 %v4043_v39, 0.0  ;;  %v4030_v15 = vmax.f32 %v4021_v8, %v4022_v31  ;;  %v5515_v30 = vadd.f32 %v3988_v24, %v7280_v44 }
 0x3fc   : > { %v4024_v1 = vmax.f32 %v7336_v45, %v5514_v46 }
 0x3fd   : > { %v4576_v35 = vpack.c.bf16 %v4050_v26, %v4050_v26  ;;  %v4044_v52 = vadd.f32 %v7345_v10, %v4030_v15  ;;  %v4023_v12 = vmax.f32 %v7338_v43, %v5515_v30 }
 0x3ff   : > { %4087 = vst.msk [vmem:[%s7356_s27 + $0x10] sm:$0xf] %vm4082_vm5, %v4576_v35  ;;  %v4051_v47 = vmax.f32 %v4044_v52, 0.0  ;;  %v4031_v16 = vmax.f32 %v4023_v12, %v4024_v1 }
 0x401   : > { %v4577_v54 = vpack.c.bf16 %v4051_v47, %v4051_v47  ;;  %v4045_v38 = vadd.f32 %v7345_v10, %v4031_v16 }
 0x403   : > { %4088 = vst.msk [vmem:[%s7356_s27 + $0x14] sm:$0xf] %vm4082_vm5, %v4577_v54  ;;  %v4052_v7 = vmax.f32 %v4045_v38, 0.0 }
 0x405   : > { %v4578_v55 = vpack.c.bf16 %v4052_v7, %v4052_v7 }
 0x407   : > { %4089 = vst.msk [vmem:[%s7356_s27 + $0x18] sm:$0xf] %vm4082_vm5, %v4578_v55 }
 0x408 PF: > { %s15_s18 = sadd.s32 1, %s5807_s18  }
 0x409   : > { %p12_p4 = scmp.ge.s32.totalorder %s15_s18, 4  }
 0x40b   :  { %14 = sbr.rel (!%p12_p4) target bundleno = 1 (0x1), region = 78 }

</bundles_post_ra>
